<compile_context>
chip_gen: v7x
topology: tpu7x:2x2x1
jax: 0.10.0
libtpu: 0.0.40
codegen_flags: <defaults>
</compile_context>

<pallas_src>
import functools

import jax
import jax.numpy as jnp
from jax.experimental import pallas as pl
from jax.experimental.pallas import tpu as pltpu


def cross_attention_kernel(x_ref, ctx_ref,
                           wq_ref, bq_ref,
                           wk_ref, bk_ref,
                           wv_ref, bv_ref,
                           wo_ref, bo_ref,
                           out_ref,
                           kh_ref, vh_ref,
                           *, num_heads, head_dim):
    H, hd = num_heads, head_dim

    # ---- K/V path: computed once per batch, cached head-major (bf16) in
    # persistent VMEM scratch and reused by every N-tile of that batch.
    @pl.when(pl.program_id(1) == 0)
    def _():
        ctx = ctx_ref[0].astype(jnp.bfloat16)                                 # (M, C)
        k = jnp.dot(ctx, wk_ref[...], preferred_element_type=jnp.float32) + bk_ref[...]
        v = jnp.dot(ctx, wv_ref[...], preferred_element_type=jnp.float32) + bv_ref[...]
        m = k.shape[0]
        # Cast BEFORE the head-split relayout (halves relayout bytes).
        kh_ref[...] = k.astype(jnp.bfloat16).reshape(m, H, hd).transpose(1, 0, 2)
        vh_ref[...] = v.astype(jnp.bfloat16).reshape(m, H, hd).transpose(1, 0, 2)

    # ---- Q path (scale already folded into Wq / bq on the host).
    x = x_ref[0].astype(jnp.bfloat16)                                         # (TN, C)
    q = jnp.dot(x, wq_ref[...], preferred_element_type=jnp.float32) + bq_ref[...]
    tn = q.shape[0]
    qh = q.astype(jnp.bfloat16).reshape(tn, H, hd).transpose(1, 0, 2)         # (H, TN, hd)

    # ---- Attention: leading-batch einsums (batched MXU matmuls), f32 softmax.
    s = jnp.einsum("hnd,hmd->hnm", qh, kh_ref[...],
                   preferred_element_type=jnp.float32)                        # (H, TN, M)
    s_max = jnp.max(s, axis=-1, keepdims=True)
    p = jnp.exp(s - s_max)
    p = p * pl.reciprocal(jnp.sum(p, axis=-1, keepdims=True), approx=True)
    # TODO(synk): attention dropout omitted (module default p=0.0 / eval mode).

    o = jnp.einsum("hnm,hmd->hnd", p.astype(jnp.bfloat16), vh_ref[...],
                   preferred_element_type=jnp.float32)                        # (H, TN, hd)

    # ---- Merge heads (bf16 relayout) and apply the output projection.
    attn_out = o.astype(jnp.bfloat16).transpose(1, 0, 2).reshape(tn, H * hd)  # (TN, C)
    out = jnp.dot(attn_out, wo_ref[...],
                  preferred_element_type=jnp.float32) + bo_ref[...]
    out_ref[0] = out.astype(out_ref.dtype)


def _round_up(x, m):
    return (x + m - 1) // m * m


def _vmem_budget_bytes():
    cap = 64 * 1024 * 1024                 # conservative default = v7x physical
    try:
        cap = int(pltpu.get_tpu_info().vmem_capacity_bytes)
    except Exception:
        pass
    return (cap * 3) // 4                  # leave headroom for compiler scratch


def _vmem_estimate_bytes(tn, m, c, h, hd, io_itemsize):
    """Rough per-step VMEM footprint, padded to (8,128) tiles."""
    tn_p, m_p = _round_up(tn, 8), _round_up(m, 8)
    c_p, hd_p, ml_p = _round_up(c, 128), _round_up(hd, 128), _round_up(m, 128)
    io = 2 * (2 * tn_p * c_p) * io_itemsize + 2 * m_p * c_p * io_itemsize   # x/out dbl-buf + ctx
    w = 4 * c_p * c_p * 2 + 4 * 8 * c_p * 4                                 # bf16 weights + f32 biases
    kv = 2 * h * m_p * hd_p * 2                                             # K/V bf16 scratch
    act = (tn_p * c_p * (4 + 2)                       # q f32 + qh bf16
           + h * tn_p * ml_p * (4 + 4 + 2)            # scores / probs f32 + bf16 probs
           + h * tn_p * hd_p * (4 + 2)                # o f32 + bf16
           + tn_p * c_p * (2 + 4))                    # merged attn bf16 + out f32
    return io + w + kv + act


def _choose_tn(n, fits):
    """Largest lane/MXU-friendly N-tile that fits the VMEM budget."""
    n8 = _round_up(max(n, 8), 8)
    if n8 <= 512 and fits(n8):
        return n8                                     # whole sequence in one lane-dense tile
    for tn in (512, 384, 256, 128, 64, 32, 16, 8):    # multiples of 128 preferred
        if tn < n8 and fits(tn):
            return tn
    return 8


def cross_attention(x, context, params, num_heads):
    """x: (B, N, C), context: (B, M, C). Returns (B, N, C)."""
    B, N, C = x.shape
    _, M, _ = context.shape
    head_dim = C // num_heads
    scale = head_dim ** (-0.5)

    cdt = jnp.bfloat16  # MXU operand dtype (accumulation stays f32)

    # Weights transposed to (in, out); kv weight pre-split; scale folded into Q.
    wq_t = (params["wq"].T * scale).astype(cdt)       # (C, C), pre-scaled
    wk_t = params["wkv"][:C].T.astype(cdt)            # (C, C)
    wv_t = params["wkv"][C:].T.astype(cdt)            # (C, C)
    wo_t = params["wo"].T.astype(cdt)                 # (C, C)
    bq = (params["bq"] * scale).reshape(1, C).astype(jnp.float32)
    bk = params["bkv"][:C].reshape(1, C).astype(jnp.float32)
    bv = params["bkv"][C:].reshape(1, C).astype(jnp.float32)
    bo = params["bo"].reshape(1, C).astype(jnp.float32)

    budget = _vmem_budget_bytes()
    itemsize = jnp.dtype(x.dtype).itemsize
    fits = lambda tn: (_vmem_estimate_bytes(tn, M, C, num_heads, head_dim, itemsize)
                       * 5) // 4 <= budget            # 1.25x safety margin
    TN = _choose_tn(N, fits)

    N_pad = _round_up(N, TN)
    x_p = x if N_pad == N else jnp.pad(x, ((0, 0), (0, N_pad - N), (0, 0)))
    grid = (B, N_pad // TN)

    kernel = functools.partial(cross_attention_kernel,
                               num_heads=num_heads, head_dim=head_dim)

    def build(single_buffer_weights):
        def const_spec(shape):
            idx = lambda b, n: tuple(0 for _ in shape)
            if single_buffer_weights:
                # Constant index_map -> never revisited differently; single buffer.
                return pl.BlockSpec(shape, idx, pipeline_mode=pl.Buffered(1))
            return pl.BlockSpec(shape, idx)

        return pl.pallas_call(
            kernel,
            out_shape=jax.ShapeDtypeStruct((B, N_pad, C), x.dtype),
            grid_spec=pltpu.PrefetchScalarGridSpec(
                num_scalar_prefetch=0,
                grid=grid,
                in_specs=[
                    pl.BlockSpec((1, TN, C), lambda b, n: (b, n, 0)),   # x tile
                    pl.BlockSpec((1, M, C), lambda b, n: (b, 0, 0)),    # context (per batch)
                    const_spec((C, C)), const_spec((1, C)),             # Wq^T (scaled), bq
                    const_spec((C, C)), const_spec((1, C)),             # Wk^T, bk
                    const_spec((C, C)), const_spec((1, C)),             # Wv^T, bv
                    const_spec((C, C)), const_spec((1, C)),             # Wo^T, bo
                ],
                out_specs=pl.BlockSpec((1, TN, C), lambda b, n: (b, n, 0)),
                scratch_shapes=[
                    pltpu.VMEM((num_heads, M, head_dim), jnp.bfloat16),  # cached K heads
                    pltpu.VMEM((num_heads, M, head_dim), jnp.bfloat16),  # cached V heads
                ],
            ),
            compiler_params=pltpu.CompilerParams(
                dimension_semantics=("parallel", "arbitrary"),
                vmem_limit_bytes=int(budget)),
        )

    args = (x_p, context, wq_t, bq, wk_t, bk, wv_t, bv, wo_t, bo)
    try:
        out = build(single_buffer_weights=True)(*args)
    except Exception:
        # Fallback for Pallas versions without BlockSpec.pipeline_mode support.
        out = build(single_buffer_weights=False)(*args)

    return out if N_pad == N else out[:, :N, :]


def cross_attention_ref(x, context, params, num_heads):
    """Pure-JAX f32 reference mirroring the PyTorch forward."""
    B, N, C = x.shape
    _, M, _ = context.shape
    hd = C // num_heads
    scale = hd ** (-0.5)
    q = x @ params["wq"].T + params["bq"]
    kv = context @ params["wkv"].T + params["bkv"]
    q = q.reshape(B, N, num_heads, hd).transpose(0, 2, 1, 3)
    kv = kv.reshape(B, M, 2, num_heads, hd).transpose(2, 0, 3, 1, 4)
    k, v = kv[0], kv[1]
    attn = (q @ jnp.swapaxes(k, -2, -1)) * scale
    attn = jax.nn.softmax(attn, axis=-1)
    out = (attn @ v).transpose(0, 2, 1, 3).reshape(B, N, C)
    return out @ params["wo"].T + params["bo"]


if __name__ == "__main__":
    B, N, M, C = 2, 16, 8, 64
    num_heads = 8

    key = jax.random.PRNGKey(0)
    keys = jax.random.split(key, 8)
    bound = 1.0 / (C ** 0.5)

    params = {
        "wq":  jax.random.uniform(keys[0], (C, C), jnp.float32, -bound, bound),
        "bq":  jax.random.uniform(keys[1], (C,), jnp.float32, -bound, bound),
        "wkv": jax.random.uniform(keys[2], (2 * C, C), jnp.float32, -bound, bound),
        "bkv": jax.random.uniform(keys[3], (2 * C,), jnp.float32, -bound, bound),
        "wo":  jax.random.uniform(keys[4], (C, C), jnp.float32, -bound, bound),
        "bo":  jax.random.uniform(keys[5], (C,), jnp.float32, -bound, bound),
    }
    x = jax.random.normal(keys[6], (B, N, C), jnp.float32)
    context = jax.random.normal(keys[7], (B, M, C), jnp.float32)

    out = cross_attention(x, context, params, num_heads)
    out = jax.block_until_ready(out)

    ref = cross_attention_ref(x, context, params, num_heads)
    assert out.shape == (B, N, C)
    # Kernel uses bf16 MXU operands (f32 accumulation) + approx reciprocal;
    # compare against the all-f32 reference with a loose tolerance.
    assert jnp.allclose(out, ref, atol=5e-2, rtol=5e-2), "mismatch vs reference"

    print("KERNEL_OK")
</pallas_src>

<mosaic_0001>
module attributes {stable_mosaic.version = 11 : i64} {
  func.func @cross_attention_kernel(%arg0: i32, %arg1: i32, %arg2: memref<1x16x64xf32, #tpu.memory_space<vmem>>, %arg3: memref<1x8x64xf32, #tpu.memory_space<vmem>>, %arg4: memref<64x64xbf16, #tpu.memory_space<vmem>>, %arg5: memref<1x64xf32, #tpu.memory_space<vmem>>, %arg6: memref<64x64xbf16, #tpu.memory_space<vmem>>, %arg7: memref<1x64xf32, #tpu.memory_space<vmem>>, %arg8: memref<64x64xbf16, #tpu.memory_space<vmem>>, %arg9: memref<1x64xf32, #tpu.memory_space<vmem>>, %arg10: memref<64x64xbf16, #tpu.memory_space<vmem>>, %arg11: memref<1x64xf32, #tpu.memory_space<vmem>>, %arg12: memref<1x16x64xf32, #tpu.memory_space<vmem>>, %arg13: memref<8x8x8xbf16, #tpu.memory_space<vmem>>, %arg14: memref<8x8x8xbf16, #tpu.memory_space<vmem>>) attributes {dimension_semantics = [#tpu.dimension_semantics<parallel>, #tpu.dimension_semantics<arbitrary>], iteration_bounds = array<i64: 2, 1>, scalar_prefetch = 0 : i64, scratch_operands = 2 : i64, tpu.core_type = #tpu.core_type<tc>, window_params = [{transform_indices = @transform_0, window_bounds = array<i64: 1, 16, 64>}, {transform_indices = @transform_1, window_bounds = array<i64: 1, 8, 64>}, {pipeline_mode = #tpu.pipeline_mode<synchronous>, transform_indices = @transform_2, window_bounds = array<i64: 64, 64>}, {pipeline_mode = #tpu.pipeline_mode<synchronous>, transform_indices = @transform_3, window_bounds = array<i64: 1, 64>}, {pipeline_mode = #tpu.pipeline_mode<synchronous>, transform_indices = @transform_4, window_bounds = array<i64: 64, 64>}, {pipeline_mode = #tpu.pipeline_mode<synchronous>, transform_indices = @transform_5, window_bounds = array<i64: 1, 64>}, {pipeline_mode = #tpu.pipeline_mode<synchronous>, transform_indices = @transform_6, window_bounds = array<i64: 64, 64>}, {pipeline_mode = #tpu.pipeline_mode<synchronous>, transform_indices = @transform_7, window_bounds = array<i64: 1, 64>}, {pipeline_mode = #tpu.pipeline_mode<synchronous>, transform_indices = @transform_8, window_bounds = array<i64: 64, 64>}, {pipeline_mode = #tpu.pipeline_mode<synchronous>, transform_indices = @transform_9, window_bounds = array<i64: 1, 64>}, {transform_indices = @transform_10, window_bounds = array<i64: 1, 16, 64>}]} {
    %c0_i32 = arith.constant 0 : i32
    %0 = arith.cmpi eq, %arg1, %c0_i32 : i32
    %1 = arith.extui %0 : i1 to i32
    %c0_i32_0 = arith.constant 0 : i32
    %2 = arith.cmpi ne, %1, %c0_i32_0 : i32
    scf.if %2 {
      %c0_25 = arith.constant 0 : index
      %c0_26 = arith.constant 0 : index
      %c0_27 = arith.constant 0 : index
      %40 = vector.load %arg3[%c0_25, %c0_26, %c0_27] : memref<1x8x64xf32, #tpu.memory_space<vmem>>, vector<1x8x64xf32>
      %41 = vector.shape_cast %40 : vector<1x8x64xf32> to vector<8x64xf32>
      %42 = arith.truncf %41 : vector<8x64xf32> to vector<8x64xbf16>
      %c0_28 = arith.constant 0 : index
      %c0_29 = arith.constant 0 : index
      %43 = vector.load %arg6[%c0_28, %c0_29] : memref<64x64xbf16, #tpu.memory_space<vmem>>, vector<64x64xbf16>
      %cst_30 = arith.constant dense<0.000000e+00> : vector<8x64xf32>
      %44 = tpu.matmul %42, %43, %cst_30 {dimension_numbers = #tpu.dot_dimension_numbers<[1], [0], [0], [1], [0, 0, 1, 1], [], []>} : vector<8x64xbf16>, vector<64x64xbf16>, vector<8x64xf32> -> vector<8x64xf32>
      %c0_31 = arith.constant 0 : index
      %c0_32 = arith.constant 0 : index
      %45 = vector.load %arg7[%c0_31, %c0_32] : memref<1x64xf32, #tpu.memory_space<vmem>>, vector<1x64xf32>
      %46 = vector.broadcast %45 : vector<1x64xf32> to vector<8x64xf32>
      %47 = arith.addf %44, %46 : vector<8x64xf32>
      %c0_33 = arith.constant 0 : index
      %c0_34 = arith.constant 0 : index
      %48 = vector.load %arg8[%c0_33, %c0_34] : memref<64x64xbf16, #tpu.memory_space<vmem>>, vector<64x64xbf16>
      %cst_35 = arith.constant dense<0.000000e+00> : vector<8x64xf32>
      %49 = tpu.matmul %42, %48, %cst_35 {dimension_numbers = #tpu.dot_dimension_numbers<[1], [0], [0], [1], [0, 0, 1, 1], [], []>} : vector<8x64xbf16>, vector<64x64xbf16>, vector<8x64xf32> -> vector<8x64xf32>
      %c0_36 = arith.constant 0 : index
      %c0_37 = arith.constant 0 : index
      %50 = vector.load %arg9[%c0_36, %c0_37] : memref<1x64xf32, #tpu.memory_space<vmem>>, vector<1x64xf32>
      %51 = vector.broadcast %50 : vector<1x64xf32> to vector<8x64xf32>
      %52 = arith.addf %49, %51 : vector<8x64xf32>
      %53 = arith.truncf %47 : vector<8x64xf32> to vector<8x64xbf16>
      %54 = vector.shape_cast %53 : vector<8x64xbf16> to vector<8x8x8xbf16>
      %55 = tpu.transpose %54, [1, 0, 2] : vector<8x8x8xbf16> -> vector<8x8x8xbf16>
      %c0_38 = arith.constant 0 : index
      %c0_39 = arith.constant 0 : index
      %c0_40 = arith.constant 0 : index
      %56 = vector.load %arg13[%c0_38, %c0_39, %c0_40] : memref<8x8x8xbf16, #tpu.memory_space<vmem>>, vector<8x8x8xbf16>
      tpu.vector_store %arg13[%c0_38, %c0_39, %c0_40], %55 {strides = array<i32>} : memref<8x8x8xbf16, #tpu.memory_space<vmem>>, vector<8x8x8xbf16>,
      %57 = arith.truncf %52 : vector<8x64xf32> to vector<8x64xbf16>
      %58 = vector.shape_cast %57 : vector<8x64xbf16> to vector<8x8x8xbf16>
      %59 = tpu.transpose %58, [1, 0, 2] : vector<8x8x8xbf16> -> vector<8x8x8xbf16>
      %c0_41 = arith.constant 0 : index
      %c0_42 = arith.constant 0 : index
      %c0_43 = arith.constant 0 : index
      %60 = vector.load %arg14[%c0_41, %c0_42, %c0_43] : memref<8x8x8xbf16, #tpu.memory_space<vmem>>, vector<8x8x8xbf16>
      tpu.vector_store %arg14[%c0_41, %c0_42, %c0_43], %59 {strides = array<i32>} : memref<8x8x8xbf16, #tpu.memory_space<vmem>>, vector<8x8x8xbf16>,
    } else {
    }
    %c0 = arith.constant 0 : index
    %c0_1 = arith.constant 0 : index
    %c0_2 = arith.constant 0 : index
    %3 = vector.load %arg2[%c0, %c0_1, %c0_2] : memref<1x16x64xf32, #tpu.memory_space<vmem>>, vector<1x16x64xf32>
    %4 = vector.shape_cast %3 : vector<1x16x64xf32> to vector<16x64xf32>
    %5 = arith.truncf %4 : vector<16x64xf32> to vector<16x64xbf16>
    %c0_3 = arith.constant 0 : index
    %c0_4 = arith.constant 0 : index
    %6 = vector.load %arg4[%c0_3, %c0_4] : memref<64x64xbf16, #tpu.memory_space<vmem>>, vector<64x64xbf16>
    %cst = arith.constant dense<0.000000e+00> : vector<16x64xf32>
    %7 = tpu.matmul %5, %6, %cst {dimension_numbers = #tpu.dot_dimension_numbers<[1], [0], [0], [1], [0, 0, 1, 1], [], []>} : vector<16x64xbf16>, vector<64x64xbf16>, vector<16x64xf32> -> vector<16x64xf32>
    %c0_5 = arith.constant 0 : index
    %c0_6 = arith.constant 0 : index
    %8 = vector.load %arg5[%c0_5, %c0_6] : memref<1x64xf32, #tpu.memory_space<vmem>>, vector<1x64xf32>
    %9 = vector.broadcast %8 : vector<1x64xf32> to vector<16x64xf32>
    %10 = arith.addf %7, %9 : vector<16x64xf32>
    %11 = arith.truncf %10 : vector<16x64xf32> to vector<16x64xbf16>
    %12 = vector.shape_cast %11 : vector<16x64xbf16> to vector<16x8x8xbf16>
    %13 = tpu.transpose %12, [1, 0, 2] : vector<16x8x8xbf16> -> vector<8x16x8xbf16>
    %c0_7 = arith.constant 0 : index
    %c0_8 = arith.constant 0 : index
    %c0_9 = arith.constant 0 : index
    %14 = vector.load %arg13[%c0_7, %c0_8, %c0_9] : memref<8x8x8xbf16, #tpu.memory_space<vmem>>, vector<8x8x8xbf16>
    "tpu.trace_start"() <{level = 10 : i32, message = "hnd,hmd->hnm"}> : () -> ()
    %cst_10 = arith.constant dense<0.000000e+00> : vector<8x16x8xf32>
    %15 = tpu.matmul %13, %14, %cst_10 {dimension_numbers = #tpu.dot_dimension_numbers<[2], [2], [1], [1], [0, 0, 0, 1, 1, 1], [0], [0]>} : vector<8x16x8xbf16>, vector<8x8x8xbf16>, vector<8x16x8xf32> -> vector<8x16x8xf32>
    "tpu.trace_stop"() : () -> ()
    %cst_11 = arith.constant dense<0xFF800000> : vector<8x16xf32>
    %16 = vector.multi_reduction <maximumf>, %15, %cst_11 [2] : vector<8x16x8xf32> to vector<8x16xf32>
    %17 = vector.shape_cast %16 : vector<8x16xf32> to vector<8x16x1xf32>
    %18 = vector.broadcast %17 : vector<8x16x1xf32> to vector<8x16x8xf32>
    %19 = arith.subf %15, %18 : vector<8x16x8xf32>
    %20 = math.exp %19 : vector<8x16x8xf32>
    %cst_12 = arith.constant dense<0.000000e+00> : vector<8x16xf32>
    %21 = vector.multi_reduction <add>, %20, %cst_12 [2] : vector<8x16x8xf32> to vector<8x16xf32>
    %22 = vector.shape_cast %21 : vector<8x16xf32> to vector<8x16x1xf32>
    %23 = tpu.reciprocal %22 {approx = true} : vector<8x16x1xf32> -> vector<8x16x1xf32>
    %24 = vector.broadcast %23 : vector<8x16x1xf32> to vector<8x16x8xf32>
    %25 = arith.mulf %20, %24 : vector<8x16x8xf32>
    %26 = arith.truncf %25 : vector<8x16x8xf32> to vector<8x16x8xbf16>
    %c0_13 = arith.constant 0 : index
    %c0_14 = arith.constant 0 : index
    %c0_15 = arith.constant 0 : index
    %27 = vector.load %arg14[%c0_13, %c0_14, %c0_15] : memref<8x8x8xbf16, #tpu.memory_space<vmem>>, vector<8x8x8xbf16>
    "tpu.trace_start"() <{level = 10 : i32, message = "hnm,hmd->hnd"}> : () -> ()
    %cst_16 = arith.constant dense<0.000000e+00> : vector<8x16x8xf32>
    %28 = tpu.matmul %26, %27, %cst_16 {dimension_numbers = #tpu.dot_dimension_numbers<[2], [1], [1], [2], [0, 0, 0, 1, 1, 2], [0], [0]>} : vector<8x16x8xbf16>, vector<8x8x8xbf16>, vector<8x16x8xf32> -> vector<8x16x8xf32>
    "tpu.trace_stop"() : () -> ()
    %29 = arith.truncf %28 : vector<8x16x8xf32> to vector<8x16x8xbf16>
    %30 = tpu.transpose %29, [1, 0, 2] : vector<8x16x8xbf16> -> vector<16x8x8xbf16>
    %31 = vector.shape_cast %30 : vector<16x8x8xbf16> to vector<16x64xbf16>
    %c0_17 = arith.constant 0 : index
    %c0_18 = arith.constant 0 : index
    %32 = vector.load %arg10[%c0_17, %c0_18] : memref<64x64xbf16, #tpu.memory_space<vmem>>, vector<64x64xbf16>
    %cst_19 = arith.constant dense<0.000000e+00> : vector<16x64xf32>
    %33 = tpu.matmul %31, %32, %cst_19 {dimension_numbers = #tpu.dot_dimension_numbers<[1], [0], [0], [1], [0, 0, 1, 1], [], []>} : vector<16x64xbf16>, vector<64x64xbf16>, vector<16x64xf32> -> vector<16x64xf32>
    %c0_20 = arith.constant 0 : index
    %c0_21 = arith.constant 0 : index
    %34 = vector.load %arg11[%c0_20, %c0_21] : memref<1x64xf32, #tpu.memory_space<vmem>>, vector<1x64xf32>
    %35 = vector.broadcast %34 : vector<1x64xf32> to vector<16x64xf32>
    %36 = arith.addf %33, %35 : vector<16x64xf32>
    %c0_22 = arith.constant 0 : index
    %c0_23 = arith.constant 0 : index
    %c0_24 = arith.constant 0 : index
    %37 = vector.load %arg12[%c0_22, %c0_23, %c0_24] : memref<1x16x64xf32, #tpu.memory_space<vmem>>, vector<1x16x64xf32>
    %38 = vector.shape_cast %37 : vector<1x16x64xf32> to vector<16x64xf32>
    %39 = vector.shape_cast %36 : vector<16x64xf32> to vector<1x16x64xf32>
    tpu.vector_store %arg12[%c0_22, %c0_23, %c0_24], %39 {strides = array<i32>} : memref<1x16x64xf32, #tpu.memory_space<vmem>>, vector<1x16x64xf32>,
    return
  }
  func.func @transform_0(%arg0: i32, %arg1: i32) -> (i32, i32, i32) {
    %c0_i32 = arith.constant 0 : i32
    %c0_i32_0 = arith.constant 0 : i32
    return %arg0, %arg1, %c0_i32 : i32, i32, i32
  }
  func.func @transform_1(%arg0: i32, %arg1: i32) -> (i32, i32, i32) {
    %c0_i32 = arith.constant 0 : i32
    %c0_i32_0 = arith.constant 0 : i32
    %c0_i32_1 = arith.constant 0 : i32
    return %arg0, %c0_i32, %c0_i32_0 : i32, i32, i32
  }
  func.func @transform_2(%arg0: i32, %arg1: i32) -> (i32, i32) {
    %c0_i32 = arith.constant 0 : i32
    %c0_i32_0 = arith.constant 0 : i32
    %c0_i32_1 = arith.constant 0 : i32
    return %c0_i32, %c0_i32_0 : i32, i32
  }
  func.func @transform_3(%arg0: i32, %arg1: i32) -> (i32, i32) {
    %c0_i32 = arith.constant 0 : i32
    %c0_i32_0 = arith.constant 0 : i32
    %c0_i32_1 = arith.constant 0 : i32
    return %c0_i32, %c0_i32_0 : i32, i32
  }
  func.func @transform_4(%arg0: i32, %arg1: i32) -> (i32, i32) {
    %c0_i32 = arith.constant 0 : i32
    %c0_i32_0 = arith.constant 0 : i32
    %c0_i32_1 = arith.constant 0 : i32
    return %c0_i32, %c0_i32_0 : i32, i32
  }
  func.func @transform_5(%arg0: i32, %arg1: i32) -> (i32, i32) {
    %c0_i32 = arith.constant 0 : i32
    %c0_i32_0 = arith.constant 0 : i32
    %c0_i32_1 = arith.constant 0 : i32
    return %c0_i32, %c0_i32_0 : i32, i32
  }
  func.func @transform_6(%arg0: i32, %arg1: i32) -> (i32, i32) {
    %c0_i32 = arith.constant 0 : i32
    %c0_i32_0 = arith.constant 0 : i32
    %c0_i32_1 = arith.constant 0 : i32
    return %c0_i32, %c0_i32_0 : i32, i32
  }
  func.func @transform_7(%arg0: i32, %arg1: i32) -> (i32, i32) {
    %c0_i32 = arith.constant 0 : i32
    %c0_i32_0 = arith.constant 0 : i32
    %c0_i32_1 = arith.constant 0 : i32
    return %c0_i32, %c0_i32_0 : i32, i32
  }
  func.func @transform_8(%arg0: i32, %arg1: i32) -> (i32, i32) {
    %c0_i32 = arith.constant 0 : i32
    %c0_i32_0 = arith.constant 0 : i32
    %c0_i32_1 = arith.constant 0 : i32
    return %c0_i32, %c0_i32_0 : i32, i32
  }
  func.func @transform_9(%arg0: i32, %arg1: i32) -> (i32, i32) {
    %c0_i32 = arith.constant 0 : i32
    %c0_i32_0 = arith.constant 0 : i32
    %c0_i32_1 = arith.constant 0 : i32
    return %c0_i32, %c0_i32_0 : i32, i32
  }
  func.func @transform_10(%arg0: i32, %arg1: i32) -> (i32, i32, i32) {
    %c0_i32 = arith.constant 0 : i32
    %c0_i32_0 = arith.constant 0 : i32
    return %arg0, %arg1, %c0_i32 : i32, i32, i32
  }
}

module attributes {stable_mosaic.version = 11 : i64} {
  func.func @cross_attention_kernel(%arg0: i32, %arg1: i32, %arg2: memref<1x16x64xf32, #tpu.memory_space<vmem>>, %arg3: memref<1x8x64xf32, #tpu.memory_space<vmem>>, %arg4: memref<64x64xbf16, #tpu.memory_space<vmem>>, %arg5: memref<1x64xf32, #tpu.memory_space<vmem>>, %arg6: memref<64x64xbf16, #tpu.memory_space<vmem>>, %arg7: memref<1x64xf32, #tpu.memory_space<vmem>>, %arg8: memref<64x64xbf16, #tpu.memory_space<vmem>>, %arg9: memref<1x64xf32, #tpu.memory_space<vmem>>, %arg10: memref<64x64xbf16, #tpu.memory_space<vmem>>, %arg11: memref<1x64xf32, #tpu.memory_space<vmem>>, %arg12: memref<1x16x64xf32, #tpu.memory_space<vmem>>, %arg13: memref<8x8x8xbf16, #tpu.memory_space<vmem>>, %arg14: memref<8x8x8xbf16, #tpu.memory_space<vmem>>) attributes {dimension_semantics = [#tpu.dimension_semantics<parallel>, #tpu.dimension_semantics<arbitrary>], iteration_bounds = array<i64: 2, 1>, scalar_prefetch = 0 : i64, scratch_operands = 2 : i64, tpu.core_type = #tpu.core_type<tc>, window_params = [{transform_indices = @transform_0, window_bounds = array<i64: 1, 16, 64>}, {transform_indices = @transform_1, window_bounds = array<i64: 1, 8, 64>}, {pipeline_mode = #tpu.pipeline_mode<synchronous>, transform_indices = @transform_2, window_bounds = array<i64: 64, 64>}, {pipeline_mode = #tpu.pipeline_mode<synchronous>, transform_indices = @transform_3, window_bounds = array<i64: 1, 64>}, {pipeline_mode = #tpu.pipeline_mode<synchronous>, transform_indices = @transform_4, window_bounds = array<i64: 64, 64>}, {pipeline_mode = #tpu.pipeline_mode<synchronous>, transform_indices = @transform_5, window_bounds = array<i64: 1, 64>}, {pipeline_mode = #tpu.pipeline_mode<synchronous>, transform_indices = @transform_6, window_bounds = array<i64: 64, 64>}, {pipeline_mode = #tpu.pipeline_mode<synchronous>, transform_indices = @transform_7, window_bounds = array<i64: 1, 64>}, {pipeline_mode = #tpu.pipeline_mode<synchronous>, transform_indices = @transform_8, window_bounds = array<i64: 64, 64>}, {pipeline_mode = #tpu.pipeline_mode<synchronous>, transform_indices = @transform_9, window_bounds = array<i64: 1, 64>}, {transform_indices = @transform_10, window_bounds = array<i64: 1, 16, 64>}]} {
    %c0_i32 = arith.constant 0 : i32
    %0 = arith.cmpi eq, %arg1, %c0_i32 : i32
    %1 = arith.extui %0 : i1 to i32
    %c0_i32_0 = arith.constant 0 : i32
    %2 = arith.cmpi ne, %1, %c0_i32_0 : i32
    scf.if %2 {
      %c0_25 = arith.constant 0 : index
      %c0_26 = arith.constant 0 : index
      %c0_27 = arith.constant 0 : index
      %40 = vector.load %arg3[%c0_25, %c0_26, %c0_27] : memref<1x8x64xf32, #tpu.memory_space<vmem>>, vector<1x8x64xf32>
      %41 = vector.shape_cast %40 : vector<1x8x64xf32> to vector<8x64xf32>
      %42 = arith.truncf %41 : vector<8x64xf32> to vector<8x64xbf16>
      %c0_28 = arith.constant 0 : index
      %c0_29 = arith.constant 0 : index
      %43 = vector.load %arg6[%c0_28, %c0_29] : memref<64x64xbf16, #tpu.memory_space<vmem>>, vector<64x64xbf16>
      %cst_30 = arith.constant dense<0.000000e+00> : vector<8x64xf32>
      %44 = tpu.matmul %42, %43, %cst_30 {dimension_numbers = #tpu.dot_dimension_numbers<[1], [0], [0], [1], [0, 0, 1, 1], [], []>} : vector<8x64xbf16>, vector<64x64xbf16>, vector<8x64xf32> -> vector<8x64xf32>
      %c0_31 = arith.constant 0 : index
      %c0_32 = arith.constant 0 : index
      %45 = vector.load %arg7[%c0_31, %c0_32] : memref<1x64xf32, #tpu.memory_space<vmem>>, vector<1x64xf32>
      %46 = vector.broadcast %45 : vector<1x64xf32> to vector<8x64xf32>
      %47 = arith.addf %44, %46 : vector<8x64xf32>
      %c0_33 = arith.constant 0 : index
      %c0_34 = arith.constant 0 : index
      %48 = vector.load %arg8[%c0_33, %c0_34] : memref<64x64xbf16, #tpu.memory_space<vmem>>, vector<64x64xbf16>
      %cst_35 = arith.constant dense<0.000000e+00> : vector<8x64xf32>
      %49 = tpu.matmul %42, %48, %cst_35 {dimension_numbers = #tpu.dot_dimension_numbers<[1], [0], [0], [1], [0, 0, 1, 1], [], []>} : vector<8x64xbf16>, vector<64x64xbf16>, vector<8x64xf32> -> vector<8x64xf32>
      %c0_36 = arith.constant 0 : index
      %c0_37 = arith.constant 0 : index
      %50 = vector.load %arg9[%c0_36, %c0_37] : memref<1x64xf32, #tpu.memory_space<vmem>>, vector<1x64xf32>
      %51 = vector.broadcast %50 : vector<1x64xf32> to vector<8x64xf32>
      %52 = arith.addf %49, %51 : vector<8x64xf32>
      %53 = arith.truncf %47 : vector<8x64xf32> to vector<8x64xbf16>
      %54 = vector.shape_cast %53 : vector<8x64xbf16> to vector<8x8x8xbf16>
      %55 = tpu.transpose %54, [1, 0, 2] : vector<8x8x8xbf16> -> vector<8x8x8xbf16>
      %c0_38 = arith.constant 0 : index
      %c0_39 = arith.constant 0 : index
      %c0_40 = arith.constant 0 : index
      %56 = vector.load %arg13[%c0_38, %c0_39, %c0_40] : memref<8x8x8xbf16, #tpu.memory_space<vmem>>, vector<8x8x8xbf16>
      tpu.vector_store %arg13[%c0_38, %c0_39, %c0_40], %55 {strides = array<i32>} : memref<8x8x8xbf16, #tpu.memory_space<vmem>>, vector<8x8x8xbf16>,
      %57 = arith.truncf %52 : vector<8x64xf32> to vector<8x64xbf16>
      %58 = vector.shape_cast %57 : vector<8x64xbf16> to vector<8x8x8xbf16>
      %59 = tpu.transpose %58, [1, 0, 2] : vector<8x8x8xbf16> -> vector<8x8x8xbf16>
      %c0_41 = arith.constant 0 : index
      %c0_42 = arith.constant 0 : index
      %c0_43 = arith.constant 0 : index
      %60 = vector.load %arg14[%c0_41, %c0_42, %c0_43] : memref<8x8x8xbf16, #tpu.memory_space<vmem>>, vector<8x8x8xbf16>
      tpu.vector_store %arg14[%c0_41, %c0_42, %c0_43], %59 {strides = array<i32>} : memref<8x8x8xbf16, #tpu.memory_space<vmem>>, vector<8x8x8xbf16>,
    } else {
    }
    %c0 = arith.constant 0 : index
    %c0_1 = arith.constant 0 : index
    %c0_2 = arith.constant 0 : index
    %3 = vector.load %arg2[%c0, %c0_1, %c0_2] : memref<1x16x64xf32, #tpu.memory_space<vmem>>, vector<1x16x64xf32>
    %4 = vector.shape_cast %3 : vector<1x16x64xf32> to vector<16x64xf32>
    %5 = arith.truncf %4 : vector<16x64xf32> to vector<16x64xbf16>
    %c0_3 = arith.constant 0 : index
    %c0_4 = arith.constant 0 : index
    %6 = vector.load %arg4[%c0_3, %c0_4] : memref<64x64xbf16, #tpu.memory_space<vmem>>, vector<64x64xbf16>
    %cst = arith.constant dense<0.000000e+00> : vector<16x64xf32>
    %7 = tpu.matmul %5, %6, %cst {dimension_numbers = #tpu.dot_dimension_numbers<[1], [0], [0], [1], [0, 0, 1, 1], [], []>} : vector<16x64xbf16>, vector<64x64xbf16>, vector<16x64xf32> -> vector<16x64xf32>
    %c0_5 = arith.constant 0 : index
    %c0_6 = arith.constant 0 : index
    %8 = vector.load %arg5[%c0_5, %c0_6] : memref<1x64xf32, #tpu.memory_space<vmem>>, vector<1x64xf32>
    %9 = vector.broadcast %8 : vector<1x64xf32> to vector<16x64xf32>
    %10 = arith.addf %7, %9 : vector<16x64xf32>
    %11 = arith.truncf %10 : vector<16x64xf32> to vector<16x64xbf16>
    %12 = vector.shape_cast %11 : vector<16x64xbf16> to vector<16x8x8xbf16>
    %13 = tpu.transpose %12, [1, 0, 2] : vector<16x8x8xbf16> -> vector<8x16x8xbf16>
    %c0_7 = arith.constant 0 : index
    %c0_8 = arith.constant 0 : index
    %c0_9 = arith.constant 0 : index
    %14 = vector.load %arg13[%c0_7, %c0_8, %c0_9] : memref<8x8x8xbf16, #tpu.memory_space<vmem>>, vector<8x8x8xbf16>
    "tpu.trace_start"() <{level = 10 : i32, message = "hnd,hmd->hnm"}> : () -> ()
    %cst_10 = arith.constant dense<0.000000e+00> : vector<8x16x8xf32>
    %15 = tpu.matmul %13, %14, %cst_10 {dimension_numbers = #tpu.dot_dimension_numbers<[2], [2], [1], [1], [0, 0, 0, 1, 1, 1], [0], [0]>} : vector<8x16x8xbf16>, vector<8x8x8xbf16>, vector<8x16x8xf32> -> vector<8x16x8xf32>
    "tpu.trace_stop"() : () -> ()
    %cst_11 = arith.constant dense<0xFF800000> : vector<8x16xf32>
    %16 = vector.multi_reduction <maximumf>, %15, %cst_11 [2] : vector<8x16x8xf32> to vector<8x16xf32>
    %17 = vector.shape_cast %16 : vector<8x16xf32> to vector<8x16x1xf32>
    %18 = vector.broadcast %17 : vector<8x16x1xf32> to vector<8x16x8xf32>
    %19 = arith.subf %15, %18 : vector<8x16x8xf32>
    %20 = math.exp %19 : vector<8x16x8xf32>
    %cst_12 = arith.constant dense<0.000000e+00> : vector<8x16xf32>
    %21 = vector.multi_reduction <add>, %20, %cst_12 [2] : vector<8x16x8xf32> to vector<8x16xf32>
    %22 = vector.shape_cast %21 : vector<8x16xf32> to vector<8x16x1xf32>
    %23 = tpu.reciprocal %22 {approx = true} : vector<8x16x1xf32> -> vector<8x16x1xf32>
    %24 = vector.broadcast %23 : vector<8x16x1xf32> to vector<8x16x8xf32>
    %25 = arith.mulf %20, %24 : vector<8x16x8xf32>
    %26 = arith.truncf %25 : vector<8x16x8xf32> to vector<8x16x8xbf16>
    %c0_13 = arith.constant 0 : index
    %c0_14 = arith.constant 0 : index
    %c0_15 = arith.constant 0 : index
    %27 = vector.load %arg14[%c0_13, %c0_14, %c0_15] : memref<8x8x8xbf16, #tpu.memory_space<vmem>>, vector<8x8x8xbf16>
    "tpu.trace_start"() <{level = 10 : i32, message = "hnm,hmd->hnd"}> : () -> ()
    %cst_16 = arith.constant dense<0.000000e+00> : vector<8x16x8xf32>
    %28 = tpu.matmul %26, %27, %cst_16 {dimension_numbers = #tpu.dot_dimension_numbers<[2], [1], [1], [2], [0, 0, 0, 1, 1, 2], [0], [0]>} : vector<8x16x8xbf16>, vector<8x8x8xbf16>, vector<8x16x8xf32> -> vector<8x16x8xf32>
    "tpu.trace_stop"() : () -> ()
    %29 = arith.truncf %28 : vector<8x16x8xf32> to vector<8x16x8xbf16>
    %30 = tpu.transpose %29, [1, 0, 2] : vector<8x16x8xbf16> -> vector<16x8x8xbf16>
    %31 = vector.shape_cast %30 : vector<16x8x8xbf16> to vector<16x64xbf16>
    %c0_17 = arith.constant 0 : index
    %c0_18 = arith.constant 0 : index
    %32 = vector.load %arg10[%c0_17, %c0_18] : memref<64x64xbf16, #tpu.memory_space<vmem>>, vector<64x64xbf16>
    %cst_19 = arith.constant dense<0.000000e+00> : vector<16x64xf32>
    %33 = tpu.matmul %31, %32, %cst_19 {dimension_numbers = #tpu.dot_dimension_numbers<[1], [0], [0], [1], [0, 0, 1, 1], [], []>} : vector<16x64xbf16>, vector<64x64xbf16>, vector<16x64xf32> -> vector<16x64xf32>
    %c0_20 = arith.constant 0 : index
    %c0_21 = arith.constant 0 : index
    %34 = vector.load %arg11[%c0_20, %c0_21] : memref<1x64xf32, #tpu.memory_space<vmem>>, vector<1x64xf32>
    %35 = vector.broadcast %34 : vector<1x64xf32> to vector<16x64xf32>
    %36 = arith.addf %33, %35 : vector<16x64xf32>
    %c0_22 = arith.constant 0 : index
    %c0_23 = arith.constant 0 : index
    %c0_24 = arith.constant 0 : index
    %37 = vector.load %arg12[%c0_22, %c0_23, %c0_24] : memref<1x16x64xf32, #tpu.memory_space<vmem>>, vector<1x16x64xf32>
    %38 = vector.shape_cast %37 : vector<1x16x64xf32> to vector<16x64xf32>
    %39 = vector.shape_cast %36 : vector<16x64xf32> to vector<1x16x64xf32>
    tpu.vector_store %arg12[%c0_22, %c0_23, %c0_24], %39 {strides = array<i32>} : memref<1x16x64xf32, #tpu.memory_space<vmem>>, vector<1x16x64xf32>,
    return
  }
  func.func @transform_0(%arg0: i32, %arg1: i32) -> (i32, i32, i32) {
    %c0_i32 = arith.constant 0 : i32
    %c0_i32_0 = arith.constant 0 : i32
    return %arg0, %arg1, %c0_i32 : i32, i32, i32
  }
  func.func @transform_1(%arg0: i32, %arg1: i32) -> (i32, i32, i32) {
    %c0_i32 = arith.constant 0 : i32
    %c0_i32_0 = arith.constant 0 : i32
    %c0_i32_1 = arith.constant 0 : i32
    return %arg0, %c0_i32, %c0_i32_0 : i32, i32, i32
  }
  func.func @transform_2(%arg0: i32, %arg1: i32) -> (i32, i32) {
    %c0_i32 = arith.constant 0 : i32
    %c0_i32_0 = arith.constant 0 : i32
    %c0_i32_1 = arith.constant 0 : i32
    return %c0_i32, %c0_i32_0 : i32, i32
  }
  func.func @transform_3(%arg0: i32, %arg1: i32) -> (i32, i32) {
    %c0_i32 = arith.constant 0 : i32
    %c0_i32_0 = arith.constant 0 : i32
    %c0_i32_1 = arith.constant 0 : i32
    return %c0_i32, %c0_i32_0 : i32, i32
  }
  func.func @transform_4(%arg0: i32, %arg1: i32) -> (i32, i32) {
    %c0_i32 = arith.constant 0 : i32
    %c0_i32_0 = arith.constant 0 : i32
    %c0_i32_1 = arith.constant 0 : i32
    return %c0_i32, %c0_i32_0 : i32, i32
  }
  func.func @transform_5(%arg0: i32, %arg1: i32) -> (i32, i32) {
    %c0_i32 = arith.constant 0 : i32
    %c0_i32_0 = arith.constant 0 : i32
    %c0_i32_1 = arith.constant 0 : i32
    return %c0_i32, %c0_i32_0 : i32, i32
  }
  func.func @transform_6(%arg0: i32, %arg1: i32) -> (i32, i32) {
    %c0_i32 = arith.constant 0 : i32
    %c0_i32_0 = arith.constant 0 : i32
    %c0_i32_1 = arith.constant 0 : i32
    return %c0_i32, %c0_i32_0 : i32, i32
  }
  func.func @transform_7(%arg0: i32, %arg1: i32) -> (i32, i32) {
    %c0_i32 = arith.constant 0 : i32
    %c0_i32_0 = arith.constant 0 : i32
    %c0_i32_1 = arith.constant 0 : i32
    return %c0_i32, %c0_i32_0 : i32, i32
  }
  func.func @transform_8(%arg0: i32, %arg1: i32) -> (i32, i32) {
    %c0_i32 = arith.constant 0 : i32
    %c0_i32_0 = arith.constant 0 : i32
    %c0_i32_1 = arith.constant 0 : i32
    return %c0_i32, %c0_i32_0 : i32, i32
  }
  func.func @transform_9(%arg0: i32, %arg1: i32) -> (i32, i32) {
    %c0_i32 = arith.constant 0 : i32
    %c0_i32_0 = arith.constant 0 : i32
    %c0_i32_1 = arith.constant 0 : i32
    return %c0_i32, %c0_i32_0 : i32, i32
  }
  func.func @transform_10(%arg0: i32, %arg1: i32) -> (i32, i32, i32) {
    %c0_i32 = arith.constant 0 : i32
    %c0_i32_0 = arith.constant 0 : i32
    return %arg0, %arg1, %c0_i32 : i32, i32, i32
  }
}

</mosaic_0001>

<bundles_post_ra>
// kernel: tpu_custom_call.1
= control target key start
LH: loop header
LB: loop body
LE: loop exit
PB: predicated region body
PF: predicated region fallthrough
CT: control target
= control target key end

     0   :  { %s4809_s0 = inlined_call_operand.hbm [shape: f32[2,16,64], index: 0, kind: input, shape index: {}]   ;;  %s4810_s1 = inlined_call_operand.hbm [shape: f32[2,8,64], index: 1, kind: input, shape index: {}]   ;;  %s4811_s2 = inlined_call_operand.hbm [shape: bf16[64,64], index: 2, kind: input, shape index: {}]   ;;  %s4812_s3 = inlined_call_operand.vmem [shape: f32[1,64], index: 3, kind: input, shape index: {}]   ;;  %s4813_s4 = inlined_call_operand.hbm [shape: bf16[64,64], index: 4, kind: input, shape index: {}]   ;;  %s4814_s5 = inlined_call_operand.vmem [shape: f32[1,64], index: 5, kind: input, shape index: {}]   ;;  %s4815_s6 = inlined_call_operand.hbm [shape: bf16[64,64], index: 6, kind: input, shape index: {}]   ;;  %s4816_s7 = inlined_call_operand.vmem [shape: f32[1,64], index: 7, kind: input, shape index: {}]   ;;  %s4817_s8 = inlined_call_operand.hbm [shape: bf16[64,64], index: 8, kind: input, shape index: {}]   ;;  %s4818_s9 = inlined_call_operand.vmem [shape: f32[1,64], index: 9, kind: input, shape index: {}]   ;;  %s4819_s10 = inlined_call_operand.hbm [shape: f32[2,16,64], index: 10, kind: output, shape index: {}]  }
   0x1   :  { %4827 = sst [smem:[#allocation25_spill]] %s4809_s0 }
   0x2   :  { %4828 = sst [smem:[#allocation26_spill]] %s4811_s2 }
   0x3   :  { %4829 = sst [smem:[#allocation27_spill]] %s4813_s4 }
   0x4   :  { %4830 = sst [smem:[#allocation28_spill]] %s4815_s6 }
   0x5   :  { %4831 = sst [smem:[#allocation29_spill]] %s4816_s7 }
   0x6   :  { %4832 = sst [smem:[#allocation30_spill]] %s4818_s9 }
   0x7   :  { %4833 = sst [smem:[#allocation31_spill]] %s4819_s10 }
   0x8   :  { %15 = vsyncpa [#allocation5], 0 }
   0x9   :  { %17 = vsyncpa [#allocation5 + $0x1], 0 }
   0xa   :  { %18 = vsyncpa [#allocation8], 0 }
   0xb   :  { %20 = vsyncpa [#allocation8 + $0x1], 0 }
   0xc   :  { %21 = vsyncpa [#allocation11], 0 }
   0xd   :  { %22 = vsyncpa [#allocation14], 0 }
   0xe   :  { %23 = vsyncpa [#allocation6], 0 }
   0xf   :  { %25 = vsyncpa [#allocation6 + $0x1], 0  ;;  %s3971_s13 = smov 0   ;;  %s3973_s14 = smov 0  }
  0x10   :  { %s3975_s15 = smov 0   ;;  %s3977_s16 = smov 0  }
  0x11   :  { %s3979_s17 = smov 0   ;;  %s3981_s18 = smov 0  }
  0x12 LB: > { %4834 = sst [smem:[#allocation22_spill]] %s3863_s13  ;;  %s4002_s19 = sadd.s32 4294967295, %s3883_s18   ;;  %s3883_s18 = sphi %s3981_s18, %s31_s18   ;;  %s3879_s17 = sphi %s3979_s17, %s4871_s17   ;;  %s3875_s16 = sphi %s3977_s16, %s4870_s16   ;;  %s3871_s15 = sphi %s3975_s15, %s4869_s15   ;;  %s3867_s14 = sphi %s3973_s14, %s4868_s14   ;;  %s3863_s13 = sphi %s3971_s13, %s4867_s13  }
  0x13   : > { %4835 = sst [smem:[#allocation23_spill]] %s3875_s16  ;;  %s3130_s20 = sadd.s32 4294967294, %s3883_s18  }
  0x14   : > { %p65_p0 = scmp.ne.s32.totalorder %s3867_s14, %s3863_s13  ;;  %p4822_p1 = scmp.eq.s32.totalorder %s4002_s19, 0 }
  0x15   : > { %p291_p3 = scmp.eq.s32.totalorder %s3130_s20, 1  ;;  %p3131_p5 = scmp.ge.s32.totalorder %s3883_s18, 1 }
  0x16   : > { %p4011_p4 = por %p4822_p1, %p65_p0  ;;  %p298_p7 = scmp.lt.s32.totalorder %s3883_s18, 3 }
  0x17   : > { %p4016_p6 = por %p291_p3, %p65_p0  ;;  %s3885_s24 = smov [#allocation9]  }
  0x18   : > { %s4836_s21 = scalar_select %p4011_p4, 1, 0 }
  0x19   : > { %s4837_s22 = scalar_select %p4016_p6, 1, 0 }
  0x1a   : > { %p4021_p8 = pnand %p3131_p5, %p298_p7  ;;  %s310_s25 = sshll.u32 %s3885_s24, 4  ;;  %s4025_s25 = int_to_ptr.vmem [resolvable:$true] %s310_s25 }
  0x1b   : > { %4838 = sst [smem:[#allocation24_spill]] %s4837_s22  ;;  %s3886_s27 = smov [#allocation10]  }
  0x1c   : > { %s4839_s23 = scalar_select %p4021_p8, 1, 0 }
  0x1d   : > { %p3423_p9 = pneg %p4021_p8  ;;  %s326_s28 = sshll.u32 %s3886_s27, 4  ;;  %s4036_s28 = int_to_ptr.vmem [resolvable:$true] %s326_s28 }
  0x1e   : > { %s3887_s29 = smov [#allocation12]   ;;  %s4841_s2 = sld [smem:[#allocation26_spill]] }
  0x1f   : > { %p4032_p11 = pnand %p3423_p9, %p4822_p1  ;;  %s4038_s30 = sshll.u32 %s3887_s29, 4  ;;  %s343_s30 = int_to_ptr.vmem [resolvable:$true] %s4038_s30 }
  0x21   : > { %p4048_p13 = pneg %p4032_p11 }
  0x24   : > { %s3613_s20 = scalar_lea.hbm %s4841_s2, 512 }
  0x25   : > { %p3614_p12 = scmp.ne.s32.totalorder %s4841_s2, %s3613_s20  ;;  %p3620_p5 = scmp.lt.u32.totalorder %s3613_s20, %s4841_s2 }
  0x27   : > { %p3616_p0 = pnand %p4048_p13, %p3614_p12 }
  0x29   : > { %p3617_p3 = pneg %p3616_p0 }
  0x2b   : > { %p3622_p7 = pnand %p3620_p5, %p3617_p3 }
  0x2d   : > { %3625 = shalt.err (!%p3622_p7)
}
  0x2e   : > { %s3626_s22 = scalar_lea.vmem %s4025_s25, 512  ;;  %p3634_p2 = scmp.lt.s32.totalorder %s4025_s25, %s4025_s25 }
  0x2f   : > { %p3627_p9 = scmp.ne.s32.totalorder %s4025_s25, %s3626_s22  ;;  %p3635_p6 = scmp.lt.s32.totalorder %s3626_s22, %s3626_s22 }
  0x31   : > { %p3629_p10 = pnand %p3627_p9, %p4048_p13  ;;  %p3636_p12 = por %p3635_p6, %p3634_p2 }
  0x33   : > { %p3630_p1 = pneg %p3629_p10 }
  0x35   : > { %p3637_p0 = pnand %p3636_p12, %p3630_p1 }
  0x37   : > { %3640 = shalt.err (!%p3637_p0)
}
  0x38   : > { %s3888_s11 = smov 64   ;;  %s3889_s12 = smov 4  }
  0x39   : > { %3426 = dma.hbm_to_vmem [thread:$0]  (!%p4032_p11), %s4841_s2, 512, %s4025_s25, [#allocation8], %s3888_s11, %s3888_s11, %s3889_s12  }
  0x3a   : > { %s4843_s4 = sld [smem:[#allocation27_spill]] }
  0x40   : > { %s3641_s22 = scalar_lea.hbm %s4843_s4, 512 }
  0x41   : > { %p3642_p1 = scmp.ne.s32.totalorder %s4843_s4, %s3641_s22  ;;  %p3648_p10 = scmp.lt.u32.totalorder %s3641_s22, %s4843_s4 }
  0x43   : > { %p3644_p2 = pnand %p3642_p1, %p4048_p13 }
  0x45   : > { %p3645_p6 = pneg %p3644_p2 }
  0x47   : > { %p3650_p3 = pnand %p3648_p10, %p3645_p6 }
  0x49   : > { %3653 = shalt.err (!%p3650_p3)
}
  0x4a   : > { %s3654_s25 = scalar_lea.vmem %s4036_s28, 512  ;;  %p3662_p12 = scmp.lt.s32.totalorder %s4036_s28, %s4036_s28 }
  0x4b   : > { %p3655_p5 = scmp.ne.s32.totalorder %s4036_s28, %s3654_s25  ;;  %p3663_p0 = scmp.lt.s32.totalorder %s3654_s25, %s3654_s25 }
  0x4d   : > { %p3657_p7 = pnand %p3655_p5, %p4048_p13  ;;  %p3664_p1 = por %p3663_p0, %p3662_p12 }
  0x4f   : > { %p3658_p9 = pneg %p3657_p7 }
  0x51   : > { %p3665_p2 = pnand %p3664_p1, %p3658_p9 }
  0x53   : > { %3668 = shalt.err (!%p3665_p2)
}
  0x54   : > { %3429 = dma.hbm_to_vmem [thread:$0]  (!%p4032_p11), %s4843_s4, 512, %s4036_s28, [#allocation11], %s3888_s11, %s3888_s11, %s3889_s12  }
  0x55   : > { %s4844_s6 = sld [smem:[#allocation28_spill]] }
  0x5b   : > { %s3669_s20 = scalar_lea.hbm %s4844_s6, 512 }
  0x5c   : > { %p3670_p6 = scmp.ne.s32.totalorder %s4844_s6, %s3669_s20  ;;  %p3676_p5 = scmp.lt.u32.totalorder %s3669_s20, %s4844_s6 }
  0x5e   : > { %p3672_p10 = pnand %p3670_p6, %p4048_p13 }
  0x60   : > { %p3673_p3 = pneg %p3672_p10 }
  0x62   : > { %p3678_p7 = pnand %p3676_p5, %p3673_p3 }
  0x64   : > { %3681 = shalt.err (!%p3678_p7)
}
  0x65   : > { %s3682_s25 = scalar_lea.vmem %s343_s30, 512  ;;  %p3690_p1 = scmp.lt.s32.totalorder %s343_s30, %s343_s30 }
  0x66   : > { %p3683_p9 = scmp.ne.s32.totalorder %s343_s30, %s3682_s25  ;;  %p3691_p2 = scmp.lt.s32.totalorder %s3682_s25, %s3682_s25 }
  0x68   : > { %p3685_p12 = pnand %p3683_p9, %p4048_p13  ;;  %p3692_p4 = por %p3691_p2, %p3690_p1 }
  0x6a   : > { %p3686_p0 = pneg %p3685_p12 }
  0x6c   : > { %p3693_p8 = pnand %p3692_p4, %p3686_p0 }
  0x6e   : > { %3696 = shalt.err (!%p3693_p8)
}
  0x6f   : > { %3432 = dma.hbm_to_vmem [thread:$0]  (!%p4032_p11), %s4844_s6, 512, %s343_s30, [#allocation11], %s3888_s11, %s3888_s11, %s3889_s12  }
  0x70   : > { %s3890_s9 = smov [#allocation13]   ;;  %s3697_s24 = scalar_lea.hbm %s4817_s8, 512 }
  0x71   : > { %s358_s10 = sshll.u32 %s3890_s9, 4  ;;  %p3698_p4 = scmp.ne.s32.totalorder %s4817_s8, %s3697_s24  ;;  %s359_s10 = int_to_ptr.vmem [resolvable:$true] %s358_s10 }
  0x72   : > { %p3704_p10 = scmp.lt.u32.totalorder %s3697_s24, %s4817_s8 }
  0x73   : > { %p3700_p8 = pnand %p3698_p4, %p4048_p13 }
  0x75   : > { %p3701_p6 = pneg %p3700_p8 }
  0x77   : > { %p3706_p3 = pnand %p3704_p10, %p3701_p6 }
  0x79   : > { %3709 = shalt.err (!%p3706_p3)
}
  0x7a   : > { %s3710_s30 = scalar_lea.vmem %s359_s10, 512  ;;  %p3718_p12 = scmp.lt.s32.totalorder %s359_s10, %s359_s10 }
  0x7b   : > { %p3711_p5 = scmp.ne.s32.totalorder %s359_s10, %s3710_s30  ;;  %p3719_p0 = scmp.lt.s32.totalorder %s3710_s30, %s3710_s30 }
  0x7d   : > { %p3713_p7 = pnand %p3711_p5, %p4048_p13  ;;  %p3720_p1 = por %p3719_p0, %p3718_p12 }
  0x7f   : > { %p3714_p9 = pneg %p3713_p7 }
  0x81   : > { %p3721_p2 = pnand %p3720_p1, %p3714_p9 }
  0x83   : > { %3724 = shalt.err (!%p3721_p2)
}
  0x84   : > { %3435 = dma.hbm_to_vmem [thread:$0]  (!%p4032_p11), %s4817_s8, 512, %s359_s10, [#allocation14], %s3888_s11, %s3888_s11, %s3889_s12  }
  0x85   : > { %s43_s13 = sadd.s32 1, %s3879_s17  ;;  %s52_s26 = sadd.s32 1, %s3871_s15 }
  0x86   : > { %p45_p13 = scmp.ge.s32.totalorder %s43_s13, 2  ;;  %p59_p4 = scmp.ne.s32.totalorder %s3871_s15, %s3867_s14 }
  0x87   : > { %p60_p8 = scmp.eq.s32.totalorder %s3883_s18, 0  ;;  %p3451_p6 = scmp.lt.s32.totalorder %s3883_s18, 2 }
  0x88   : > { %s4873_s13 = smov (%p45_p13, %s43_s13), 0  ;;  %p4845_p3 = scmp.eq.s32.totalorder %s4002_s19, 1 }
  0x89   : > { %p61_p10 = por %p60_p8, %p59_p4  ;;  %s47_s16 = ssub.s32 %s3879_s17, %s4873_s13 }
  0x8a   : > { %p4151_p5 = por %p4845_p3, %p59_p4  ;;  %s4158_s20 = sand.u32 1, %s3871_s15  }
  0x8b   : > { %p50_p11 = scmp.eq.s32.totalorder %s47_s16, 0  ;;  %s3137_s11 = sshll.u32 %s4158_s20, 4 }
  0x8c   : > { %s4846_s9 = scalar_select %p4151_p5, 1, 0 }
  0x8d   : > { %s3203_s12 = sshll.u32 %s3879_s17, 8  ;;  %s4847_s0 = sld [smem:[#allocation25_spill]] }
  0x8e   : > { %s4163_s10 = scalar_select %p50_p11, %s3871_s15, %s52_s26  }
  0x8f   : > { %s379_s22 = scalar_lea.vmem [#allocation4], %s3137_s11  ;;  %p4172_p7 = pnand %p3451_p6, %p61_p10 }
  0x90   : > { %s388_s25 = sshll.u32 %s379_s22, 4  ;;  %s376_s28 = scalar_lea.sflag [#allocation5], %s4158_s20  ;;  %s4176_s25 = int_to_ptr.vmem [resolvable:$true] %s388_s25 }
  0x91   : > { %p3727_p12 = pneg %p4172_p7 }
  0x93   : > { %s4168_s29 = scalar_lea.hbm %s4847_s0, %s3203_s12  ;;  %s3730_s11 = scalar_lea.hbm %s4847_s0, 512 }
  0x94   : > { %s3725_s7 = scalar_lea.hbm %s4168_s29, 256  ;;  %p3731_p2 = scmp.lt.u32.totalorder %s4168_s29, %s4847_s0 }
  0x95   : > { %p3726_p9 = scmp.ne.s32.totalorder %s4168_s29, %s3725_s7  ;;  %p3732_p13 = scmp.lt.u32.totalorder %s3730_s11, %s3725_s7 }
  0x96   : > { %p3734_p8 = scmp.lt.u32.totalorder %s3725_s7, %s4168_s29 }
  0x97   : > { %p3728_p0 = pnand %p3727_p12, %p3726_p9  ;;  %p3733_p4 = por %p3732_p13, %p3731_p2 }
  0x99   : > { %p3729_p1 = pneg %p3728_p0  ;;  %p3735_p6 = por %p3734_p8, %p3733_p4 }
  0x9b   : > { %p3736_p10 = pnand %p3735_p6, %p3729_p1 }
  0x9d   : > { %3739 = shalt.err (!%p3736_p10)
}
  0x9e   : > { %s3740_s27 = scalar_lea.vmem %s4176_s25, 256  ;;  %s3891_s22 = smov [#allocation4]  }
  0x9f   : > { %p3741_p3 = scmp.ne.s32.totalorder %s4176_s25, %s3740_s27  ;;  %s3745_s26 = sshll.u32 %s3891_s22, 4  ;;  %s3746_s26 = int_to_ptr.vmem [resolvable:$false] %s3745_s26 }
  0xa0   : > { %s3747_s16 = scalar_lea.vmem %s3746_s26, 512  ;;  %p3748_p0 = scmp.lt.s32.totalorder %s4176_s25, %s3746_s26 }
  0xa1   : > { %p3743_p11 = pnand %p3741_p3, %p3727_p12  ;;  %p3749_p2 = scmp.lt.s32.totalorder %s3747_s16, %s3740_s27 }
  0xa3   : > { %p3744_p9 = pneg %p3743_p11  ;;  %p3750_p13 = por %p3749_p2, %p3748_p0 }
  0xa5   : > { %p3751_p4 = pnand %p3750_p13, %p3744_p9 }
  0xa7   : > { %3754 = shalt.err (!%p3751_p4)
}
  0xa8   : > { %s3892_s7 = smov 128   ;;  %s3893_s11 = smov 8  }
  0xa9   : > { %3439 = dma.hbm_to_vmem [thread:$0]  (!%p4172_p7), %s4168_s29, 256, %s4176_s25, %s376_s28, %s3892_s7, %s3892_s7, %s3893_s11  }
  0xaa   : > { %s398_s12 = sand.u32 1, %s3883_s18   ;;  %s3140_s24 = sshll.u32 %s4158_s20, 3 }
  0xab   : > { %s3141_s22 = sshll.u32 %s3879_s17, 7  ;;  %s402_s27 = scalar_lea.vmem [#allocation7], %s3140_s24 }
  0xac   : > { %s409_s26 = sshll.u32 %s402_s27, 4  ;;  %s4212_s2 = scalar_lea.hbm %s4810_s1, %s3141_s22  ;;  %s410_s26 = int_to_ptr.vmem [resolvable:$true] %s409_s26 }
  0xad   : > { %s399_s4 = scalar_lea.sflag [#allocation8], %s398_s12  ;;  %s3755_s6 = scalar_lea.hbm %s4212_s2, 128 }
  0xae   : > { %p3756_p1 = scmp.ne.s32.totalorder %s4212_s2, %s3755_s6  ;;  %s3760_s25 = scalar_lea.hbm %s4810_s1, 256 }
  0xaf   : > { %p3761_p10 = scmp.lt.u32.totalorder %s4212_s2, %s4810_s1  ;;  %p3762_p3 = scmp.lt.u32.totalorder %s3760_s25, %s3755_s6 }
  0xb0   : > { %p3758_p8 = pnand %p3756_p1, %p3727_p12  ;;  %p3764_p9 = scmp.lt.u32.totalorder %s3755_s6, %s4212_s2 }
  0xb1   : > { %p3763_p11 = por %p3762_p3, %p3761_p10 }
  0xb2   : > { %p3759_p6 = pneg %p3758_p8 }
  0xb3   : > { %p3765_p0 = por %p3764_p9, %p3763_p11 }
  0xb5   : > { %p3766_p2 = pnand %p3765_p0, %p3759_p6 }
  0xb7   : > { %3769 = shalt.err (!%p3766_p2)
}
  0xb8   : > { %s3770_s7 = scalar_lea.vmem %s410_s26, 128  ;;  %s3894_s11 = smov [#allocation7]  }
  0xb9   : > { %p3771_p13 = scmp.ne.s32.totalorder %s410_s26, %s3770_s7  ;;  %s3775_s12 = sshll.u32 %s3894_s11, 4  ;;  %s3776_s12 = int_to_ptr.vmem [resolvable:$false] %s3775_s12 }
  0xba   : > { %s3777_s24 = scalar_lea.vmem %s3776_s12, 256  ;;  %p3778_p8 = scmp.lt.s32.totalorder %s410_s26, %s3776_s12 }
  0xbb   : > { %p3773_p4 = pnand %p3771_p13, %p3727_p12  ;;  %p3779_p5 = scmp.lt.s32.totalorder %s3777_s24, %s3770_s7 }
  0xbd   : > { %p3774_p1 = pneg %p3773_p4  ;;  %p3780_p3 = por %p3779_p5, %p3778_p8 }
  0xbf   : > { %p3781_p10 = pnand %p3780_p3, %p3774_p1 }
  0xc1   : > { %3784 = shalt.err (!%p3781_p10)
}
  0xc2   : > { %3442 = dma.hbm_to_vmem [thread:$0]  (!%p4172_p7), %s4212_s2, 128, %s410_s26, %s399_s4  }
  0xc3   : > { %p4849_p6 = scmp.ne.s32.totalorder %s4839_s23, 0 }
  0xc4   : > { %s4236_s6 = sand.u32 (!%p4849_p6), 1, %s3867_s14   ;;  %p4850_p5 = scmp.ne.s32.totalorder (!%p4849_p6), %s4836_s21, 0 }
  0xc5   : > { %418 = sbr.rel (%p4849_p6) target bundleno = 1839 (0x72f), region = 60  ;;  %s3143_s22 = sshll.u32 (!%p4849_p6), %s4236_s6, 4 }
  0xc6   : > { %s421_s27 = scalar_lea.sflag (!%p4849_p6), [#allocation5], %s4236_s6  ;;  %s4242_s16 = scalar_lea.vmem (!%p4849_p6), [#allocation4], %s3143_s22 }
  0xcc   : > { %3838 = dma.done.wait (%p4850_p5), %s421_s27, 256  }
  0xcd   : > { %3840 = vsyncadd (%p4850_p5), %s421_s27, 4294967040  ;;  %s429_s2 = sand.u32 1, %s4002_s19   ;;  %s3144_s4 = sshll.u32 %s4236_s6, 3 }
  0xce   : > { %s430_s23 = scalar_lea.sflag [#allocation8], %s429_s2  ;;  %s433_s30 = scalar_lea.vmem [#allocation7], %s3144_s4 }
  0xcf   : > { %3842 = dma.done.wait (%p4850_p5), %s430_s23, 128  }
  0xd0   : > { %3844 = vsyncadd (%p4850_p5), %s430_s23, 4294967168  ;;  %p4851_p7 = scmp.eq.s32.totalorder %s4002_s19, 0 }
  0xd2   : > { %3846 = dma.done.wait (%p4851_p7), [#allocation8], 512   ;;  %p4852_p12 = pmov %p4851_p7 }
  0xd3   : > { %p4853_p11 = pmov %p4851_p7 }
  0xd4   : > { %3848 = vsyncadd (%p4852_p12), [#allocation8], 4294966784 }
  0xd5   : > { %3850 = dma.done.wait (%p4853_p11), [#allocation11], 1024   ;;  %p4854_p9 = pmov %p4851_p7 }
  0xd6   : > { %p4855_p0 = pmov %p4851_p7 }
  0xd7   : > { %3852 = vsyncadd (%p4854_p9), [#allocation11], 4294966272 }
  0xd8   : > { %3854 = dma.done.wait (%p4855_p0), [#allocation14], 512   ;;  %p4856_p2 = pmov %p4855_p0 }
  0xd9   : > { %v3895_v0 = vmov 0.0   ;;  %vm3896_vm0 = vmmov 0   ;;  %v3533_v1 = vld [vmem:[#allocation10] sm:$0xff]   ;;  %v3534_v2 = vld [vmem:[#allocation10 + $0x8] sm:$0xff]   ;;  %v3535_v3 = vld [vmem:[#allocation10 + $0x10] sm:$0xff]   ;;  %vm539_vm1 = vcmask 523264   ;;  %v689_v35 = vlaneseq }
  0xda   : > { %3856 = vsyncadd (%p4856_p2), [#allocation14], 4294966784  ;;  %3257 = vmatprep.subr.bf16.mxu0 %v3895_v0  ;;  %3265 = vmatprep.mubr.msk.bf16.mxu0 %vm3896_vm0, %v3895_v0  ;;  %v3536_v4 = vld [vmem:[#allocation10 + $0x18] sm:$0xff]   ;;  %v3537_v7 = vld [vmem:[#allocation9] sm:$0xff]   ;;  %s3897_s26 = smov 104   ;;  %s3898_s20 = smov 120  }
  0xdb   : > { %3269 = vmatprep.subr.bf16.mxu1 %v3895_v0  ;;  %3277 = vmatprep.mubr.msk.bf16.mxu1 %vm3896_vm0, %v3895_v0  ;;  %v498_v5 = vld [vmem:[%s433_s30] sm:$0xff]  ;;  %v3538_v8 = vld [vmem:[#allocation9 + $0x8] sm:$0xff]   ;;  %s3899_s29 = smov 96   ;;  %s3900_s25 = smov 112   ;;  %v3541_v24 = vld [vmem:[#allocation12] sm:$0xff]   ;;  %v690_v39 = vshrl.u32 %v689_v35, 7 }
  0xdc   : > { %3258 = vmatpush3.bf16.msra.mxu0 %v3533_v1  ;;  %v4275_v6 = vpack.c.bf16 %v498_v5, %v498_v5  ;;  %v3539_v9 = vld [vmem:[#allocation9 + $0x10] sm:$0xff]   ;;  %v3540_v10 = vld [vmem:[#allocation9 + $0x18] sm:$0xff]   ;;  %s3901_s28 = smov 80   ;;  %s3902_s0 = smov 88   ;;  %3270 = vmatpush3.bf16.msra.mxu1 %v3541_v24  ;;  %v3542_v30 = vld [vmem:[#allocation12 + $0x8] sm:$0xff]   ;;  %v3906_v62 = vmov 0  }
  0xdd   : > { %3259 = vmatprep.subr.bf16.mxu0 %v3895_v0  ;;  %v1125_v11 = vld [vmem:[%s4242_s16] sm:$0xff]  ;;  %v1126_v12 = vld [vmem:[%s4242_s16 + $0x8] sm:$0xff]  ;;  %s3903_s12 = smov 72   ;;  %3271 = vmatprep.subr.bf16.mxu1 %v3895_v0  ;;  %v3904_v33 = vmov 1983009808   ;;  %vm885_vm2 = vcmask 60416  }
  0xde   : > { %v1127_v13 = vpack.c.bf16 %v1126_v12, %v1125_v11  ;;  %v3150_v14 = vld [vmem:[%s4814_s5] ss:$0 sm:$0xff]  ;;  %v3544_v32 = vld [vmem:[#allocation12 + $0x18] sm:$0xff]   ;;  %v687_v34 = vunpack.c.l.s4 %v3904_v33  ;;  %v3905_v40 = vmov 1934713408   ;;  %vm1564_vm3 = vcmask 64512  }
  0xdf   : > { %v3162_v21 = vld [vmem:[%s4812_s3] ss:$0 sm:$0xff]  ;;  %v704_v41 = vunpack.c.l.s4 %v3905_v40  ;;  %s4857_s16 = sld [smem:[#allocation29_spill]]  ;;  %vm2136_vm4 = vcmask 1043456   ;;  %s3907_s2 = smov 16   ;;  %vm2863_vm5 = vcmask 130048  }
  0xe0   : > { %3260 = vmatpush3.bf16.msra.mxu0 %v3534_v2  ;;  %3272 = vmatpush3.bf16.msra.mxu1 %v3542_v30  ;;  %v3543_v31 = vld [vmem:[#allocation12 + $0x10] sm:$0xff]   ;;  %v688_v38 = vunpack.c.0.s8 %v687_v34  ;;  %s3908_s4 = smov 8   ;;  %s3909_s23 = smov 24   ;;  %vm2866_vm6 = vcmask 195584   ;;  %vm2869_vm7 = vcmask 261120   ;;  %vm2872_vm8 = vcmask 326656  }
  0xe1   : > { %3261 = vmatprep.subr.bf16.mxu0 %v3895_v0  ;;  %3273 = vmatprep.subr.bf16.mxu1 %v3895_v0  ;;  %v705_v46 = vunpack.c.0.s8 %v704_v41  ;;  %s3910_s30 = smov 32   ;;  %s3911_s19 = smov 40   ;;  %vm2875_vm9 = vcmask 392192   ;;  %vm2878_vm10 = vcmask 457728  }
  0xe2   : > { %v4337_v44 = vsub.s32 %v688_v38, %v690_v39  ;;  %s3912_s21 = smov 48   ;;  %s4860_s27 = sld [smem:[#allocation31_spill]] }
  0xe3   : > { %v4341_v51 = vsub.s32 %v705_v46, %v690_v39  ;;  %p4861_p4 = scmp.ne.s32.totalorder %s4846_s9, 0 }
  0xe4   : > { %3262 = vmatpush3.bf16.msra.mxu0 %v3535_v3  ;;  %3274 = vmatpush3.bf16.msra.mxu1 %v3543_v31 }
  0xe5   : > { %3263 = vmatprep.subr.bf16.mxu0 %v3895_v0  ;;  %3275 = vmatprep.subr.bf16.mxu1 %v3895_v0 }
  0xe8   : > { %3264 = vmatpush3.bf16.msra.mxu0 %v3536_v4  ;;  %3276 = vmatpush3.bf16.msra.mxu1 %v3544_v32 }
  0xe9   : > { %3281 = vmatprep.subr.bf16.mxu0 %v3895_v0  ;;  %3293 = vmatprep.subr.bf16.mxu1 %v3895_v0 }
  0xeb   : > { %3266 = vmatmul.mubr.msk.bf16.vlgmr.msra.gmra.mrb[0].mxu0 %vm539_vm1, %v4275_v6  ;;  %3278 = vmatmul.mubr.msk.bf16.vlgmr.msra.gmra.mrb[0].mxu1 %vm539_vm1, %v4275_v6 }
  0xec   : > { %3282 = vmatpush3.bf16.msra.mxu0 %v3537_v7  ;;  %3289 = vmatprep.mubr.msk.bf16.mxu0 %vm3896_vm0, %v3895_v0 }
  0xed   : > { %3283 = vmatprep.subr.bf16.mxu0 %v3895_v0  ;;  %3295 = vmatprep.mubr.msk.bf16.mxu1 %vm3896_vm0, %v3895_v0 }
  0xf0   : > { %3284 = vmatpush3.bf16.msra.mxu0 %v3538_v8 }
  0xf1   : > { %3285 = vmatprep.subr.bf16.mxu0 %v3895_v0 }
  0xf4   : > { %3286 = vmatpush3.bf16.msra.mxu0 %v3539_v9 }
  0xf5   : > { %3287 = vmatprep.subr.bf16.mxu0 %v3895_v0 }
  0xf8   : > { %3288 = vmatpush3.bf16.msra.mxu0 %v3540_v10 }
  0xf9   : > { %3317 = vmatprep.subr.bf16.mxu0 %v3895_v0 }
  0xfb   : > { %3290 = vmatmul.mubr.msk.bf16.vlgmr.msra.gmra.mrb[4].mxu0 %vm539_vm1, %v1127_v13 }
  0xfc   : > { %3319 = vmatprep.mubr.msk.bf16.mxu0 %vm3896_vm0, %v3895_v0 }
 0x1be   : > { %v577_v15 = vpop.f32.mrb[0].mxu0 }
 0x1bf   : > { %v578_v16 = vadd.f32 %v3150_v14, %v577_v15  ;;  %v3267_v17 = vpop.f32.mrb[1].mxu0 }
 0x1c0   : > { %v580_v18 = vpop.f32.mrb[2].mxu0 }
 0x1c1   : > { %v4294_v19 = vpack.c.bf16 %v578_v16, %v578_v16  ;;  %v3268_v20 = vpop.f32.mrb[3].mxu0 }
 0x1c3   : > { %670 = vrot.lane.b32.xlu1 %v4294_v19, %s3897_s26  ;;  %664 = vrot.lane.b32.xlu0 %v4294_v19, %s3898_s20 }
 0x1c7   : > { %673 = vrot.lane.b32.xlu1 %v4294_v19, %s3899_s29  ;;  %667 = vrot.lane.b32.xlu0 %v4294_v19, %s3900_s25 }
 0x1cb   : > { %679 = vrot.lane.b32.xlu1 %v4294_v19, %s3901_s28  ;;  %676 = vrot.lane.b32.xlu0 %v4294_v19, %s3902_s0 }
 0x1ce   : > { %v1205_v22 = vpop.f32.mrb[4].mxu0 }
 0x1cf   : > { %682 = vrot.lane.b32.xlu0 %v4294_v19, %s3903_s12  ;;  %v3291_v23 = vpop.f32.mrb[5].mxu0  ;;  %v1206_v26 = vadd.f32 %v3162_v21, %v1205_v22 }
 0x1d0   : > { %v1208_v25 = vpop.f32.mrb[6].mxu0 }
 0x1d1   : > { %v1209_v27 = vadd.f32 %v3162_v21, %v1208_v25  ;;  %v3292_v28 = vpop.f32.mrb[7].mxu0 }
 0x1d3   : > { %v4314_v29 = vpack.c.bf16 %v1209_v27, %v1206_v26 }
 0x1d5   : > { %1216 = vrot.lane.b32.xlu0 %v4314_v29, %s3900_s25  ;;  %1214 = vrot.lane.b32.xlu1 %v4314_v29, %s3898_s20  ;;  %v1232_v11 = vshrl.u32 %v4314_v29, 16 }
 0x1d9   : > { %1220 = vrot.lane.b32.xlu0 %v4314_v29, %s3899_s29  ;;  %1218 = vrot.lane.b32.xlu1 %v4314_v29, %s3897_s26 }
 0x1dd   : > { %1224 = vrot.lane.b32.xlu0 %v4314_v29, %s3901_s28  ;;  %1222 = vrot.lane.b32.xlu1 %v4314_v29, %s3902_s0 }
 0x1e1   : > { %1226 = vrot.lane.b32.xlu1 %v4314_v29, %s3903_s12 }
 0x235   : > { %v671_v36 = vpop.permute.xlu1 %670  ;;  %v665_v37 = vpop.permute.xlu0 %664 }
 0x239   : > { %v674_v42 = vpop.permute.xlu1 %673  ;;  %v668_v43 = vpop.permute.xlu0 %667 }
 0x23a   : > { %v685_v45 = vcombine.low %v4294_v19, %v674_v42 }
 0x23c   : > { %v692_v50 = vrot.slane %v685_v45, %v4337_v44 }
 0x23d   : > { %v680_v47 = vpop.permute.xlu1 %679  ;;  %v677_v48 = vpop.permute.xlu0 %676 }
 0x23e   : > { %v693_v49 = vcombine.low %v668_v43, %v680_v47  ;;  %v719_v53 = vcombine.low %v665_v37, %v677_v48 }
 0x240   : > { %v700_v52 = vrot.slane %v693_v49, %v4337_v44  ;;  %v726_v61 = vrot.slane %v719_v53, %v4337_v44 }
 0x241   : > { %v683_v54 = vpop.permute.xlu0 %682 }
 0x242   : > { %v701_v55 = vcombine.low %v692_v50, %v700_v52  ;;  %v702_v56 = vcombine.high %v692_v50, %v700_v52  ;;  %v727_v57 = vcombine.low %v671_v36, %v683_v54 }
 0x244   : > { %v709_v58 = vrot.slane %v701_v55, %v4341_v51  ;;  %v716_v59 = vrot.slane %v702_v56, %v4341_v51  ;;  %v734_v60 = vrot.slane %v727_v57, %v4337_v44 }
 0x246   : > { %v717_v63 = vcombine.high %v709_v58, %v3906_v62  ;;  %v735_v1 = vcombine.low %v726_v61, %v734_v60  ;;  %v736_v2 = vcombine.high %v726_v61, %v734_v60  ;;  %v718_v5 = vcombine.high %v716_v59, %v3906_v62 }
 0x247   : > { %v1217_v3 = vpop.permute.xlu0 %1216  ;;  %v1215_v4 = vpop.permute.xlu1 %1214  ;;  %v757_v8 = vshrl.u32 %v709_v58, 16  ;;  %v773_v10 = vshrl.u32 %v716_v59, 16 }
 0x248   : > { %v743_v6 = vrot.slane %v735_v1, %v4341_v51  ;;  %v750_v7 = vrot.slane %v736_v2, %v4341_v51  ;;  %v765_v9 = vshrl.u32 %v717_v63, 16  ;;  %v781_v18 = vshrl.u32 %v718_v5, 16 }
 0x249   : > { %v1233_v21 = vshrl.u32 %v1215_v4, 16  ;;  %v1240_v30 = vshrl.u32 %v1217_v3, 16  ;;  %v1230_v33 = vpack.i.b16 %v1215_v4, %v4314_v29 }
 0x24a   : > { %v751_v12 = vcombine.high %v743_v6, %v3906_v62  ;;  %v752_v13 = vcombine.high %v750_v7, %v3906_v62  ;;  %v755_v14 = vpack.i.b16 %v743_v6, %v709_v58  ;;  %v758_v15 = vshrl.u32 %v743_v6, 16 }
 0x24b   : > { %v1221_v16 = vpop.permute.xlu0 %1220  ;;  %v1219_v17 = vpop.permute.xlu1 %1218  ;;  %v771_v19 = vpack.i.b16 %v750_v7, %v716_v59  ;;  %v774_v20 = vshrl.u32 %v750_v7, 16  ;;  %v4356_v39 = vpack.i.b16 %v1233_v21, %v1232_v11 }
 0x24c   : > { %v759_v22 = vpack.i.b16 %v758_v15, %v757_v8  ;;  %v763_v23 = vpack.i.b16 %v751_v12, %v717_v63  ;;  %v766_v24 = vshrl.u32 %v751_v12, 16  ;;  %v779_v25 = vpack.i.b16 %v752_v13, %v718_v5 }
 0x24d   : > { %v775_v26 = vpack.i.b16 %v774_v20, %v773_v10  ;;  %v782_v27 = vshrl.u32 %v752_v13, 16  ;;  %v785_v28 = vcombine.low %v755_v14, %v771_v19  ;;  %v1241_v34 = vshrl.u32 %v1219_v17, 16 }
 0x24e   : > { %v767_v31 = vpack.i.b16 %v766_v24, %v765_v9  ;;  %v793_v32 = vcombine.low %v763_v23, %v779_v25  ;;  %v1248_v40 = vshrl.u32 %v1221_v16, 16  ;;  %v1238_v47 = vpack.i.b16 %v1219_v17, %v1217_v3 }
 0x24f   : > { %v1225_v35 = vpop.permute.xlu0 %1224  ;;  %v1223_v36 = vpop.permute.xlu1 %1222  ;;  %v783_v37 = vpack.i.b16 %v782_v27, %v781_v18  ;;  %v819_v38 = vcombine.low %v759_v22, %v775_v26  ;;  %v792_v41 = vrot.slane %v785_v28, %v4337_v44  ;;  %v4360_v48 = vpack.i.b16 %v1241_v34, %v1240_v30 }
 0x250   : > { %v800_v42 = vrot.slane %v793_v32, %v4337_v44  ;;  %v1246_v43 = vpack.i.b16 %v1223_v36, %v1221_v16  ;;  %v1249_v45 = vshrl.u32 %v1223_v36, 16  ;;  %v1256_v29 = vshrl.u32 %v1225_v35, 16 }
 0x251   : > { %v827_v46 = vcombine.low %v767_v31, %v783_v37  ;;  %v826_v55 = vrot.slane %v819_v38, %v4337_v44 }
 0x252   : > { %v801_v49 = vcombine.low %v792_v41, %v800_v42  ;;  %v802_v50 = vcombine.high %v792_v41, %v800_v42  ;;  %v1250_v52 = vpack.i.b16 %v1249_v45, %v1248_v40  ;;  %v1260_v53 = vcombine.low %v1230_v33, %v1246_v43 }
 0x253   : > { %v1227_v54 = vpop.permute.xlu1 %1226  ;;  %v834_v56 = vrot.slane %v827_v46, %v4337_v44  ;;  %v1261_v57 = vcombine.high %v1230_v33, %v1246_v43 }
 0x254   : > { %v1254_v58 = vpack.i.b16 %v1227_v54, %v1225_v35  ;;  %v809_v59 = vrot.slane %v801_v49, %v4341_v51  ;;  %v816_v60 = vrot.slane %v802_v50, %v4341_v51  ;;  %v1328_v61 = vcombine.low %v4356_v39, %v1250_v52 }
 0x255   : > { %v1257_v63 = vshrl.u32 %v1227_v54, 16  ;;  %v835_v1 = vcombine.low %v826_v55, %v834_v56  ;;  %v836_v2 = vcombine.high %v826_v55, %v834_v56  ;;  %v1268_v3 = vrot.slane %v1260_v53, %v4337_v44 }
 0x256   : > { %v1275_v4 = vrot.slane %v1261_v57, %v4337_v44  ;;  %v817_v5 = vcombine.high %v809_v59, %v3906_v62  ;;  %v818_v6 = vcombine.high %v816_v60, %v3906_v62  ;;  %v857_v7 = vshrl.u32 %v809_v59, 16 }
 0x257   : > { %v1329_v8 = vcombine.high %v4356_v39, %v1250_v52  ;;  %v843_v9 = vrot.slane %v835_v1, %v4341_v51  ;;  %v850_v10 = vrot.slane %v836_v2, %v4341_v51  ;;  %v873_v11 = vshrl.u32 %v816_v60, 16 }
 0x258   : > { %v1336_v12 = vrot.slane %v1328_v61, %v4337_v44  ;;  %v865_v13 = vshrl.u32 %v817_v5, 16  ;;  %v881_v14 = vshrl.u32 %v818_v6, 16  ;;  %v1258_v15 = vpack.i.b16 %v1257_v63, %v1256_v29 }
 0x259   : > { %v1276_v16 = vcombine.low %v1238_v47, %v1254_v58  ;;  %v851_v17 = vcombine.high %v843_v9, %v3906_v62  ;;  %v852_v18 = vcombine.high %v850_v10, %v3906_v62  ;;  %v855_v19 = vpack.i.b16 %v843_v9, %v809_v59 }
 0x25a   : > { %v858_v20 = vshrl.u32 %v843_v9, 16  ;;  %v871_v21 = vpack.i.b16 %v850_v10, %v816_v60  ;;  %v874_v22 = vshrl.u32 %v850_v10, 16  ;;  %v1277_v23 = vcombine.high %v1238_v47, %v1254_v58 }
 0x25b   : > { %v1284_v24 = vrot.slane %v1276_v16, %v4337_v44  ;;  %v863_v26 = vpack.i.b16 %v851_v17, %v817_v5  ;;  %v866_v27 = vshrl.u32 %v851_v17, 16  ;;  %v879_v28 = vpack.i.b16 %v852_v18, %v818_v6  ;;  %886 = vst.msk [vmem:[#allocation2] sm:$0xf] %vm885_vm2, %v855_v19 }
 0x25c   : > { %v859_v25 = vpack.i.b16 %v858_v20, %v857_v7  ;;  %v875_v30 = vpack.i.b16 %v874_v22, %v873_v11  ;;  %v882_v31 = vshrl.u32 %v852_v18, 16  ;;  %890 = vst.msk [vmem:[#allocation2 + $0x10] sm:$0xf] %vm885_vm2, %v871_v21  ;;  %v1291_v32 = vrot.slane %v1277_v23, %v4337_v44 }
 0x25d   : > { %v1292_v33 = vcombine.low %v1268_v3, %v1284_v24  ;;  %v867_v34 = vpack.i.b16 %v866_v27, %v865_v13  ;;  %888 = vst.msk [vmem:[#allocation2 + $0x8] sm:$0xf] %vm885_vm2, %v863_v26  ;;  %892 = vst.msk [vmem:[#allocation2 + $0x18] sm:$0xf] %vm885_vm2, %v879_v28  ;;  %v1293_v35 = vcombine.high %v1268_v3, %v1284_v24 }
 0x25e   : > { %887 = vst.msk [vmem:[#allocation2 + $0x4] sm:$0xf] %vm885_vm2, %v859_v25  ;;  %v1344_v36 = vcombine.low %v4360_v48, %v1258_v15  ;;  %v1345_v37 = vcombine.high %v4360_v48, %v1258_v15  ;;  %v883_v38 = vpack.i.b16 %v882_v31, %v881_v14  ;;  %891 = vst.msk [vmem:[#allocation2 + $0x14] sm:$0xf] %vm885_vm2, %v875_v30 }
 0x25f   : > { %v1300_v39 = vrot.slane %v1292_v33, %v4341_v51  ;;  %v1308_v40 = vcombine.low %v1275_v4, %v1291_v32  ;;  %v1309_v41 = vcombine.high %v1275_v4, %v1291_v32  ;;  %889 = vst.msk [vmem:[#allocation2 + $0xc] sm:$0xf] %vm885_vm2, %v867_v34  ;;  %v1343_v42 = vrot.slane %v1329_v8, %v4337_v44 }
 0x260   : > { %v1307_v43 = vrot.slane %v1293_v35, %v4341_v51  ;;  %v1352_v45 = vrot.slane %v1344_v36, %v4337_v44  ;;  %v1359_v46 = vrot.slane %v1345_v37, %v4337_v44  ;;  %893 = vst.msk [vmem:[#allocation2 + $0x1c] sm:$0xf] %vm885_vm2, %v883_v38 }
 0x261   : > { %v1316_v47 = vrot.slane %v1308_v40, %v4341_v51  ;;  %v1323_v48 = vrot.slane %v1309_v41, %v4341_v51 }
 0x262   : > { %v1360_v29 = vcombine.low %v1336_v12, %v1352_v45  ;;  %v1361_v49 = vcombine.high %v1336_v12, %v1352_v45  ;;  %v1376_v50 = vcombine.low %v1343_v42, %v1359_v46  ;;  %v1377_v52 = vcombine.high %v1343_v42, %v1359_v46  ;;  %v1556_v7 = vld [vmem:[#allocation2] sm:$0xf] }
 0x263   : > { %v1396_v53 = vcombine.low %v1300_v39, %v1307_v43  ;;  %v3168_v54 = vcombine.high %v1300_v39, %v1307_v43  ;;  %v1412_v55 = vcombine.low %v1316_v47, %v1323_v48  ;;  %v3169_v56 = vcombine.high %v1316_v47, %v1323_v48  ;;  %v1560_v8 = vld [vmem:[#allocation2 + $0x10] sm:$0xf] }
 0x264   : > { %v1368_v57 = vrot.slane %v1360_v29, %v4341_v51  ;;  %v1375_v58 = vrot.slane %v1361_v49, %v4341_v51  ;;  %v1384_v59 = vrot.slane %v1376_v50, %v4341_v51  ;;  %v1391_v60 = vrot.slane %v1377_v52, %v4341_v51  ;;  %v1562_v37 = vld [vmem:[#allocation2 + $0x18] sm:$0xf]  ;;  %v1558_v47 = vld [vmem:[#allocation2 + $0x8] sm:$0xf] }
 0x265   : > { %v1403_v61 = vrot.slane %v1396_v53, %v4337_v44  ;;  %v1411_v63 = vrot.slane %v3168_v54, %v4337_v44  ;;  %v1419_v1 = vrot.slane %v1412_v55, %v4337_v44  ;;  %v1427_v2 = vrot.slane %v3169_v56, %v4337_v44  ;;  %v1557_v36 = vld [vmem:[#allocation2 + $0x4] sm:$0xf] }
 0x266   : > { %v1464_v3 = vcombine.low %v1368_v57, %v1375_v58  ;;  %v3170_v4 = vcombine.high %v1368_v57, %v1375_v58  ;;  %v1480_v5 = vcombine.low %v1384_v59, %v1391_v60  ;;  %v3171_v6 = vcombine.high %v1384_v59, %v1391_v60  ;;  %v1559_v53 = vld [vmem:[#allocation2 + $0xc] sm:$0xf]  ;;  %v1561_v58 = vld [vmem:[#allocation2 + $0x14] sm:$0xf] }
 0x267   : > { %v1428_v9 = vcombine.low %v1403_v61, %v1411_v63  ;;  %v1429_v10 = vcombine.high %v1403_v61, %v1411_v63  ;;  %v1444_v11 = vcombine.low %v1419_v1, %v1427_v2  ;;  %v1445_v12 = vcombine.high %v1419_v1, %v1427_v2  ;;  %v1563_v1 = vld [vmem:[#allocation2 + $0x1c] sm:$0xf] }
 0x268   : > { %v1471_v13 = vrot.slane %v1464_v3, %v4337_v44  ;;  %v1479_v14 = vrot.slane %v3170_v4, %v4337_v44  ;;  %v1487_v15 = vrot.slane %v1480_v5, %v4337_v44  ;;  %v1495_v16 = vrot.slane %v3171_v6, %v4337_v44 }
 0x269   : > { %v1569_v17 = vsel %vm1564_vm3, %v1556_v7, 0  ;;  %v1757_v18 = vsel %vm1564_vm3, %v1560_v8, 0  ;;  %v1436_v19 = vrot.slane %v1428_v9, %v4341_v51  ;;  %v1452_v20 = vrot.slane %v1444_v11, %v4341_v51  ;;  %v4456_v7 = vpop.f32.mrb[0].mxu1 }
 0x26a   : > { %v1496_v21 = vcombine.low %v1471_v13, %v1479_v14  ;;  %v1497_v22 = vcombine.high %v1471_v13, %v1479_v14  ;;  %v1512_v23 = vcombine.low %v1487_v15, %v1495_v16  ;;  %v1513_v24 = vcombine.high %v1487_v15, %v1495_v16  ;;  %3294 = vmatpush3.bf16.xpose.msra.mxu1 %v1569_v17  ;;  %v3279_v8 = vpop.f32.mrb[1].mxu1 }
 0x26b   : > { %3318 = vmatpush3.bf16.xpose.msra.mxu0 %v1757_v18  ;;  %3299 = vmatprep.subr.bf16.mxu1 %v3895_v0  ;;  %v1443_v25 = vrot.slane %v1429_v10, %v4341_v51  ;;  %v1459_v26 = vrot.slane %v1445_v12, %v4341_v51  ;;  %v1460_v32 = vcombine.low %v1436_v19, %v1452_v20  ;;  %v1616_v40 = vsel %vm1564_vm3, %v1557_v36, 0  ;;  %v659_v9 = vpop.f32.mrb[2].mxu1 }
 0x26c   : > { %3329 = vmatprep.subr.bf16.mxu0 %v3895_v0  ;;  %v1504_v27 = vrot.slane %v1496_v21, %v4341_v51  ;;  %v1520_v28 = vrot.slane %v1512_v23, %v4341_v51  ;;  %v1511_v30 = vrot.slane %v1497_v22, %v4341_v51  ;;  %v1527_v31 = vrot.slane %v1513_v24, %v4341_v51  ;;  %v3280_v10 = vpop.f32.mrb[3].mxu1 }
 0x26d   : > { %v1462_v34 = vcombine.low %v1443_v25, %v1459_v26  ;;  %v1851_v41 = vsel %vm1564_vm3, %v1562_v37, 0  ;;  %v1535_v45 = vshrl.u32 %v1460_v32, 16  ;;  %v1463_v46 = vcombine.high %v1443_v25, %v1459_v26 }
 0x26e   : > { %v1528_v33 = vcombine.low %v1504_v27, %v1520_v28  ;;  %v1530_v35 = vcombine.low %v1511_v30, %v1527_v31  ;;  %v1531_v43 = vcombine.high %v1511_v30, %v1527_v31  ;;  %v1663_v49 = vsel %vm1564_vm3, %v1558_v47, 0 }
 0x26f   : > { %v1529_v50 = vcombine.high %v1504_v27, %v1520_v28  ;;  %v1461_v52 = vcombine.high %v1436_v19, %v1452_v20  ;;  %v1710_v55 = vsel %vm1564_vm3, %v1559_v53, 0  ;;  %v1804_v60 = vsel %vm1564_vm3, %v1561_v58, 0 }
 0x270   : > { %v1534_v38 = vpack.i.b16 %v1528_v33, %v1460_v32  ;;  %v1546_v39 = vpack.i.b16 %v1530_v35, %v1462_v34  ;;  %v1536_v42 = vshrl.u32 %v1528_v33, 16  ;;  %v1552_v29 = vpack.i.b16 %v1531_v43, %v1463_v46 }
 0x271   : > { %v1540_v54 = vpack.i.b16 %v1529_v50, %v1461_v52  ;;  %v1542_v56 = vshrl.u32 %v1529_v50, 16  ;;  %v1541_v57 = vshrl.u32 %v1461_v52, 16  ;;  %v1548_v61 = vshrl.u32 %v1530_v35, 16 }
 0x272   : > { %3296 = vmatmul.mubr.msk.bf16.vlgmr.msra.gmra.mrb[4].mxu1 %vm1564_vm3, %v1534_v38  ;;  %3320 = vmatmul.mubr.msk.bf16.vlgmr.msra.gmra.mrb[8].mxu0 %vm1564_vm3, %v1546_v39  ;;  %v1537_v48 = vpack.i.b16 %v1536_v42, %v1535_v45  ;;  %v1547_v63 = vshrl.u32 %v1462_v34, 16  ;;  %v1898_v3 = vsel %vm1564_vm3, %v1563_v1, 0  ;;  %v1554_v4 = vshrl.u32 %v1531_v43, 16 }
 0x273   : > { %3300 = vmatpush3.bf16.xpose.msra.mxu1 %v1616_v40  ;;  %3330 = vmatpush3.bf16.xpose.msra.mxu0 %v1851_v41  ;;  %v1543_v59 = vpack.i.b16 %v1542_v56, %v1541_v57  ;;  %v1553_v5 = vshrl.u32 %v1463_v46, 16  ;;  %v3156_v57 = vld [vmem:[%s4857_s16] ss:$0 sm:$0xff]  ;;  %s2966_s16 = scalar_lea.sflag [#allocation6], %s4236_s6 }
 0x274   : > { %3301 = vmatprep.mubr.msk.bf16.mxu1 %vm3896_vm0, %v3895_v0  ;;  %3305 = vmatprep.subr.bf16.mxu1 %v3895_v0  ;;  %v1549_v2 = vpack.i.b16 %v1548_v61, %v1547_v63  ;;  %v657_v61 = vadd.f32 %v3156_v57, %v4456_v7 }
 0x275   : > { %3331 = vmatprep.mubr.msk.bf16.mxu0 %vm3896_vm0, %v3895_v0  ;;  %3341 = vmatprep.subr.bf16.mxu0 %v3895_v0  ;;  %v1555_v6 = vpack.i.b16 %v1554_v4, %v1553_v5 }
 0x276   : > { %v4524_v63 = vpack.c.bf16 %v657_v61, %v657_v61 }
 0x27a   : > { %3302 = vmatmul.mubr.msk.bf16.vlgmr.msra.gmra.mrb[8].mxu1 %vm1564_vm3, %v1537_v48  ;;  %3332 = vmatmul.mubr.msk.bf16.vlgmr.msra.gmra.mrb[12].mxu0 %vm1564_vm3, %v1552_v29 }
 0x27b   : > { %3306 = vmatpush3.bf16.xpose.msra.mxu1 %v1663_v49  ;;  %3307 = vmatprep.mubr.msk.bf16.mxu1 %vm3896_vm0, %v3895_v0 }
 0x27c   : > { %3311 = vmatprep.subr.bf16.mxu1 %v3895_v0  ;;  %3343 = vmatprep.mubr.msk.bf16.mxu0 %vm3896_vm0, %v3895_v0 }
 0x282   : > { %3308 = vmatmul.mubr.msk.bf16.vlgmr.msra.gmra.mrb[12].mxu1 %vm1564_vm3, %v1540_v54 }
 0x283   : > { %3312 = vmatpush3.bf16.xpose.msra.mxu1 %v1710_v55  ;;  %3313 = vmatprep.mubr.msk.bf16.mxu1 %vm3896_vm0, %v3895_v0 }
 0x284   : > { %3323 = vmatprep.subr.bf16.mxu1 %v3895_v0 }
 0x28a   : > { %3314 = vmatmul.mubr.msk.bf16.vlgmr.msra.gmra.mrb[16].mxu1 %vm1564_vm3, %v1543_v59 }
 0x28b   : > { %3324 = vmatpush3.bf16.xpose.msra.mxu1 %v1804_v60  ;;  %3325 = vmatprep.mubr.msk.bf16.mxu1 %vm3896_vm0, %v3895_v0 }
 0x28c   : > { %3335 = vmatprep.subr.bf16.mxu1 %v3895_v0 }
 0x292   : > { %3326 = vmatmul.mubr.msk.bf16.vlgmr.msra.gmra.mrb[20].mxu1 %vm1564_vm3, %v1549_v2 }
 0x293   : > { %3336 = vmatpush3.bf16.xpose.msra.mxu1 %v1898_v3  ;;  %3337 = vmatprep.mubr.msk.bf16.mxu1 %vm3896_vm0, %v3895_v0 }
 0x294   : > { %3347 = vmatprep.subr.bf16.mxu1 %v3895_v0 }
 0x29a   : > { %3338 = vmatmul.mubr.msk.bf16.vlgmr.msra.gmra.mrb[24].mxu1 %vm1564_vm3, %v1555_v6 }
 0x29b   : > { %3349 = vmatprep.mubr.msk.bf16.mxu1 %vm3896_vm0, %v3895_v0 }
 0x345   : > { %v4458_v11 = vpop.f32.mrb[4].mxu1  ;;  %v4460_v12 = vpop.f32.mrb[8].mxu0 }
 0x346   : > { %v3297_v13 = vpop.f32.mrb[5].mxu1  ;;  %v3321_v14 = vpop.f32.mrb[9].mxu0  ;;  %v1941_v15 = vsel %vm1564_vm3, %v4458_v11, -inf  ;;  %v1965_v16 = vsel %vm1564_vm3, %v4460_v12, -inf }
 0x347   : > { %1942 = vmax.xlane.f32.xlu0 %v1941_v15  ;;  %v4466_v17 = vpop.f32.mrb[6].mxu1  ;;  %1966 = vmax.xlane.f32.xlu1 %v1965_v16  ;;  %v4468_v18 = vpop.f32.mrb[10].mxu0 }
 0x348   : > { %v3298_v19 = vpop.f32.mrb[7].mxu1  ;;  %v3322_v20 = vpop.f32.mrb[11].mxu0  ;;  %v1944_v21 = vsel %vm1564_vm3, %v4466_v17, -inf  ;;  %v1968_v47 = vsel %vm1564_vm3, %v4468_v18, -inf }
 0x34b   : > { %1945 = vmax.xlane.f32.xlu1 %v1944_v21 }
 0x34d   : > { %v4472_v22 = vpop.f32.mrb[8].mxu1  ;;  %v4474_v23 = vpop.f32.mrb[12].mxu0 }
 0x34e   : > { %v3303_v24 = vpop.f32.mrb[9].mxu1  ;;  %v3333_v25 = vpop.f32.mrb[13].mxu0  ;;  %v1947_v26 = vsel %vm1564_vm3, %v4472_v22, -inf  ;;  %v1977_v46 = vsel %vm1564_vm3, %v4474_v23, -inf }
 0x34f   : > { %1948 = vmax.xlane.f32.xlu0 %v1947_v26  ;;  %v4478_v27 = vpop.f32.mrb[10].mxu1  ;;  %v4480_v28 = vpop.f32.mrb[14].mxu0 }
 0x350   : > { %v3304_v30 = vpop.f32.mrb[11].mxu1  ;;  %v3334_v31 = vpop.f32.mrb[15].mxu0  ;;  %v1950_v32 = vsel %vm1564_vm3, %v4478_v27, -inf  ;;  %v1980_v54 = vsel %vm1564_vm3, %v4480_v28, -inf }
 0x353   : > { %1951 = vmax.xlane.f32.xlu0 %v1950_v32 }
 0x355   : > { %v4484_v33 = vpop.f32.mrb[12].mxu1 }
 0x356   : > { %v3309_v34 = vpop.f32.mrb[13].mxu1  ;;  %v1953_v35 = vsel %vm1564_vm3, %v4484_v33, -inf }
 0x357   : > { %v4488_v36 = vpop.f32.mrb[14].mxu1  ;;  %1954 = vmax.xlane.f32.xlu1 %v1953_v35 }
 0x358   : > { %v3310_v37 = vpop.f32.mrb[15].mxu1  ;;  %v1956_v38 = vsel %vm1564_vm3, %v4488_v36, -inf }
 0x359   : > { %1957 = vmax.xlane.f32.xlu0 %v1956_v38 }
 0x35d   : > { %v4492_v39 = vpop.f32.mrb[16].mxu1 }
 0x35e   : > { %v3315_v40 = vpop.f32.mrb[17].mxu1  ;;  %v1959_v41 = vsel %vm1564_vm3, %v4492_v39, -inf }
 0x35f   : > { %v4496_v42 = vpop.f32.mrb[18].mxu1  ;;  %1960 = vmax.xlane.f32.xlu1 %v1959_v41 }
 0x360   : > { %v3316_v43 = vpop.f32.mrb[19].mxu1  ;;  %v1962_v45 = vsel %vm1564_vm3, %v4496_v42, -inf }
 0x361   : > { %1963 = vmax.xlane.f32.xlu0 %v1962_v45 }
 0x363   : > { %1978 = vmax.xlane.f32.xlu1 %v1977_v46 }
 0x365   : > { %v4504_v48 = vpop.f32.mrb[20].mxu1  ;;  %1969 = vmax.xlane.f32.xlu0 %v1968_v47 }
 0x366   : > { %v3327_v29 = vpop.f32.mrb[21].mxu1  ;;  %v1971_v49 = vsel %vm1564_vm3, %v4504_v48, -inf }
 0x367   : > { %v4508_v50 = vpop.f32.mrb[22].mxu1  ;;  %1972 = vmax.xlane.f32.xlu1 %v1971_v49 }
 0x368   : > { %v3328_v52 = vpop.f32.mrb[23].mxu1  ;;  %v1974_v53 = vsel %vm1564_vm3, %v4508_v50, -inf }
 0x369   : > { %1975 = vmax.xlane.f32.xlu0 %v1974_v53 }
 0x36d   : > { %v4514_v55 = vpop.f32.mrb[24].mxu1  ;;  %1981 = vmax.xlane.f32.xlu0 %v1980_v54 }
 0x36e   : > { %v3339_v56 = vpop.f32.mrb[25].mxu1  ;;  %v1983_v1 = vsel %vm1564_vm3, %v4514_v55, -inf }
 0x36f   : > { %v4519_v58 = vpop.f32.mrb[26].mxu1 }
 0x370   : > { %v3340_v59 = vpop.f32.mrb[27].mxu1  ;;  %v1986_v60 = vsel %vm1564_vm3, %v4519_v58, -inf }
 0x371   : > { %1987 = vmax.xlane.f32.xlu0 %v1986_v60 }
 0x378   : > { %896 = vrot.lane.b32.xlu1 %v4524_v63, %s3898_s20  ;;  %s4858_s20 = sld [smem:[#allocation23_spill]] }
 0x37e   : > { %s3204_s11 = sshll.u32 %s4858_s20, 8 }
 0x387   : > { %899 = vrot.lane.b32.xlu0 %v4524_v63, %s3900_s25 }
 0x38b   : > { %908 = vrot.lane.b32.xlu0 %v4524_v63, %s3902_s0  ;;  %s490_s0 = scalar_lea.vmem [#allocation15], %s3143_s22  ;;  %s4758_s22 = scalar_lea.hbm %s4860_s27, %s3204_s11 }
 0x38c   : > { %s2981_s7 = sshll.u32 %s490_s0, 4  ;;  %s4752_s7 = int_to_ptr.vmem [resolvable:$true] %s2981_s7 }
 0x38f   : > { %914 = vrot.lane.b32.xlu0 %v4524_v63, %s3903_s12 }
 0x39c   : > { %1984 = vmax.xlane.f32.xlu1 %v1983_v1 }
 0x3ad   : > { %902 = vrot.lane.b32.xlu1 %v4524_v63, %s3897_s26  ;;  %s3913_s26 = smov 56  }
 0x3b1   : > { %905 = vrot.lane.b32.xlu1 %v4524_v63, %s3899_s29 }
 0x3b5   : > { %911 = vrot.lane.b32.xlu1 %v4524_v63, %s3901_s28  ;;  %s4859_s28 = sld [smem:[#allocation30_spill]] }
 0x3d4   : > { %v1943_v2 = vpop.xlane.xlu0 %1942  ;;  %v1967_v3 = vpop.xlane.xlu1 %1966 }
 0x3d5   : > { %v1989_v4 = vsub.f32 %v4458_v11, %v1943_v2  ;;  %v1997_v30 = vsub.f32 %v4460_v12, %v1967_v3 }
 0x3d7   : > { %v2005_v5 = vmul.f32 1.442695, %v1989_v4  ;;  %v2021_v35 = vmul.f32 1.442695, %v1997_v30 }
 0x3d8   : > { %v1946_v6 = vpop.xlane.xlu1 %1945 }
 0x3d9   : > { %3549 = vpow2.f32 %v2005_v5  ;;  %v1990_v7 = vsub.f32 %v4466_v17, %v1946_v6 }
 0x3db   : > { %v2007_v8 = vmul.f32 1.442695, %v1990_v7 }
 0x3dc   : > { %v1949_v9 = vpop.xlane.xlu0 %1948 }
 0x3dd   : > { %3551 = vpow2.f32 %v2007_v8  ;;  %v1991_v10 = vsub.f32 %v4472_v22, %v1949_v9 }
 0x3df   : > { %v2009_v13 = vmul.f32 1.442695, %v1991_v10 }
 0x3e0   : > { %v1952_v14 = vpop.xlane.xlu0 %1951 }
 0x3e1   : > { %3553 = vpow2.f32 %v2009_v13  ;;  %v1992_v15 = vsub.f32 %v4478_v27, %v1952_v14 }
 0x3e3   : > { %v4546_v16 = vpop.eup %3549  ;;  %v2011_v19 = vmul.f32 1.442695, %v1992_v15 }
 0x3e4   : > { %v1955_v20 = vpop.xlane.xlu1 %1954  ;;  %v2037_v11 = vsel %vm1564_vm3, %v4546_v16, 0.0 }
 0x3e5   : > { %3555 = vpow2.f32 %v2011_v19  ;;  %v1993_v17 = vsub.f32 %v4484_v33, %v1955_v20  ;;  %2038 = vadd.xlane.f32.xlu1 %v2037_v11 }
 0x3e6   : > { %v1958_v21 = vpop.xlane.xlu0 %1957 }
 0x3e7   : > { %v4551_v24 = vpop.eup %3551  ;;  %v2013_v22 = vmul.f32 1.442695, %v1993_v17  ;;  %v1994_v25 = vsub.f32 %v4488_v36, %v1958_v21 }
 0x3e8   : > { %v2040_v26 = vsel %vm1564_vm3, %v4551_v24, 0.0 }
 0x3e9   : > { %3557 = vpow2.f32 %v2013_v22  ;;  %v2015_v27 = vmul.f32 1.442695, %v1994_v25  ;;  %2041 = vadd.xlane.f32.xlu0 %v2040_v26 }
 0x3eb   : > { %v4557_v31 = vpop.eup %3553  ;;  %3559 = vpow2.f32 %v2015_v27 }
 0x3ec   : > { %v1961_v32 = vpop.xlane.xlu1 %1960  ;;  %v2043_v33 = vsel %vm1564_vm3, %v4557_v31, 0.0 }
 0x3ed   : > { %v1995_v34 = vsub.f32 %v4492_v39, %v1961_v32  ;;  %2044 = vadd.xlane.f32.xlu0 %v2043_v33 }
 0x3ee   : > { %v1964_v36 = vpop.xlane.xlu0 %1963 }
 0x3ef   : > { %v4562_v37 = vpop.eup %3555  ;;  %v2017_v38 = vmul.f32 1.442695, %v1995_v34  ;;  %v1996_v40 = vsub.f32 %v4496_v42, %v1964_v36 }
 0x3f0   : > { %v1979_v41 = vpop.xlane.xlu1 %1978  ;;  %v2046_v12 = vsel %vm1564_vm3, %v4562_v37, 0.0 }
 0x3f1   : > { %3561 = vpow2.f32 %v2017_v38  ;;  %v2019_v43 = vmul.f32 1.442695, %v1996_v40  ;;  %2047 = vadd.xlane.f32.xlu1 %v2046_v12  ;;  %v2001_v45 = vsub.f32 %v4474_v23, %v1979_v41 }
 0x3f2   : > { %3563 = vpow2.f32 %v2021_v35  ;;  %v1970_v46 = vpop.xlane.xlu0 %1969 }
 0x3f3   : > { %v4568_v39 = vpop.eup %3557  ;;  %3565 = vpow2.f32 %v2019_v43  ;;  %v1998_v47 = vsub.f32 %v4468_v18, %v1970_v46  ;;  %v2029_v54 = vmul.f32 1.442695, %v2001_v45 }
 0x3f4   : > { %v1973_v29 = vpop.xlane.xlu1 %1972  ;;  %v2049_v42 = vsel %vm1564_vm3, %v4568_v39, 0.0 }
 0x3f5   : > { %v4573_v49 = vpop.eup %3559  ;;  %v2023_v52 = vmul.f32 1.442695, %v1998_v47  ;;  %v1999_v53 = vsub.f32 %v4504_v48, %v1973_v29  ;;  %2050 = vadd.xlane.f32.xlu0 %v2049_v42 }
 0x3f6   : > { %v1976_v56 = vpop.xlane.xlu0 %1975  ;;  %v2052_v23 = vsel %vm1564_vm3, %v4573_v49, 0.0 }
 0x3f7   : > { %3567 = vpow2.f32 %v2023_v52  ;;  %v2025_v57 = vmul.f32 1.442695, %v1999_v53  ;;  %v2000_v59 = vsub.f32 %v4508_v50, %v1976_v56  ;;  %2053 = vadd.xlane.f32.xlu1 %v2052_v23 }
 0x3f8   : > { %v897_v25 = vpop.permute.xlu1 %896 }
 0x3f9   : > { %3569 = vpow2.f32 %v2025_v57  ;;  %v2027_v18 = vmul.f32 1.442695, %v2000_v59 }
 0x3fa   : > { %3571 = vpow2.f32 %v2029_v54  ;;  %v1982_v60 = vpop.xlane.xlu0 %1981 }
 0x3fb   : > { %v4579_v61 = vpop.eup %3561  ;;  %3573 = vpow2.f32 %v2027_v18  ;;  %v2002_v48 = vsub.f32 %v4480_v28, %v1982_v60 }
 0x3fc   : > { %v4582_v1 = vpop.eup %3563  ;;  %v2055_v2 = vsel %vm1564_vm3, %v4579_v61, 0.0 }
 0x3fd   : > { %v4586_v3 = vpop.eup %3565  ;;  %v2031_v4 = vmul.f32 1.442695, %v2002_v48  ;;  %2056 = vadd.xlane.f32.xlu0 %v2055_v2  ;;  %v2061_v28 = vsel %vm1564_vm3, %v4582_v1, 0.0 }
 0x3fe   : > { %v1988_v50 = vpop.xlane.xlu0 %1987  ;;  %v2058_v5 = vsel %vm1564_vm3, %v4586_v3, 0.0 }
 0x3ff   : > { %3575 = vpow2.f32 %v2031_v4  ;;  %v2004_v6 = vsub.f32 %v4519_v58, %v1988_v50  ;;  %2059 = vadd.xlane.f32.xlu1 %v2058_v5 }
 0x401   : > { %v4593_v7 = vpop.eup %3567  ;;  %v2035_v8 = vmul.f32 1.442695, %v2004_v6  ;;  %2062 = vadd.xlane.f32.xlu0 %v2061_v28 }
 0x402   : > { %v2064_v9 = vsel %vm1564_vm3, %v4593_v7, 0.0  ;;  %v900_v22 = vpop.permute.xlu0 %899 }
 0x403   : > { %v4597_v10 = vpop.eup %3569  ;;  %3577 = vpow2.f32 %v2035_v8  ;;  %2065 = vadd.xlane.f32.xlu1 %v2064_v9 }
 0x404   : > { %v4599_v13 = vpop.eup %3571  ;;  %v2067_v58 = vsel %vm1564_vm3, %v4597_v10, 0.0 }
 0x405   : > { %v4603_v14 = vpop.eup %3573  ;;  %2068 = vadd.xlane.f32.xlu0 %v2067_v58  ;;  %v2073_v19 = vsel %vm1564_vm3, %v4599_v13, 0.0 }
 0x406   : > { %v2070_v15 = vsel %vm1564_vm3, %v4603_v14, 0.0  ;;  %v909_v26 = vpop.permute.xlu0 %908 }
 0x407   : > { %2071 = vadd.xlane.f32.xlu1 %v2070_v15  ;;  %v951_v35 = vcombine.low %v897_v25, %v909_v26 }
 0x409   : > { %v4609_v20 = vpop.eup %3575  ;;  %2074 = vadd.xlane.f32.xlu0 %v2073_v19  ;;  %v958_v41 = vrot.slane %v951_v35, %v4337_v44 }
 0x40a   : > { %v2076_v11 = vsel %vm1564_vm3, %v4609_v20, 0.0  ;;  %v915_v33 = vpop.permute.xlu0 %914 }
 0x40b   : > { %2077 = vadd.xlane.f32.xlu1 %v2076_v11 }
 0x40d   : > { %v4613_v17 = vpop.eup %3577 }
 0x40e   : > { %v2082_v21 = vsel %vm1564_vm3, %v4613_v17, 0.0 }
 0x40f   : > { %2083 = vadd.xlane.f32.xlu1 %v2082_v21 }
 0x429   : > { %v1985_v27 = vpop.xlane.xlu1 %1984 }
 0x42a   : > { %v2003_v30 = vsub.f32 %v4514_v55, %v1985_v27 }
 0x42c   : > { %v2033_v32 = vmul.f32 1.442695, %v2003_v30 }
 0x42d   : > { %v903_v34 = vpop.permute.xlu1 %902 }
 0x42e   : > { %3579 = vpow2.f32 %v2033_v32  ;;  %v959_v36 = vcombine.low %v903_v34, %v915_v33 }
 0x430   : > { %v966_v38 = vrot.slane %v959_v36, %v4337_v44 }
 0x431   : > { %v906_v40 = vpop.permute.xlu1 %905 }
 0x432   : > { %v967_v12 = vcombine.low %v958_v41, %v966_v38  ;;  %v917_v43 = vcombine.low %v4524_v63, %v906_v40  ;;  %v968_v46 = vcombine.high %v958_v41, %v966_v38 }
 0x434   : > { %v975_v55 = vrot.slane %v967_v12, %v4341_v51  ;;  %v924_v42 = vrot.slane %v917_v43, %v4337_v44  ;;  %v982_v54 = vrot.slane %v968_v46, %v4341_v51 }
 0x435   : > { %v912_v45 = vpop.permute.xlu1 %911 }
 0x436   : > { %v925_v47 = vcombine.low %v900_v22, %v912_v45  ;;  %v983_v63 = vcombine.high %v975_v55, %v3906_v62  ;;  %v984_v18 = vcombine.high %v982_v54, %v3906_v62  ;;  %v990_v60 = vshrl.u32 %v975_v55, 16 }
 0x437   : > { %v1006_v6 = vshrl.u32 %v982_v54, 16 }
 0x438   : > { %v4621_v29 = vpop.eup %3579  ;;  %v932_v52 = vrot.slane %v925_v47, %v4337_v44  ;;  %v998_v5 = vshrl.u32 %v983_v63, 16  ;;  %v1014_v11 = vshrl.u32 %v984_v18, 16 }
 0x439   : > { %v2079_v53 = vsel %vm1564_vm3, %v4621_v29, 0.0 }
 0x43a   : > { %2080 = vadd.xlane.f32.xlu0 %v2079_v53  ;;  %v933_v56 = vcombine.low %v924_v42, %v932_v52  ;;  %v934_v23 = vcombine.high %v924_v42, %v932_v52 }
 0x43c   : > { %v941_v57 = vrot.slane %v933_v56, %v4341_v51  ;;  %v948_v59 = vrot.slane %v934_v23, %v4341_v51 }
 0x43e   : > { %v949_v48 = vcombine.high %v941_v57, %v3906_v62  ;;  %v950_v2 = vcombine.high %v948_v59, %v3906_v62  ;;  %v987_v4 = vpack.i.b16 %v975_v55, %v941_v57  ;;  %v989_v50 = vshrl.u32 %v941_v57, 16 }
 0x43f   : > { %v1003_v28 = vpack.i.b16 %v982_v54, %v948_v59  ;;  %v1005_v8 = vshrl.u32 %v948_v59, 16 }
 0x440   : > { %v991_v9 = vpack.i.b16 %v990_v60, %v989_v50  ;;  %v995_v58 = vpack.i.b16 %v983_v63, %v949_v48  ;;  %v997_v15 = vshrl.u32 %v949_v48, 16  ;;  %v1011_v19 = vpack.i.b16 %v984_v18, %v950_v2 }
 0x441   : > { %v1007_v21 = vpack.i.b16 %v1006_v6, %v1005_v8  ;;  %v1013_v22 = vshrl.u32 %v950_v2, 16  ;;  %v1017_v25 = vcombine.low %v987_v4, %v1003_v28 }
 0x442   : > { %v999_v26 = vpack.i.b16 %v998_v5, %v997_v15  ;;  %v1025_v27 = vcombine.low %v995_v58, %v1011_v19 }
 0x443   : > { %v1015_v30 = vpack.i.b16 %v1014_v11, %v1013_v22  ;;  %v1051_v32 = vcombine.low %v991_v9, %v1007_v21  ;;  %v1024_v33 = vrot.slane %v1017_v25, %v4337_v44 }
 0x444   : > { %v1032_v34 = vrot.slane %v1025_v27, %v4337_v44 }
 0x445   : > { %v1059_v35 = vcombine.low %v999_v26, %v1015_v30  ;;  %v1058_v40 = vrot.slane %v1051_v32, %v4337_v44 }
 0x446   : > { %v1033_v36 = vcombine.low %v1024_v33, %v1032_v34  ;;  %v1034_v38 = vcombine.high %v1024_v33, %v1032_v34 }
 0x447   : > { %v1066_v41 = vrot.slane %v1059_v35, %v4337_v44 }
 0x448   : > { %v1041_v12 = vrot.slane %v1033_v36, %v4341_v51  ;;  %v1048_v43 = vrot.slane %v1034_v38, %v4341_v51 }
 0x449   : > { %v1067_v45 = vcombine.low %v1058_v40, %v1066_v41  ;;  %v1068_v46 = vcombine.high %v1058_v40, %v1066_v41 }
 0x44a   : > { %v1049_v47 = vcombine.high %v1041_v12, %v3906_v62  ;;  %v1050_v52 = vcombine.high %v1048_v43, %v3906_v62  ;;  %v1089_v53 = vshrl.u32 %v1041_v12, 16  ;;  %v1105_v18 = vshrl.u32 %v1048_v43, 16 }
 0x44b   : > { %v1075_v55 = vrot.slane %v1067_v45, %v4341_v51  ;;  %v1082_v42 = vrot.slane %v1068_v46, %v4341_v51 }
 0x44c   : > { %v1097_v57 = vshrl.u32 %v1049_v47, 16  ;;  %v1113_v6 = vshrl.u32 %v1050_v52, 16 }
 0x44d   : > { %v1083_v54 = vcombine.high %v1075_v55, %v3906_v62  ;;  %v1084_v56 = vcombine.high %v1082_v42, %v3906_v62  ;;  %v1087_v23 = vpack.i.b16 %v1075_v55, %v1041_v12  ;;  %v1090_v63 = vshrl.u32 %v1075_v55, 16 }
 0x44e   : > { %v1103_v59 = vpack.i.b16 %v1082_v42, %v1048_v43  ;;  %v1106_v60 = vshrl.u32 %v1082_v42, 16 }
 0x44f   : > { %v1091_v48 = vpack.i.b16 %v1090_v63, %v1089_v53  ;;  %v1095_v2 = vpack.i.b16 %v1083_v54, %v1049_v47  ;;  %v1098_v4 = vshrl.u32 %v1083_v54, 16  ;;  %v1111_v50 = vpack.i.b16 %v1084_v56, %v1050_v52  ;;  %1117 = vst.msk [vmem:[#allocation3] sm:$0xf] %vm885_vm2, %v1087_v23 }
 0x450   : > { %v1107_v5 = vpack.i.b16 %v1106_v60, %v1105_v18  ;;  %v1114_v28 = vshrl.u32 %v1084_v56, 16  ;;  %1121 = vst.msk [vmem:[#allocation3 + $0x10] sm:$0xf] %vm885_vm2, %v1103_v59 }
 0x451   : > { %v1099_v8 = vpack.i.b16 %v1098_v4, %v1097_v57  ;;  %1118 = vst.msk [vmem:[#allocation3 + $0x4] sm:$0xf] %vm885_vm2, %v1091_v48  ;;  %1119 = vst.msk [vmem:[#allocation3 + $0x8] sm:$0xf] %vm885_vm2, %v1095_v2 }
 0x452   : > { %1123 = vst.msk [vmem:[#allocation3 + $0x18] sm:$0xf] %vm885_vm2, %v1111_v50  ;;  %v1115_v62 = vpack.i.b16 %v1114_v28, %v1113_v6  ;;  %1122 = vst.msk [vmem:[#allocation3 + $0x14] sm:$0xf] %vm885_vm2, %v1107_v5 }
 0x453   : > { %1120 = vst.msk [vmem:[#allocation3 + $0xc] sm:$0xf] %vm885_vm2, %v1099_v8 }
 0x454   : > { %1124 = vst.msk [vmem:[#allocation3 + $0x1c] sm:$0xf] %vm885_vm2, %v1115_v62 }
 0x456   : > { %v2125_v9 = vld [vmem:[#allocation3] sm:$0xf] }
 0x457   : > { %v2138_v58 = vsel %vm2136_vm4, %v2125_v9, 0  ;;  %v2129_v54 = vld [vmem:[#allocation3 + $0x10] sm:$0xf] }
 0x458   : > { %3342 = vmatpush3.bf16.msra.mxu0 %v2138_v58  ;;  %v2126_v15 = vld [vmem:[#allocation3 + $0x4] sm:$0xf]  ;;  %v2127_v34 = vld [vmem:[#allocation3 + $0x8] sm:$0xf]  ;;  %v2326_v57 = vsel %vm2136_vm4, %v2129_v54, 0 }
 0x459   : > { %v2185_v19 = vsel %vm2136_vm4, %v2126_v15, 0  ;;  %3353 = vmatprep.subr.bf16.mxu0 %v3895_v0  ;;  %v2232_v38 = vsel %vm2136_vm4, %v2127_v34, 0  ;;  %v2130_v4 = vld [vmem:[#allocation3 + $0x14] sm:$0xf]  ;;  %v2131_v9 = vld [vmem:[#allocation3 + $0x18] sm:$0xf] }
 0x45a   : > { %3348 = vmatpush3.bf16.msra.mxu1 %v2185_v19  ;;  %v2128_v43 = vld [vmem:[#allocation3 + $0xc] sm:$0xf]  ;;  %v2373_v8 = vsel %vm2136_vm4, %v2130_v4, 0  ;;  %v3545_v34 = vld [vmem:[#allocation13] sm:$0xff]  }
 0x45b   : > { %3359 = vmatprep.subr.bf16.mxu1 %v3895_v0  ;;  %v2279_v55 = vsel %vm2136_vm4, %v2128_v43, 0  ;;  %v2132_v19 = vld [vmem:[#allocation3 + $0x1c] sm:$0xf] }
 0x472   : > { %v2039_v11 = vpop.xlane.xlu1 %2038 }
 0x473   : > { %3581 = vrcp.f32 %v2039_v11 }
 0x476   : > { %v2042_v21 = vpop.xlane.xlu0 %2041 }
 0x477   : > { %3583 = vrcp.f32 %v2042_v21 }
 0x47a   : > { %v2045_v22 = vpop.xlane.xlu0 %2044 }
 0x47b   : > { %3585 = vrcp.f32 %v2045_v22 }
 0x47d   : > { %v3582_v26 = vpop.eup %3581 }
 0x47e   : > { %v2048_v25 = vpop.xlane.xlu1 %2047  ;;  %v2101_v30 = vmul.f32 %v3582_v26, %v4546_v16 }
 0x47f   : > { %3587 = vrcp.f32 %v2048_v25 }
 0x481   : > { %v3584_v27 = vpop.eup %3583 }
 0x482   : > { %v2102_v32 = vmul.f32 %v3584_v27, %v4551_v24  ;;  %v2051_v33 = vpop.xlane.xlu0 %2050 }
 0x483   : > { %3589 = vrcp.f32 %v2051_v33 }
 0x484   : > { %v2054_v35 = vpop.xlane.xlu1 %2053  ;;  %v2117_v36 = vpack.c.bf16 %v2102_v32, %v2101_v30 }
 0x485   : > { %3591 = vrcp.f32 %v2054_v35  ;;  %v3586_v40 = vpop.eup %3585 }
 0x486   : > { %3344 = vmatmul.mubr.msk.bf16.vlgmr.msra.gmra.mrb[16].mxu0 %vm1564_vm3, %v2117_v36  ;;  %v2103_v24 = vmul.f32 %v3586_v40, %v4557_v31 }
 0x487   : > { %3354 = vmatpush3.bf16.msra.mxu0 %v2232_v38  ;;  %3355 = vmatprep.mubr.msk.bf16.mxu0 %vm3896_vm0, %v3895_v0 }
 0x488   : > { %3365 = vmatprep.subr.bf16.mxu0 %v3895_v0 }
 0x489   : > { %v3588_v16 = vpop.eup %3587 }
 0x48a   : > { %v2104_v41 = vmul.f32 %v3588_v16, %v4562_v37  ;;  %v2057_v12 = vpop.xlane.xlu0 %2056 }
 0x48b   : > { %3593 = vrcp.f32 %v2057_v12 }
 0x48c   : > { %v2060_v45 = vpop.xlane.xlu1 %2059  ;;  %v2118_v46 = vpack.c.bf16 %v2104_v41, %v2103_v24 }
 0x48d   : > { %v3590_v47 = vpop.eup %3589  ;;  %3595 = vrcp.f32 %v2060_v45 }
 0x48e   : > { %3350 = vmatmul.mubr.msk.bf16.vlgmr.msra.gmra.mrb[28].mxu1 %vm1564_vm3, %v2118_v46  ;;  %v2063_v42 = vpop.xlane.xlu0 %2062  ;;  %v2105_v31 = vmul.f32 %v3590_v47, %v4568_v39 }
 0x48f   : > { %v3592_v52 = vpop.eup %3591  ;;  %3360 = vmatpush3.bf16.msra.mxu1 %v2279_v55  ;;  %3597 = vrcp.f32 %v2063_v42  ;;  %3361 = vmatprep.mubr.msk.bf16.mxu1 %vm3896_vm0, %v3895_v0 }
 0x490   : > { %v2106_v37 = vmul.f32 %v3592_v52, %v4573_v49  ;;  %v2066_v53 = vpop.xlane.xlu1 %2065  ;;  %3371 = vmatprep.subr.bf16.mxu1 %v3895_v0 }
 0x491   : > { %3599 = vrcp.f32 %v2066_v53 }
 0x492   : > { %v2069_v56 = vpop.xlane.xlu0 %2068  ;;  %v2119_v23 = vpack.c.bf16 %v2106_v37, %v2105_v31 }
 0x493   : > { %3601 = vrcp.f32 %v2069_v56 }
 0x494   : > { %v2072_v63 = vpop.xlane.xlu1 %2071  ;;  %3356 = vmatmul.mubr.msk.bf16.vlgmr.msra.gmra.mrb[20].mxu0 %vm1564_vm3, %v2119_v23 }
 0x495   : > { %v3594_v59 = vpop.eup %3593  ;;  %3603 = vrcp.f32 %v2072_v63  ;;  %3366 = vmatpush3.bf16.msra.mxu0 %v2326_v57  ;;  %3367 = vmatprep.mubr.msk.bf16.mxu0 %vm3896_vm0, %v3895_v0 }
 0x496   : > { %v2075_v39 = vpop.xlane.xlu0 %2074  ;;  %3377 = vmatprep.subr.bf16.mxu0 %v3895_v0  ;;  %v2107_v18 = vmul.f32 %v3594_v59, %v4579_v61 }
 0x497   : > { %v3596_v49 = vpop.eup %3595  ;;  %3605 = vrcp.f32 %v2075_v39 }
 0x498   : > { %v2108_v60 = vmul.f32 %v3596_v49, %v4586_v3  ;;  %v2078_v48 = vpop.xlane.xlu1 %2077 }
 0x499   : > { %v3598_v2 = vpop.eup %3597  ;;  %3607 = vrcp.f32 %v2078_v48 }
 0x49a   : > { %v2120_v50 = vpack.c.bf16 %v2108_v60, %v2107_v18  ;;  %v2109_v6 = vmul.f32 %v3598_v2, %v4582_v1 }
 0x49b   : > { %v3600_v5 = vpop.eup %3599 }
 0x49c   : > { %v2110_v28 = vmul.f32 %v3600_v5, %v4593_v7  ;;  %3362 = vmatmul.mubr.msk.bf16.vlgmr.msra.gmra.mrb[32].mxu1 %vm1564_vm3, %v2120_v50  ;;  %v2420_v7 = vsel %vm2136_vm4, %v2131_v9, 0  ;;  %v2084_v26 = vpop.xlane.xlu1 %2083 }
 0x49d   : > { %v3602_v62 = vpop.eup %3601  ;;  %3372 = vmatpush3.bf16.msra.mxu1 %v2373_v8  ;;  %3373 = vmatprep.mubr.msk.bf16.mxu1 %vm3896_vm0, %v3895_v0  ;;  %3609 = vrcp.f32 %v2084_v26 }
 0x49e   : > { %v2121_v61 = vpack.c.bf16 %v2110_v28, %v2109_v6  ;;  %3383 = vmatprep.subr.bf16.mxu1 %v3895_v0  ;;  %v2111_v58 = vmul.f32 %v3602_v62, %v4597_v10 }
 0x49f   : > { %v3604_v3 = vpop.eup %3603 }
 0x4a0   : > { %v2112_v1 = vmul.f32 %v3604_v3, %v4603_v14  ;;  %3368 = vmatmul.mubr.msk.bf16.vlgmr.msra.gmra.mrb[24].mxu0 %vm1564_vm3, %v2121_v61  ;;  %v2467_v14 = vsel %vm2136_vm4, %v2132_v19, 0 }
 0x4a1   : > { %v3606_v15 = vpop.eup %3605  ;;  %3378 = vmatpush3.bf16.msra.mxu0 %v2420_v7  ;;  %3379 = vmatprep.mubr.msk.bf16.mxu0 %vm3896_vm0, %v3895_v0 }
 0x4a2   : > { %v2122_v11 = vpack.c.bf16 %v2112_v1, %v2111_v58  ;;  %3389 = vmatprep.subr.bf16.mxu0 %v3895_v0  ;;  %v2113_v22 = vmul.f32 %v3606_v15, %v4599_v13 }
 0x4a3   : > { %v3608_v21 = vpop.eup %3607 }
 0x4a4   : > { %v2114_v10 = vmul.f32 %v3608_v21, %v4609_v20  ;;  %3374 = vmatmul.mubr.msk.bf16.vlgmr.msra.gmra.mrb[36].mxu1 %vm1564_vm3, %v2122_v11 }
 0x4a5   : > { %3384 = vmatpush3.bf16.msra.mxu1 %v2467_v14  ;;  %3385 = vmatprep.mubr.msk.bf16.mxu1 %vm3896_vm0, %v3895_v0 }
 0x4a6   : > { %v2123_v25 = vpack.c.bf16 %v2114_v10, %v2113_v22 }
 0x4a7   : > { %v3610_v13 = vpop.eup %3609 }
 0x4a8   : > { %3380 = vmatmul.mubr.msk.bf16.vlgmr.msra.gmra.mrb[28].mxu0 %vm1564_vm3, %v2123_v25  ;;  %v2116_v30 = vmul.f32 %v3610_v13, %v4613_v17 }
 0x4a9   : > { %3397 = vmatprep.mubr.msk.bf16.mxu0 %vm3896_vm0, %v3895_v0  ;;  %3390 = vmatpush3.bf16.msra.mxu0 %v3545_v34 }
 0x4aa   : > { %3391 = vmatprep.subr.bf16.mxu0 %v3895_v0 }
 0x4c7   : > { %v2081_v27 = vpop.xlane.xlu0 %2080 }
 0x4c8   : > { %3611 = vrcp.f32 %v2081_v27 }
 0x4d2   : > { %v3612_v20 = vpop.eup %3611 }
 0x4d3   : > { %v2115_v32 = vmul.f32 %v3612_v20, %v4621_v29 }
 0x4d5   : > { %v2124_v33 = vpack.c.bf16 %v2116_v30, %v2115_v32 }
 0x4d7   : > { %3386 = vmatmul.mubr.msk.bf16.vlgmr.msra.gmra.mrb[40].mxu1 %vm1564_vm3, %v2124_v33 }
 0x559   : > { %v2174_v35 = vpop.f32.mrb[16].mxu0 }
 0x55a   : > { %v3345_v36 = vpop.f32.mrb[17].mxu0 }
 0x55b   : > { %v2177_v38 = vpop.f32.mrb[18].mxu0 }
 0x55c   : > { %v2510_v40 = vpack.c.bf16 %v2177_v38, %v2174_v35  ;;  %v3346_v16 = vpop.f32.mrb[19].mxu0 }
 0x55e   : > { %v2522_v17 = vshrl.u32 %v2510_v40, 16 }
 0x561   : > { %v2221_v24 = vpop.f32.mrb[28].mxu1 }
 0x562   : > { %v3351_v41 = vpop.f32.mrb[29].mxu1 }
 0x563   : > { %v2224_v12 = vpop.f32.mrb[30].mxu1 }
 0x564   : > { %v2511_v43 = vpack.c.bf16 %v2224_v12, %v2221_v24  ;;  %v3352_v45 = vpop.f32.mrb[31].mxu1 }
 0x566   : > { %v2520_v46 = vpack.i.b16 %v2511_v43, %v2510_v40  ;;  %v2523_v29 = vshrl.u32 %v2511_v43, 16 }
 0x567   : > { %v2268_v47 = vpop.f32.mrb[20].mxu0 }
 0x568   : > { %v2524_v55 = vpack.i.b16 %v2523_v29, %v2522_v17  ;;  %v3357_v42 = vpop.f32.mrb[21].mxu0 }
 0x569   : > { %v2271_v52 = vpop.f32.mrb[22].mxu0 }
 0x56a   : > { %v2512_v31 = vpack.c.bf16 %v2271_v52, %v2268_v47  ;;  %v3358_v37 = vpop.f32.mrb[23].mxu0 }
 0x56c   : > { %v2530_v59 = vshrl.u32 %v2512_v31, 16 }
 0x56f   : > { %v2315_v53 = vpop.f32.mrb[32].mxu1 }
 0x570   : > { %v3363_v54 = vpop.f32.mrb[33].mxu1 }
 0x571   : > { %v2318_v56 = vpop.f32.mrb[34].mxu1 }
 0x572   : > { %v2513_v23 = vpack.c.bf16 %v2318_v56, %v2315_v53  ;;  %v3364_v63 = vpop.f32.mrb[35].mxu1 }
 0x573   : > { %v2362_v57 = vpop.f32.mrb[24].mxu0 }
 0x574   : > { %v2528_v39 = vpack.i.b16 %v2513_v23, %v2512_v31  ;;  %v2531_v49 = vshrl.u32 %v2513_v23, 16  ;;  %v3369_v18 = vpop.f32.mrb[25].mxu0 }
 0x575   : > { %v2365_v60 = vpop.f32.mrb[26].mxu0 }
 0x576   : > { %v2532_v48 = vpack.i.b16 %v2531_v49, %v2530_v59  ;;  %v2514_v2 = vpack.c.bf16 %v2365_v60, %v2362_v57  ;;  %v3370_v4 = vpop.f32.mrb[27].mxu0 }
 0x577   : > { %v2409_v50 = vpop.f32.mrb[36].mxu1 }
 0x578   : > { %v3375_v5 = vpop.f32.mrb[37].mxu1  ;;  %v2538_v9 = vshrl.u32 %v2514_v2, 16 }
 0x579   : > { %v2412_v6 = vpop.f32.mrb[38].mxu1 }
 0x57a   : > { %v2515_v28 = vpack.c.bf16 %v2412_v6, %v2409_v50  ;;  %v3376_v8 = vpop.f32.mrb[39].mxu1 }
 0x57b   : > { %v2456_v62 = vpop.f32.mrb[28].mxu0 }
 0x57c   : > { %v2536_v61 = vpack.i.b16 %v2515_v28, %v2514_v2  ;;  %v2539_v3 = vshrl.u32 %v2515_v28, 16  ;;  %v3381_v58 = vpop.f32.mrb[29].mxu0 }
 0x57d   : > { %v2459_v1 = vpop.f32.mrb[30].mxu0 }
 0x57e   : > { %v2540_v7 = vpack.i.b16 %v2539_v3, %v2538_v9  ;;  %v2550_v15 = vcombine.low %v2520_v46, %v2536_v61  ;;  %v2551_v19 = vcombine.high %v2520_v46, %v2536_v61  ;;  %v2516_v11 = vpack.c.bf16 %v2459_v1, %v2456_v62  ;;  %v3382_v21 = vpop.f32.mrb[31].mxu0  ;;  %v3546_v1 = vld [vmem:[#allocation13 + $0x8] sm:$0xff]  }
 0x57f   : > { %3392 = vmatpush3.bf16.msra.mxu0 %v3546_v1 }
 0x580   : > { %v2618_v22 = vcombine.low %v2524_v55, %v2540_v7  ;;  %v2619_v10 = vcombine.high %v2524_v55, %v2540_v7  ;;  %v2546_v20 = vshrl.u32 %v2516_v11, 16  ;;  %v2558_v36 = vrot.slane %v2550_v15, %v4337_v44  ;;  %3393 = vmatprep.subr.bf16.mxu0 %v3895_v0 }
 0x581   : > { %v2565_v38 = vrot.slane %v2551_v19, %v4337_v44 }
 0x582   : > { %v2626_v46 = vrot.slane %v2618_v22, %v4337_v44  ;;  %v2633_v29 = vrot.slane %v2619_v10, %v4337_v44 }
 0x5aa   : > { %v2503_v14 = vpop.f32.mrb[40].mxu1 }
 0x5ab   : > { %v3387_v25 = vpop.f32.mrb[41].mxu1 }
 0x5ac   : > { %v2506_v26 = vpop.f32.mrb[42].mxu1 }
 0x5ad   : > { %v2517_v27 = vpack.c.bf16 %v2506_v26, %v2503_v14  ;;  %v3388_v13 = vpop.f32.mrb[43].mxu1 }
 0x5af   : > { %v2544_v30 = vpack.i.b16 %v2517_v27, %v2516_v11  ;;  %v2547_v32 = vshrl.u32 %v2517_v27, 16 }
 0x5b1   : > { %v2548_v33 = vpack.i.b16 %v2547_v32, %v2546_v20  ;;  %v2566_v34 = vcombine.low %v2528_v39, %v2544_v30  ;;  %v2567_v35 = vcombine.high %v2528_v39, %v2544_v30 }
 0x5b3   : > { %v2574_v40 = vrot.slane %v2566_v34, %v4337_v44  ;;  %v2581_v16 = vrot.slane %v2567_v35, %v4337_v44  ;;  %v2634_v24 = vcombine.low %v2532_v48, %v2548_v33  ;;  %v2635_v41 = vcombine.high %v2532_v48, %v2548_v33 }
 0x5b5   : > { %v2582_v12 = vcombine.low %v2558_v36, %v2574_v40  ;;  %v2583_v43 = vcombine.high %v2558_v36, %v2574_v40  ;;  %v2598_v45 = vcombine.low %v2565_v38, %v2581_v16  ;;  %v2599_v17 = vcombine.high %v2565_v38, %v2581_v16 }
 0x5b6   : > { %v2642_v47 = vrot.slane %v2634_v24, %v4337_v44  ;;  %v2649_v55 = vrot.slane %v2635_v41, %v4337_v44 }
 0x5b7   : > { %v2590_v42 = vrot.slane %v2582_v12, %v4341_v51  ;;  %v2597_v52 = vrot.slane %v2583_v43, %v4341_v51  ;;  %v2606_v31 = vrot.slane %v2598_v45, %v4341_v51  ;;  %v2613_v37 = vrot.slane %v2599_v17, %v4341_v51 }
 0x5b8   : > { %v2650_v53 = vcombine.low %v2626_v46, %v2642_v47  ;;  %v2651_v54 = vcombine.high %v2626_v46, %v2642_v47  ;;  %v2666_v56 = vcombine.low %v2633_v29, %v2649_v55  ;;  %v2667_v23 = vcombine.high %v2633_v29, %v2649_v55  ;;  %v3548_v46 = vld [vmem:[#allocation13 + $0x18] sm:$0xff]  }
 0x5b9   : > { %v2686_v63 = vcombine.low %v2590_v42, %v2597_v52  ;;  %v3188_v57 = vcombine.high %v2590_v42, %v2597_v52  ;;  %v2702_v59 = vcombine.low %v2606_v31, %v2613_v37  ;;  %v3189_v39 = vcombine.high %v2606_v31, %v2613_v37 }
 0x5ba   : > { %v2658_v49 = vrot.slane %v2650_v53, %v4341_v51  ;;  %v2665_v18 = vrot.slane %v2651_v54, %v4341_v51  ;;  %v2674_v60 = vrot.slane %v2666_v56, %v4341_v51  ;;  %v2681_v48 = vrot.slane %v2667_v23, %v4341_v51 }
 0x5bb   : > { %v2693_v2 = vrot.slane %v2686_v63, %v4337_v44  ;;  %v2701_v4 = vrot.slane %v3188_v57, %v4337_v44  ;;  %v2709_v50 = vrot.slane %v2702_v59, %v4337_v44  ;;  %v2717_v5 = vrot.slane %v3189_v39, %v4337_v44 }
 0x5bc   : > { %v2754_v6 = vcombine.low %v2658_v49, %v2665_v18  ;;  %v3190_v28 = vcombine.high %v2658_v49, %v2665_v18  ;;  %v2770_v8 = vcombine.low %v2674_v60, %v2681_v48  ;;  %v3191_v62 = vcombine.high %v2674_v60, %v2681_v48 }
 0x5bd   : > { %v2718_v9 = vcombine.low %v2693_v2, %v2701_v4  ;;  %v2734_v61 = vcombine.low %v2709_v50, %v2717_v5  ;;  %v2719_v3 = vcombine.high %v2693_v2, %v2701_v4  ;;  %v2735_v58 = vcombine.high %v2709_v50, %v2717_v5 }
 0x5be   : > { %v2761_v7 = vrot.slane %v2754_v6, %v4337_v44  ;;  %v2769_v15 = vrot.slane %v3190_v28, %v4337_v44  ;;  %v2777_v19 = vrot.slane %v2770_v8, %v4337_v44  ;;  %v2785_v11 = vrot.slane %v3191_v62, %v4337_v44  ;;  %v3547_v44 = vld [vmem:[#allocation13 + $0x10] sm:$0xff]  }
 0x5bf   : > { %v2726_v21 = vrot.slane %v2718_v9, %v4341_v51  ;;  %v2742_v22 = vrot.slane %v2734_v61, %v4341_v51  ;;  %v2733_v10 = vrot.slane %v2719_v3, %v4341_v51  ;;  %v2749_v14 = vrot.slane %v2735_v58, %v4341_v51  ;;  %3394 = vmatpush3.bf16.msra.mxu0 %v3547_v44  ;;  %v3192_v28 = vld [vmem:[%s4859_s28] ss:$0 sm:$0xff] }
 0x5c0   : > { %v2786_v25 = vcombine.low %v2761_v7, %v2769_v15  ;;  %v2802_v26 = vcombine.low %v2777_v19, %v2785_v11  ;;  %v2787_v27 = vcombine.high %v2761_v7, %v2769_v15  ;;  %v2803_v13 = vcombine.high %v2777_v19, %v2785_v11  ;;  %3395 = vmatprep.subr.bf16.mxu0 %v3895_v0 }
 0x5c1   : > { %v2751_v20 = vcombine.high %v2726_v21, %v2742_v22  ;;  %v2750_v30 = vcombine.low %v2726_v21, %v2742_v22  ;;  %v2752_v32 = vcombine.low %v2733_v10, %v2749_v14  ;;  %v2753_v33 = vcombine.high %v2733_v10, %v2749_v14 }
 0x5c2   : > { %v2794_v34 = vrot.slane %v2786_v25, %v4341_v51  ;;  %v2810_v35 = vrot.slane %v2802_v26, %v4341_v51  ;;  %v2801_v36 = vrot.slane %v2787_v27, %v4341_v51  ;;  %v2817_v38 = vrot.slane %v2803_v13, %v4341_v51 }
 0x5c3   : > { %v2825_v12 = vshrl.u32 %v2750_v30, 16  ;;  %v2831_v43 = vshrl.u32 %v2751_v20, 16  ;;  %v2837_v45 = vshrl.u32 %v2752_v32, 16  ;;  %v2843_v17 = vshrl.u32 %v2753_v33, 16  ;;  %3396 = vmatpush3.bf16.msra.mxu0 %v3548_v46 }
 0x5c4   : > { %v2819_v40 = vcombine.high %v2794_v34, %v2810_v35  ;;  %v2818_v16 = vcombine.low %v2794_v34, %v2810_v35  ;;  %v2820_v24 = vcombine.low %v2801_v36, %v2817_v38  ;;  %v2821_v41 = vcombine.high %v2801_v36, %v2817_v38 }
 0x5c6   : > { %v2830_v29 = vpack.i.b16 %v2819_v40, %v2751_v20  ;;  %v2826_v47 = vshrl.u32 %v2818_v16, 16  ;;  %v2832_v55 = vshrl.u32 %v2819_v40, 16  ;;  %v2836_v42 = vpack.i.b16 %v2820_v24, %v2752_v32 }
 0x5c7   : > { %v2838_v52 = vshrl.u32 %v2820_v24, 16  ;;  %v2842_v31 = vpack.i.b16 %v2821_v41, %v2753_v33  ;;  %v2844_v37 = vshrl.u32 %v2821_v41, 16  ;;  %v2824_v51 = vpack.i.b16 %v2818_v16, %v2750_v30 }
 0x5c8   : > { %2848 = vrot.lane.b32.xlu1 %v2830_v29, %s3907_s2  ;;  %v2827_v53 = vpack.i.b16 %v2826_v47, %v2825_v12  ;;  %v2833_v54 = vpack.i.b16 %v2832_v55, %v2831_v43  ;;  %s3785_s2 = scalar_lea.vmem %s4752_s7, 256 }
 0x5c9   : > { %v2839_v56 = vpack.i.b16 %v2838_v52, %v2837_v45  ;;  %v2845_v0 = vpack.i.b16 %v2844_v37, %v2843_v17  ;;  %p3786_p13 = scmp.ne.s32.totalorder %s4752_s7, %s3785_s2 }
 0x5ca   : > { %2846 = vrot.lane.b32.xlu0 %v2827_v53, %s3908_s4 }
 0x5cb   : > { %p3787_p1 = pnand %p3786_p13, %p4861_p4 }
 0x5cc   : > { %2850 = vrot.lane.b32.xlu1 %v2833_v54, %s3909_s23  ;;  %s3914_s23 = smov [#allocation15]  }
 0x5cd   : > { %p3788_p8 = pneg %p3787_p1 }
 0x5ce   : > { %2852 = vrot.lane.b32.xlu0 %v2836_v42, %s3910_s30  ;;  %s3789_s30 = sshll.u32 %s3914_s23, 4  ;;  %s3790_s30 = int_to_ptr.vmem [resolvable:$false] %s3789_s30 }
 0x5cf   : > { %p3792_p3 = scmp.lt.s32.totalorder %s4752_s7, %s3790_s30 }
 0x5d0   : > { %2854 = vrot.lane.b32.xlu1 %v2839_v56, %s3911_s19  ;;  %s3791_s19 = scalar_lea.vmem %s3790_s30, 512 }
 0x5d1   : > { %p3793_p10 = scmp.lt.s32.totalorder %s3791_s19, %s3785_s2 }
 0x5d2   : > { %2856 = vrot.lane.b32.xlu0 %v2842_v31, %s3912_s21 }
 0x5d3   : > { %p3794_p6 = por %p3793_p10, %p3792_p3 }
 0x5d4   : > { %2858 = vrot.lane.b32.xlu1 %v2845_v0, %s3913_s26 }
 0x5d5   : > { %p3795_p5 = pnand %p3794_p6, %p3788_p8 }
 0x63a   : > { %v2849_v23 = vpop.permute.xlu1 %2848 }
 0x63c   : > { %v2847_v63 = vpop.permute.xlu0 %2846 }
 0x63d   : > { %v2862_v57 = vsel %vm1564_vm3, %v2824_v51, %v2847_v63 }
 0x63e   : > { %v2851_v59 = vpop.permute.xlu1 %2850  ;;  %v2865_v39 = vsel %vm2863_vm5, %v2862_v57, %v2849_v23 }
 0x63f   : > { %v2868_v49 = vsel %vm2866_vm6, %v2865_v39, %v2851_v59 }
 0x640   : > { %v2853_v18 = vpop.permute.xlu0 %2852 }
 0x641   : > { %v2871_v60 = vsel %vm2869_vm7, %v2868_v49, %v2853_v18 }
 0x642   : > { %v2855_v48 = vpop.permute.xlu1 %2854 }
 0x643   : > { %v2874_v2 = vsel %vm2872_vm8, %v2871_v60, %v2855_v48 }
 0x644   : > { %v2857_v4 = vpop.permute.xlu0 %2856 }
 0x645   : > { %v2877_v50 = vsel %vm2875_vm9, %v2874_v2, %v2857_v4 }
 0x646   : > { %v2859_v5 = vpop.permute.xlu1 %2858 }
 0x647   : > { %v2880_v6 = vsel %vm2878_vm10, %v2877_v50, %v2859_v5 }
 0x648   : > { %3398 = vmatmul.mubr.msk.bf16.vlgmr.msra.gmra.mrb[32].mxu0 %vm539_vm1, %v2880_v6 }
 0x71b   : > { %v2956_v8 = vpop.f32.mrb[32].mxu0 }
 0x71c   : > { %v2957_v62 = vadd.f32 %v3192_v28, %v2956_v8  ;;  %v3399_v9 = vpop.f32.mrb[33].mxu0 }
 0x71d   : > { %v2959_v61 = vpop.f32.mrb[34].mxu0 }
 0x71e   : > { %2963 = vst.msk [vmem:[%s490_s0] sm:$0xff] %vm539_vm1, %v2957_v62  ;;  %v2960_v3 = vadd.f32 %v3192_v28, %v2959_v61  ;;  %v3400_v58 = vpop.f32.mrb[35].mxu0 }
 0x720   : > { %2964 = vst.msk [vmem:[%s490_s0 + $0x8] sm:$0xff] %vm539_vm1, %v2960_v3 }
 0x721   : > { %3798 = shalt.err (!%p3795_p5)
}
 0x722   : > { %s3799_s21 = scalar_lea.hbm %s4758_s22, 256  ;;  %s3803_s29 = scalar_lea.hbm %s4860_s27, 512 }
 0x723   : > { %p3800_p7 = scmp.ne.s32.totalorder %s4758_s22, %s3799_s21  ;;  %p3804_p9 = scmp.lt.u32.totalorder %s4758_s22, %s4860_s27 }
 0x724   : > { %p3805_p0 = scmp.lt.u32.totalorder %s3803_s29, %s3799_s21  ;;  %p3807_p13 = scmp.lt.u32.totalorder %s3799_s21, %s4758_s22 }
 0x725   : > { %p3801_p12 = pnand %p3800_p7, %p4861_p4 }
 0x726   : > { %p3806_p2 = por %p3805_p0, %p3804_p9 }
 0x727   : > { %p3802_p11 = pneg %p3801_p12 }
 0x728   : > { %p3808_p1 = por %p3807_p13, %p3806_p2 }
 0x72a   : > { %p3809_p8 = pnand %p3808_p1, %p3802_p11 }
 0x72c   : > { %3812 = shalt.err (!%p3809_p8)
}
 0x72d   : > { %s3915_s0 = smov 128  }
 0x72e   : > { %3421 = dma.vmem_to_hbm [thread:$0]  (%p4861_p4), %s4752_s7, 256, %s4758_s22, %s2966_s16, %s3915_s0, %s3915_s0, %s3908_s4  }
 0x72f PF: > { %s4862_s11 = sld [smem:[#allocation22_spill]]  ;;  %s4863_s12 = sld [smem:[#allocation24_spill]] }
 0x730   : > { %p4865_p10 = scmp.ge.s32.totalorder %s3883_s18, 2 }
 0x735   : > { %s2996_s24 = sand.u32 1, %s4862_s11   ;;  %p4864_p3 = scmp.ne.s32.totalorder %s4863_s12, 0 }
 0x736   : > { %s2997_s2 = scalar_lea.sflag [#allocation6], %s2996_s24 }
 0x737   : > { %p3444_p6 = pnand %p4865_p10, %p4864_p3 }
 0x739   : > { %3858 = dma.done.wait (!%p3444_p6), %s2997_s2, 256  }
 0x73a   : > { %3860 = vsyncadd (!%p3444_p6), %s2997_s2, 4294967040  ;;  %s31_s18 = sadd.s32 1, %s3883_s18   ;;  %s4866_s9 = smov %s4873_s13 }
 0x73b   : > { %p28_p5 = scmp.ge.s32.totalorder %s31_s18, 4   ;;  %s4867_s13 = smov %s3867_s14 }
 0x73c   : > { %s4868_s14 = smov %s3871_s15  ;;  %s4869_s15 = smov %s4163_s10 }
 0x73d   : > { %s4870_s16 = smov %s3879_s17  ;;  %s4871_s17 = smov %s4866_s9 }
 0x73e   :  { %30 = sbr.rel (!%p28_p5) target bundleno = 18 (0x12), region = 138 }
 0x745   :  { %3002 = vsyncpa [#allocation5], 1 }
 0x746   :  { %3004 = vsyncpa [#allocation5 + $0x1], 1 }
 0x747   :  { %3005 = vsyncpa [#allocation8], 1 }
 0x748   :  { %3007 = vsyncpa [#allocation8 + $0x1], 1 }
 0x749   :  { %3008 = vsyncpa [#allocation11], 1 }
 0x74a   :  { %3009 = vsyncpa [#allocation14], 1 }
 0x74b   :  { %3010 = vsyncpa [#allocation6], 1 }
 0x74c   :  { %3012 = vsyncpa [#allocation6 + $0x1], 1 }

// kernel: tpu_custom_call.1
= control target key start
LH: loop header
LB: loop body
LE: loop exit
PB: predicated region body
PF: predicated region fallthrough
CT: control target
= control target key end

     0   :  { %s4809_s0 = inlined_call_operand.hbm [shape: f32[2,16,64], index: 0, kind: input, shape index: {}]   ;;  %s4810_s1 = inlined_call_operand.hbm [shape: f32[2,8,64], index: 1, kind: input, shape index: {}]   ;;  %s4811_s2 = inlined_call_operand.hbm [shape: bf16[64,64], index: 2, kind: input, shape index: {}]   ;;  %s4812_s3 = inlined_call_operand.vmem [shape: f32[1,64], index: 3, kind: input, shape index: {}]   ;;  %s4813_s4 = inlined_call_operand.hbm [shape: bf16[64,64], index: 4, kind: input, shape index: {}]   ;;  %s4814_s5 = inlined_call_operand.vmem [shape: f32[1,64], index: 5, kind: input, shape index: {}]   ;;  %s4815_s6 = inlined_call_operand.hbm [shape: bf16[64,64], index: 6, kind: input, shape index: {}]   ;;  %s4816_s7 = inlined_call_operand.vmem [shape: f32[1,64], index: 7, kind: input, shape index: {}]   ;;  %s4817_s8 = inlined_call_operand.hbm [shape: bf16[64,64], index: 8, kind: input, shape index: {}]   ;;  %s4818_s9 = inlined_call_operand.vmem [shape: f32[1,64], index: 9, kind: input, shape index: {}]   ;;  %s4819_s10 = inlined_call_operand.hbm [shape: f32[2,16,64], index: 10, kind: output, shape index: {}]  }
   0x1   :  { %4827 = sst [smem:[#allocation25_spill]] %s4809_s0 }
   0x2   :  { %4828 = sst [smem:[#allocation26_spill]] %s4811_s2 }
   0x3   :  { %4829 = sst [smem:[#allocation27_spill]] %s4813_s4 }
   0x4   :  { %4830 = sst [smem:[#allocation28_spill]] %s4815_s6 }
   0x5   :  { %4831 = sst [smem:[#allocation29_spill]] %s4816_s7 }
   0x6   :  { %4832 = sst [smem:[#allocation30_spill]] %s4818_s9 }
   0x7   :  { %4833 = sst [smem:[#allocation31_spill]] %s4819_s10 }
   0x8   :  { %15 = vsyncpa [#allocation5], 0 }
   0x9   :  { %17 = vsyncpa [#allocation5 + $0x1], 0 }
   0xa   :  { %18 = vsyncpa [#allocation8], 0 }
   0xb   :  { %20 = vsyncpa [#allocation8 + $0x1], 0 }
   0xc   :  { %21 = vsyncpa [#allocation11], 0 }
   0xd   :  { %22 = vsyncpa [#allocation14], 0 }
   0xe   :  { %23 = vsyncpa [#allocation6], 0 }
   0xf   :  { %25 = vsyncpa [#allocation6 + $0x1], 0  ;;  %s3971_s13 = smov 0   ;;  %s3973_s14 = smov 0  }
  0x10   :  { %s3975_s15 = smov 0   ;;  %s3977_s16 = smov 0  }
  0x11   :  { %s3979_s17 = smov 0   ;;  %s3981_s18 = smov 0  }
  0x12 LB: > { %4834 = sst [smem:[#allocation22_spill]] %s3863_s13  ;;  %s4002_s19 = sadd.s32 4294967295, %s3883_s18   ;;  %s3883_s18 = sphi %s3981_s18, %s31_s18   ;;  %s3879_s17 = sphi %s3979_s17, %s4871_s17   ;;  %s3875_s16 = sphi %s3977_s16, %s4870_s16   ;;  %s3871_s15 = sphi %s3975_s15, %s4869_s15   ;;  %s3867_s14 = sphi %s3973_s14, %s4868_s14   ;;  %s3863_s13 = sphi %s3971_s13, %s4867_s13  }
  0x13   : > { %4835 = sst [smem:[#allocation23_spill]] %s3875_s16  ;;  %s3130_s20 = sadd.s32 4294967294, %s3883_s18  }
  0x14   : > { %p65_p0 = scmp.ne.s32.totalorder %s3867_s14, %s3863_s13  ;;  %p4822_p1 = scmp.eq.s32.totalorder %s4002_s19, 0 }
  0x15   : > { %p291_p3 = scmp.eq.s32.totalorder %s3130_s20, 1  ;;  %p3131_p5 = scmp.ge.s32.totalorder %s3883_s18, 1 }
  0x16   : > { %p4011_p4 = por %p4822_p1, %p65_p0  ;;  %p298_p7 = scmp.lt.s32.totalorder %s3883_s18, 3 }
  0x17   : > { %p4016_p6 = por %p291_p3, %p65_p0  ;;  %s3885_s24 = smov [#allocation9]  }
  0x18   : > { %s4836_s21 = scalar_select %p4011_p4, 1, 0 }
  0x19   : > { %s4837_s22 = scalar_select %p4016_p6, 1, 0 }
  0x1a   : > { %p4021_p8 = pnand %p3131_p5, %p298_p7  ;;  %s310_s25 = sshll.u32 %s3885_s24, 4  ;;  %s4025_s25 = int_to_ptr.vmem [resolvable:$true] %s310_s25 }
  0x1b   : > { %4838 = sst [smem:[#allocation24_spill]] %s4837_s22  ;;  %s3886_s27 = smov [#allocation10]  }
  0x1c   : > { %s4839_s23 = scalar_select %p4021_p8, 1, 0 }
  0x1d   : > { %p3423_p9 = pneg %p4021_p8  ;;  %s326_s28 = sshll.u32 %s3886_s27, 4  ;;  %s4036_s28 = int_to_ptr.vmem [resolvable:$true] %s326_s28 }
  0x1e   : > { %s3887_s29 = smov [#allocation12]   ;;  %s4841_s2 = sld [smem:[#allocation26_spill]] }
  0x1f   : > { %p4032_p11 = pnand %p3423_p9, %p4822_p1  ;;  %s4038_s30 = sshll.u32 %s3887_s29, 4  ;;  %s343_s30 = int_to_ptr.vmem [resolvable:$true] %s4038_s30 }
  0x21   : > { %p4048_p13 = pneg %p4032_p11 }
  0x24   : > { %s3613_s20 = scalar_lea.hbm %s4841_s2, 512 }
  0x25   : > { %p3614_p12 = scmp.ne.s32.totalorder %s4841_s2, %s3613_s20  ;;  %p3620_p5 = scmp.lt.u32.totalorder %s3613_s20, %s4841_s2 }
  0x27   : > { %p3616_p0 = pnand %p4048_p13, %p3614_p12 }
  0x29   : > { %p3617_p3 = pneg %p3616_p0 }
  0x2b   : > { %p3622_p7 = pnand %p3620_p5, %p3617_p3 }
  0x2d   : > { %3625 = shalt.err (!%p3622_p7)
}
  0x2e   : > { %s3626_s22 = scalar_lea.vmem %s4025_s25, 512  ;;  %p3634_p2 = scmp.lt.s32.totalorder %s4025_s25, %s4025_s25 }
  0x2f   : > { %p3627_p9 = scmp.ne.s32.totalorder %s4025_s25, %s3626_s22  ;;  %p3635_p6 = scmp.lt.s32.totalorder %s3626_s22, %s3626_s22 }
  0x31   : > { %p3629_p10 = pnand %p3627_p9, %p4048_p13  ;;  %p3636_p12 = por %p3635_p6, %p3634_p2 }
  0x33   : > { %p3630_p1 = pneg %p3629_p10 }
  0x35   : > { %p3637_p0 = pnand %p3636_p12, %p3630_p1 }
  0x37   : > { %3640 = shalt.err (!%p3637_p0)
}
  0x38   : > { %s3888_s11 = smov 64   ;;  %s3889_s12 = smov 4  }
  0x39   : > { %3426 = dma.hbm_to_vmem [thread:$0]  (!%p4032_p11), %s4841_s2, 512, %s4025_s25, [#allocation8], %s3888_s11, %s3888_s11, %s3889_s12  }
  0x3a   : > { %s4843_s4 = sld [smem:[#allocation27_spill]] }
  0x40   : > { %s3641_s22 = scalar_lea.hbm %s4843_s4, 512 }
  0x41   : > { %p3642_p1 = scmp.ne.s32.totalorder %s4843_s4, %s3641_s22  ;;  %p3648_p10 = scmp.lt.u32.totalorder %s3641_s22, %s4843_s4 }
  0x43   : > { %p3644_p2 = pnand %p3642_p1, %p4048_p13 }
  0x45   : > { %p3645_p6 = pneg %p3644_p2 }
  0x47   : > { %p3650_p3 = pnand %p3648_p10, %p3645_p6 }
  0x49   : > { %3653 = shalt.err (!%p3650_p3)
}
  0x4a   : > { %s3654_s25 = scalar_lea.vmem %s4036_s28, 512  ;;  %p3662_p12 = scmp.lt.s32.totalorder %s4036_s28, %s4036_s28 }
  0x4b   : > { %p3655_p5 = scmp.ne.s32.totalorder %s4036_s28, %s3654_s25  ;;  %p3663_p0 = scmp.lt.s32.totalorder %s3654_s25, %s3654_s25 }
  0x4d   : > { %p3657_p7 = pnand %p3655_p5, %p4048_p13  ;;  %p3664_p1 = por %p3663_p0, %p3662_p12 }
  0x4f   : > { %p3658_p9 = pneg %p3657_p7 }
  0x51   : > { %p3665_p2 = pnand %p3664_p1, %p3658_p9 }
  0x53   : > { %3668 = shalt.err (!%p3665_p2)
}
  0x54   : > { %3429 = dma.hbm_to_vmem [thread:$0]  (!%p4032_p11), %s4843_s4, 512, %s4036_s28, [#allocation11], %s3888_s11, %s3888_s11, %s3889_s12  }
  0x55   : > { %s4844_s6 = sld [smem:[#allocation28_spill]] }
  0x5b   : > { %s3669_s20 = scalar_lea.hbm %s4844_s6, 512 }
  0x5c   : > { %p3670_p6 = scmp.ne.s32.totalorder %s4844_s6, %s3669_s20  ;;  %p3676_p5 = scmp.lt.u32.totalorder %s3669_s20, %s4844_s6 }
  0x5e   : > { %p3672_p10 = pnand %p3670_p6, %p4048_p13 }
  0x60   : > { %p3673_p3 = pneg %p3672_p10 }
  0x62   : > { %p3678_p7 = pnand %p3676_p5, %p3673_p3 }
  0x64   : > { %3681 = shalt.err (!%p3678_p7)
}
  0x65   : > { %s3682_s25 = scalar_lea.vmem %s343_s30, 512  ;;  %p3690_p1 = scmp.lt.s32.totalorder %s343_s30, %s343_s30 }
  0x66   : > { %p3683_p9 = scmp.ne.s32.totalorder %s343_s30, %s3682_s25  ;;  %p3691_p2 = scmp.lt.s32.totalorder %s3682_s25, %s3682_s25 }
  0x68   : > { %p3685_p12 = pnand %p3683_p9, %p4048_p13  ;;  %p3692_p4 = por %p3691_p2, %p3690_p1 }
  0x6a   : > { %p3686_p0 = pneg %p3685_p12 }
  0x6c   : > { %p3693_p8 = pnand %p3692_p4, %p3686_p0 }
  0x6e   : > { %3696 = shalt.err (!%p3693_p8)
}
  0x6f   : > { %3432 = dma.hbm_to_vmem [thread:$0]  (!%p4032_p11), %s4844_s6, 512, %s343_s30, [#allocation11], %s3888_s11, %s3888_s11, %s3889_s12  }
  0x70   : > { %s3890_s9 = smov [#allocation13]   ;;  %s3697_s24 = scalar_lea.hbm %s4817_s8, 512 }
  0x71   : > { %s358_s10 = sshll.u32 %s3890_s9, 4  ;;  %p3698_p4 = scmp.ne.s32.totalorder %s4817_s8, %s3697_s24  ;;  %s359_s10 = int_to_ptr.vmem [resolvable:$true] %s358_s10 }
  0x72   : > { %p3704_p10 = scmp.lt.u32.totalorder %s3697_s24, %s4817_s8 }
  0x73   : > { %p3700_p8 = pnand %p3698_p4, %p4048_p13 }
  0x75   : > { %p3701_p6 = pneg %p3700_p8 }
  0x77   : > { %p3706_p3 = pnand %p3704_p10, %p3701_p6 }
  0x79   : > { %3709 = shalt.err (!%p3706_p3)
}
  0x7a   : > { %s3710_s30 = scalar_lea.vmem %s359_s10, 512  ;;  %p3718_p12 = scmp.lt.s32.totalorder %s359_s10, %s359_s10 }
  0x7b   : > { %p3711_p5 = scmp.ne.s32.totalorder %s359_s10, %s3710_s30  ;;  %p3719_p0 = scmp.lt.s32.totalorder %s3710_s30, %s3710_s30 }
  0x7d   : > { %p3713_p7 = pnand %p3711_p5, %p4048_p13  ;;  %p3720_p1 = por %p3719_p0, %p3718_p12 }
  0x7f   : > { %p3714_p9 = pneg %p3713_p7 }
  0x81   : > { %p3721_p2 = pnand %p3720_p1, %p3714_p9 }
  0x83   : > { %3724 = shalt.err (!%p3721_p2)
}
  0x84   : > { %3435 = dma.hbm_to_vmem [thread:$0]  (!%p4032_p11), %s4817_s8, 512, %s359_s10, [#allocation14], %s3888_s11, %s3888_s11, %s3889_s12  }
  0x85   : > { %s43_s13 = sadd.s32 1, %s3879_s17  ;;  %s52_s26 = sadd.s32 1, %s3871_s15 }
  0x86   : > { %p45_p13 = scmp.ge.s32.totalorder %s43_s13, 2  ;;  %p59_p4 = scmp.ne.s32.totalorder %s3871_s15, %s3867_s14 }
  0x87   : > { %p60_p8 = scmp.eq.s32.totalorder %s3883_s18, 0  ;;  %p3451_p6 = scmp.lt.s32.totalorder %s3883_s18, 2 }
  0x88   : > { %s4873_s13 = smov (%p45_p13, %s43_s13), 0  ;;  %p4845_p3 = scmp.eq.s32.totalorder %s4002_s19, 1 }
  0x89   : > { %p61_p10 = por %p60_p8, %p59_p4  ;;  %s47_s16 = ssub.s32 %s3879_s17, %s4873_s13 }
  0x8a   : > { %p4151_p5 = por %p4845_p3, %p59_p4  ;;  %s4158_s20 = sand.u32 1, %s3871_s15  }
  0x8b   : > { %p50_p11 = scmp.eq.s32.totalorder %s47_s16, 0  ;;  %s3137_s11 = sshll.u32 %s4158_s20, 4 }
  0x8c   : > { %s4846_s9 = scalar_select %p4151_p5, 1, 0 }
  0x8d   : > { %s3203_s12 = sshll.u32 %s3879_s17, 8  ;;  %s4847_s0 = sld [smem:[#allocation25_spill]] }
  0x8e   : > { %s4163_s10 = scalar_select %p50_p11, %s3871_s15, %s52_s26  }
  0x8f   : > { %s379_s22 = scalar_lea.vmem [#allocation4], %s3137_s11  ;;  %p4172_p7 = pnand %p3451_p6, %p61_p10 }
  0x90   : > { %s388_s25 = sshll.u32 %s379_s22, 4  ;;  %s376_s28 = scalar_lea.sflag [#allocation5], %s4158_s20  ;;  %s4176_s25 = int_to_ptr.vmem [resolvable:$true] %s388_s25 }
  0x91   : > { %p3727_p12 = pneg %p4172_p7 }
  0x93   : > { %s4168_s29 = scalar_lea.hbm %s4847_s0, %s3203_s12  ;;  %s3730_s11 = scalar_lea.hbm %s4847_s0, 512 }
  0x94   : > { %s3725_s7 = scalar_lea.hbm %s4168_s29, 256  ;;  %p3731_p2 = scmp.lt.u32.totalorder %s4168_s29, %s4847_s0 }
  0x95   : > { %p3726_p9 = scmp.ne.s32.totalorder %s4168_s29, %s3725_s7  ;;  %p3732_p13 = scmp.lt.u32.totalorder %s3730_s11, %s3725_s7 }
  0x96   : > { %p3734_p8 = scmp.lt.u32.totalorder %s3725_s7, %s4168_s29 }
  0x97   : > { %p3728_p0 = pnand %p3727_p12, %p3726_p9  ;;  %p3733_p4 = por %p3732_p13, %p3731_p2 }
  0x99   : > { %p3729_p1 = pneg %p3728_p0  ;;  %p3735_p6 = por %p3734_p8, %p3733_p4 }
  0x9b   : > { %p3736_p10 = pnand %p3735_p6, %p3729_p1 }
  0x9d   : > { %3739 = shalt.err (!%p3736_p10)
}
  0x9e   : > { %s3740_s27 = scalar_lea.vmem %s4176_s25, 256  ;;  %s3891_s22 = smov [#allocation4]  }
  0x9f   : > { %p3741_p3 = scmp.ne.s32.totalorder %s4176_s25, %s3740_s27  ;;  %s3745_s26 = sshll.u32 %s3891_s22, 4  ;;  %s3746_s26 = int_to_ptr.vmem [resolvable:$false] %s3745_s26 }
  0xa0   : > { %s3747_s16 = scalar_lea.vmem %s3746_s26, 512  ;;  %p3748_p0 = scmp.lt.s32.totalorder %s4176_s25, %s3746_s26 }
  0xa1   : > { %p3743_p11 = pnand %p3741_p3, %p3727_p12  ;;  %p3749_p2 = scmp.lt.s32.totalorder %s3747_s16, %s3740_s27 }
  0xa3   : > { %p3744_p9 = pneg %p3743_p11  ;;  %p3750_p13 = por %p3749_p2, %p3748_p0 }
  0xa5   : > { %p3751_p4 = pnand %p3750_p13, %p3744_p9 }
  0xa7   : > { %3754 = shalt.err (!%p3751_p4)
}
  0xa8   : > { %s3892_s7 = smov 128   ;;  %s3893_s11 = smov 8  }
  0xa9   : > { %3439 = dma.hbm_to_vmem [thread:$0]  (!%p4172_p7), %s4168_s29, 256, %s4176_s25, %s376_s28, %s3892_s7, %s3892_s7, %s3893_s11  }
  0xaa   : > { %s398_s12 = sand.u32 1, %s3883_s18   ;;  %s3140_s24 = sshll.u32 %s4158_s20, 3 }
  0xab   : > { %s3141_s22 = sshll.u32 %s3879_s17, 7  ;;  %s402_s27 = scalar_lea.vmem [#allocation7], %s3140_s24 }
  0xac   : > { %s409_s26 = sshll.u32 %s402_s27, 4  ;;  %s4212_s2 = scalar_lea.hbm %s4810_s1, %s3141_s22  ;;  %s410_s26 = int_to_ptr.vmem [resolvable:$true] %s409_s26 }
  0xad   : > { %s399_s4 = scalar_lea.sflag [#allocation8], %s398_s12  ;;  %s3755_s6 = scalar_lea.hbm %s4212_s2, 128 }
  0xae   : > { %p3756_p1 = scmp.ne.s32.totalorder %s4212_s2, %s3755_s6  ;;  %s3760_s25 = scalar_lea.hbm %s4810_s1, 256 }
  0xaf   : > { %p3761_p10 = scmp.lt.u32.totalorder %s4212_s2, %s4810_s1  ;;  %p3762_p3 = scmp.lt.u32.totalorder %s3760_s25, %s3755_s6 }
  0xb0   : > { %p3758_p8 = pnand %p3756_p1, %p3727_p12  ;;  %p3764_p9 = scmp.lt.u32.totalorder %s3755_s6, %s4212_s2 }
  0xb1   : > { %p3763_p11 = por %p3762_p3, %p3761_p10 }
  0xb2   : > { %p3759_p6 = pneg %p3758_p8 }
  0xb3   : > { %p3765_p0 = por %p3764_p9, %p3763_p11 }
  0xb5   : > { %p3766_p2 = pnand %p3765_p0, %p3759_p6 }
  0xb7   : > { %3769 = shalt.err (!%p3766_p2)
}
  0xb8   : > { %s3770_s7 = scalar_lea.vmem %s410_s26, 128  ;;  %s3894_s11 = smov [#allocation7]  }
  0xb9   : > { %p3771_p13 = scmp.ne.s32.totalorder %s410_s26, %s3770_s7  ;;  %s3775_s12 = sshll.u32 %s3894_s11, 4  ;;  %s3776_s12 = int_to_ptr.vmem [resolvable:$false] %s3775_s12 }
  0xba   : > { %s3777_s24 = scalar_lea.vmem %s3776_s12, 256  ;;  %p3778_p8 = scmp.lt.s32.totalorder %s410_s26, %s3776_s12 }
  0xbb   : > { %p3773_p4 = pnand %p3771_p13, %p3727_p12  ;;  %p3779_p5 = scmp.lt.s32.totalorder %s3777_s24, %s3770_s7 }
  0xbd   : > { %p3774_p1 = pneg %p3773_p4  ;;  %p3780_p3 = por %p3779_p5, %p3778_p8 }
  0xbf   : > { %p3781_p10 = pnand %p3780_p3, %p3774_p1 }
  0xc1   : > { %3784 = shalt.err (!%p3781_p10)
}
  0xc2   : > { %3442 = dma.hbm_to_vmem [thread:$0]  (!%p4172_p7), %s4212_s2, 128, %s410_s26, %s399_s4  }
  0xc3   : > { %p4849_p6 = scmp.ne.s32.totalorder %s4839_s23, 0 }
  0xc4   : > { %s4236_s6 = sand.u32 (!%p4849_p6), 1, %s3867_s14   ;;  %p4850_p5 = scmp.ne.s32.totalorder (!%p4849_p6), %s4836_s21, 0 }
  0xc5   : > { %418 = sbr.rel (%p4849_p6) target bundleno = 1839 (0x72f), region = 60  ;;  %s3143_s22 = sshll.u32 (!%p4849_p6), %s4236_s6, 4 }
  0xc6   : > { %s421_s27 = scalar_lea.sflag (!%p4849_p6), [#allocation5], %s4236_s6  ;;  %s4242_s16 = scalar_lea.vmem (!%p4849_p6), [#allocation4], %s3143_s22 }
  0xcc   : > { %3838 = dma.done.wait (%p4850_p5), %s421_s27, 256  }
  0xcd   : > { %3840 = vsyncadd (%p4850_p5), %s421_s27, 4294967040  ;;  %s429_s2 = sand.u32 1, %s4002_s19   ;;  %s3144_s4 = sshll.u32 %s4236_s6, 3 }
  0xce   : > { %s430_s23 = scalar_lea.sflag [#allocation8], %s429_s2  ;;  %s433_s30 = scalar_lea.vmem [#allocation7], %s3144_s4 }
  0xcf   : > { %3842 = dma.done.wait (%p4850_p5), %s430_s23, 128  }
  0xd0   : > { %3844 = vsyncadd (%p4850_p5), %s430_s23, 4294967168  ;;  %p4851_p7 = scmp.eq.s32.totalorder %s4002_s19, 0 }
  0xd2   : > { %3846 = dma.done.wait (%p4851_p7), [#allocation8], 512   ;;  %p4852_p12 = pmov %p4851_p7 }
  0xd3   : > { %p4853_p11 = pmov %p4851_p7 }
  0xd4   : > { %3848 = vsyncadd (%p4852_p12), [#allocation8], 4294966784 }
  0xd5   : > { %3850 = dma.done.wait (%p4853_p11), [#allocation11], 1024   ;;  %p4854_p9 = pmov %p4851_p7 }
  0xd6   : > { %p4855_p0 = pmov %p4851_p7 }
  0xd7   : > { %3852 = vsyncadd (%p4854_p9), [#allocation11], 4294966272 }
  0xd8   : > { %3854 = dma.done.wait (%p4855_p0), [#allocation14], 512   ;;  %p4856_p2 = pmov %p4855_p0 }
  0xd9   : > { %v3895_v0 = vmov 0.0   ;;  %vm3896_vm0 = vmmov 0   ;;  %v3533_v1 = vld [vmem:[#allocation10] sm:$0xff]   ;;  %v3534_v2 = vld [vmem:[#allocation10 + $0x8] sm:$0xff]   ;;  %v3535_v3 = vld [vmem:[#allocation10 + $0x10] sm:$0xff]   ;;  %vm539_vm1 = vcmask 523264   ;;  %v689_v35 = vlaneseq }
  0xda   : > { %3856 = vsyncadd (%p4856_p2), [#allocation14], 4294966784  ;;  %3257 = vmatprep.subr.bf16.mxu0 %v3895_v0  ;;  %3265 = vmatprep.mubr.msk.bf16.mxu0 %vm3896_vm0, %v3895_v0  ;;  %v3536_v4 = vld [vmem:[#allocation10 + $0x18] sm:$0xff]   ;;  %v3537_v7 = vld [vmem:[#allocation9] sm:$0xff]   ;;  %s3897_s26 = smov 104   ;;  %s3898_s20 = smov 120  }
  0xdb   : > { %3269 = vmatprep.subr.bf16.mxu1 %v3895_v0  ;;  %3277 = vmatprep.mubr.msk.bf16.mxu1 %vm3896_vm0, %v3895_v0  ;;  %v498_v5 = vld [vmem:[%s433_s30] sm:$0xff]  ;;  %v3538_v8 = vld [vmem:[#allocation9 + $0x8] sm:$0xff]   ;;  %s3899_s29 = smov 96   ;;  %s3900_s25 = smov 112   ;;  %v3541_v24 = vld [vmem:[#allocation12] sm:$0xff]   ;;  %v690_v39 = vshrl.u32 %v689_v35, 7 }
  0xdc   : > { %3258 = vmatpush3.bf16.msra.mxu0 %v3533_v1  ;;  %v4275_v6 = vpack.c.bf16 %v498_v5, %v498_v5  ;;  %v3539_v9 = vld [vmem:[#allocation9 + $0x10] sm:$0xff]   ;;  %v3540_v10 = vld [vmem:[#allocation9 + $0x18] sm:$0xff]   ;;  %s3901_s28 = smov 80   ;;  %s3902_s0 = smov 88   ;;  %3270 = vmatpush3.bf16.msra.mxu1 %v3541_v24  ;;  %v3542_v30 = vld [vmem:[#allocation12 + $0x8] sm:$0xff]   ;;  %v3906_v62 = vmov 0  }
  0xdd   : > { %3259 = vmatprep.subr.bf16.mxu0 %v3895_v0  ;;  %v1125_v11 = vld [vmem:[%s4242_s16] sm:$0xff]  ;;  %v1126_v12 = vld [vmem:[%s4242_s16 + $0x8] sm:$0xff]  ;;  %s3903_s12 = smov 72   ;;  %3271 = vmatprep.subr.bf16.mxu1 %v3895_v0  ;;  %v3904_v33 = vmov 1983009808   ;;  %vm885_vm2 = vcmask 60416  }
  0xde   : > { %v1127_v13 = vpack.c.bf16 %v1126_v12, %v1125_v11  ;;  %v3150_v14 = vld [vmem:[%s4814_s5] ss:$0 sm:$0xff]  ;;  %v3544_v32 = vld [vmem:[#allocation12 + $0x18] sm:$0xff]   ;;  %v687_v34 = vunpack.c.l.s4 %v3904_v33  ;;  %v3905_v40 = vmov 1934713408   ;;  %vm1564_vm3 = vcmask 64512  }
  0xdf   : > { %v3162_v21 = vld [vmem:[%s4812_s3] ss:$0 sm:$0xff]  ;;  %v704_v41 = vunpack.c.l.s4 %v3905_v40  ;;  %s4857_s16 = sld [smem:[#allocation29_spill]]  ;;  %vm2136_vm4 = vcmask 1043456   ;;  %s3907_s2 = smov 16   ;;  %vm2863_vm5 = vcmask 130048  }
  0xe0   : > { %3260 = vmatpush3.bf16.msra.mxu0 %v3534_v2  ;;  %3272 = vmatpush3.bf16.msra.mxu1 %v3542_v30  ;;  %v3543_v31 = vld [vmem:[#allocation12 + $0x10] sm:$0xff]   ;;  %v688_v38 = vunpack.c.0.s8 %v687_v34  ;;  %s3908_s4 = smov 8   ;;  %s3909_s23 = smov 24   ;;  %vm2866_vm6 = vcmask 195584   ;;  %vm2869_vm7 = vcmask 261120   ;;  %vm2872_vm8 = vcmask 326656  }
  0xe1   : > { %3261 = vmatprep.subr.bf16.mxu0 %v3895_v0  ;;  %3273 = vmatprep.subr.bf16.mxu1 %v3895_v0  ;;  %v705_v46 = vunpack.c.0.s8 %v704_v41  ;;  %s3910_s30 = smov 32   ;;  %s3911_s19 = smov 40   ;;  %vm2875_vm9 = vcmask 392192   ;;  %vm2878_vm10 = vcmask 457728  }
  0xe2   : > { %v4337_v44 = vsub.s32 %v688_v38, %v690_v39  ;;  %s3912_s21 = smov 48   ;;  %s4860_s27 = sld [smem:[#allocation31_spill]] }
  0xe3   : > { %v4341_v51 = vsub.s32 %v705_v46, %v690_v39  ;;  %p4861_p4 = scmp.ne.s32.totalorder %s4846_s9, 0 }
  0xe4   : > { %3262 = vmatpush3.bf16.msra.mxu0 %v3535_v3  ;;  %3274 = vmatpush3.bf16.msra.mxu1 %v3543_v31 }
  0xe5   : > { %3263 = vmatprep.subr.bf16.mxu0 %v3895_v0  ;;  %3275 = vmatprep.subr.bf16.mxu1 %v3895_v0 }
  0xe8   : > { %3264 = vmatpush3.bf16.msra.mxu0 %v3536_v4  ;;  %3276 = vmatpush3.bf16.msra.mxu1 %v3544_v32 }
  0xe9   : > { %3281 = vmatprep.subr.bf16.mxu0 %v3895_v0  ;;  %3293 = vmatprep.subr.bf16.mxu1 %v3895_v0 }
  0xeb   : > { %3266 = vmatmul.mubr.msk.bf16.vlgmr.msra.gmra.mrb[0].mxu0 %vm539_vm1, %v4275_v6  ;;  %3278 = vmatmul.mubr.msk.bf16.vlgmr.msra.gmra.mrb[0].mxu1 %vm539_vm1, %v4275_v6 }
  0xec   : > { %3282 = vmatpush3.bf16.msra.mxu0 %v3537_v7  ;;  %3289 = vmatprep.mubr.msk.bf16.mxu0 %vm3896_vm0, %v3895_v0 }
  0xed   : > { %3283 = vmatprep.subr.bf16.mxu0 %v3895_v0  ;;  %3295 = vmatprep.mubr.msk.bf16.mxu1 %vm3896_vm0, %v3895_v0 }
  0xf0   : > { %3284 = vmatpush3.bf16.msra.mxu0 %v3538_v8 }
  0xf1   : > { %3285 = vmatprep.subr.bf16.mxu0 %v3895_v0 }
  0xf4   : > { %3286 = vmatpush3.bf16.msra.mxu0 %v3539_v9 }
  0xf5   : > { %3287 = vmatprep.subr.bf16.mxu0 %v3895_v0 }
  0xf8   : > { %3288 = vmatpush3.bf16.msra.mxu0 %v3540_v10 }
  0xf9   : > { %3317 = vmatprep.subr.bf16.mxu0 %v3895_v0 }
  0xfb   : > { %3290 = vmatmul.mubr.msk.bf16.vlgmr.msra.gmra.mrb[4].mxu0 %vm539_vm1, %v1127_v13 }
  0xfc   : > { %3319 = vmatprep.mubr.msk.bf16.mxu0 %vm3896_vm0, %v3895_v0 }
 0x1be   : > { %v577_v15 = vpop.f32.mrb[0].mxu0 }
 0x1bf   : > { %v578_v16 = vadd.f32 %v3150_v14, %v577_v15  ;;  %v3267_v17 = vpop.f32.mrb[1].mxu0 }
 0x1c0   : > { %v580_v18 = vpop.f32.mrb[2].mxu0 }
 0x1c1   : > { %v4294_v19 = vpack.c.bf16 %v578_v16, %v578_v16  ;;  %v3268_v20 = vpop.f32.mrb[3].mxu0 }
 0x1c3   : > { %670 = vrot.lane.b32.xlu1 %v4294_v19, %s3897_s26  ;;  %664 = vrot.lane.b32.xlu0 %v4294_v19, %s3898_s20 }
 0x1c7   : > { %673 = vrot.lane.b32.xlu1 %v4294_v19, %s3899_s29  ;;  %667 = vrot.lane.b32.xlu0 %v4294_v19, %s3900_s25 }
 0x1cb   : > { %679 = vrot.lane.b32.xlu1 %v4294_v19, %s3901_s28  ;;  %676 = vrot.lane.b32.xlu0 %v4294_v19, %s3902_s0 }
 0x1ce   : > { %v1205_v22 = vpop.f32.mrb[4].mxu0 }
 0x1cf   : > { %682 = vrot.lane.b32.xlu0 %v4294_v19, %s3903_s12  ;;  %v3291_v23 = vpop.f32.mrb[5].mxu0  ;;  %v1206_v26 = vadd.f32 %v3162_v21, %v1205_v22 }
 0x1d0   : > { %v1208_v25 = vpop.f32.mrb[6].mxu0 }
 0x1d1   : > { %v1209_v27 = vadd.f32 %v3162_v21, %v1208_v25  ;;  %v3292_v28 = vpop.f32.mrb[7].mxu0 }
 0x1d3   : > { %v4314_v29 = vpack.c.bf16 %v1209_v27, %v1206_v26 }
 0x1d5   : > { %1216 = vrot.lane.b32.xlu0 %v4314_v29, %s3900_s25  ;;  %1214 = vrot.lane.b32.xlu1 %v4314_v29, %s3898_s20  ;;  %v1232_v11 = vshrl.u32 %v4314_v29, 16 }
 0x1d9   : > { %1220 = vrot.lane.b32.xlu0 %v4314_v29, %s3899_s29  ;;  %1218 = vrot.lane.b32.xlu1 %v4314_v29, %s3897_s26 }
 0x1dd   : > { %1224 = vrot.lane.b32.xlu0 %v4314_v29, %s3901_s28  ;;  %1222 = vrot.lane.b32.xlu1 %v4314_v29, %s3902_s0 }
 0x1e1   : > { %1226 = vrot.lane.b32.xlu1 %v4314_v29, %s3903_s12 }
 0x235   : > { %v671_v36 = vpop.permute.xlu1 %670  ;;  %v665_v37 = vpop.permute.xlu0 %664 }
 0x239   : > { %v674_v42 = vpop.permute.xlu1 %673  ;;  %v668_v43 = vpop.permute.xlu0 %667 }
 0x23a   : > { %v685_v45 = vcombine.low %v4294_v19, %v674_v42 }
 0x23c   : > { %v692_v50 = vrot.slane %v685_v45, %v4337_v44 }
 0x23d   : > { %v680_v47 = vpop.permute.xlu1 %679  ;;  %v677_v48 = vpop.permute.xlu0 %676 }
 0x23e   : > { %v693_v49 = vcombine.low %v668_v43, %v680_v47  ;;  %v719_v53 = vcombine.low %v665_v37, %v677_v48 }
 0x240   : > { %v700_v52 = vrot.slane %v693_v49, %v4337_v44  ;;  %v726_v61 = vrot.slane %v719_v53, %v4337_v44 }
 0x241   : > { %v683_v54 = vpop.permute.xlu0 %682 }
 0x242   : > { %v701_v55 = vcombine.low %v692_v50, %v700_v52  ;;  %v702_v56 = vcombine.high %v692_v50, %v700_v52  ;;  %v727_v57 = vcombine.low %v671_v36, %v683_v54 }
 0x244   : > { %v709_v58 = vrot.slane %v701_v55, %v4341_v51  ;;  %v716_v59 = vrot.slane %v702_v56, %v4341_v51  ;;  %v734_v60 = vrot.slane %v727_v57, %v4337_v44 }
 0x246   : > { %v717_v63 = vcombine.high %v709_v58, %v3906_v62  ;;  %v735_v1 = vcombine.low %v726_v61, %v734_v60  ;;  %v736_v2 = vcombine.high %v726_v61, %v734_v60  ;;  %v718_v5 = vcombine.high %v716_v59, %v3906_v62 }
 0x247   : > { %v1217_v3 = vpop.permute.xlu0 %1216  ;;  %v1215_v4 = vpop.permute.xlu1 %1214  ;;  %v757_v8 = vshrl.u32 %v709_v58, 16  ;;  %v773_v10 = vshrl.u32 %v716_v59, 16 }
 0x248   : > { %v743_v6 = vrot.slane %v735_v1, %v4341_v51  ;;  %v750_v7 = vrot.slane %v736_v2, %v4341_v51  ;;  %v765_v9 = vshrl.u32 %v717_v63, 16  ;;  %v781_v18 = vshrl.u32 %v718_v5, 16 }
 0x249   : > { %v1233_v21 = vshrl.u32 %v1215_v4, 16  ;;  %v1240_v30 = vshrl.u32 %v1217_v3, 16  ;;  %v1230_v33 = vpack.i.b16 %v1215_v4, %v4314_v29 }
 0x24a   : > { %v751_v12 = vcombine.high %v743_v6, %v3906_v62  ;;  %v752_v13 = vcombine.high %v750_v7, %v3906_v62  ;;  %v755_v14 = vpack.i.b16 %v743_v6, %v709_v58  ;;  %v758_v15 = vshrl.u32 %v743_v6, 16 }
 0x24b   : > { %v1221_v16 = vpop.permute.xlu0 %1220  ;;  %v1219_v17 = vpop.permute.xlu1 %1218  ;;  %v771_v19 = vpack.i.b16 %v750_v7, %v716_v59  ;;  %v774_v20 = vshrl.u32 %v750_v7, 16  ;;  %v4356_v39 = vpack.i.b16 %v1233_v21, %v1232_v11 }
 0x24c   : > { %v759_v22 = vpack.i.b16 %v758_v15, %v757_v8  ;;  %v763_v23 = vpack.i.b16 %v751_v12, %v717_v63  ;;  %v766_v24 = vshrl.u32 %v751_v12, 16  ;;  %v779_v25 = vpack.i.b16 %v752_v13, %v718_v5 }
 0x24d   : > { %v775_v26 = vpack.i.b16 %v774_v20, %v773_v10  ;;  %v782_v27 = vshrl.u32 %v752_v13, 16  ;;  %v785_v28 = vcombine.low %v755_v14, %v771_v19  ;;  %v1241_v34 = vshrl.u32 %v1219_v17, 16 }
 0x24e   : > { %v767_v31 = vpack.i.b16 %v766_v24, %v765_v9  ;;  %v793_v32 = vcombine.low %v763_v23, %v779_v25  ;;  %v1248_v40 = vshrl.u32 %v1221_v16, 16  ;;  %v1238_v47 = vpack.i.b16 %v1219_v17, %v1217_v3 }
 0x24f   : > { %v1225_v35 = vpop.permute.xlu0 %1224  ;;  %v1223_v36 = vpop.permute.xlu1 %1222  ;;  %v783_v37 = vpack.i.b16 %v782_v27, %v781_v18  ;;  %v819_v38 = vcombine.low %v759_v22, %v775_v26  ;;  %v792_v41 = vrot.slane %v785_v28, %v4337_v44  ;;  %v4360_v48 = vpack.i.b16 %v1241_v34, %v1240_v30 }
 0x250   : > { %v800_v42 = vrot.slane %v793_v32, %v4337_v44  ;;  %v1246_v43 = vpack.i.b16 %v1223_v36, %v1221_v16  ;;  %v1249_v45 = vshrl.u32 %v1223_v36, 16  ;;  %v1256_v29 = vshrl.u32 %v1225_v35, 16 }
 0x251   : > { %v827_v46 = vcombine.low %v767_v31, %v783_v37  ;;  %v826_v55 = vrot.slane %v819_v38, %v4337_v44 }
 0x252   : > { %v801_v49 = vcombine.low %v792_v41, %v800_v42  ;;  %v802_v50 = vcombine.high %v792_v41, %v800_v42  ;;  %v1250_v52 = vpack.i.b16 %v1249_v45, %v1248_v40  ;;  %v1260_v53 = vcombine.low %v1230_v33, %v1246_v43 }
 0x253   : > { %v1227_v54 = vpop.permute.xlu1 %1226  ;;  %v834_v56 = vrot.slane %v827_v46, %v4337_v44  ;;  %v1261_v57 = vcombine.high %v1230_v33, %v1246_v43 }
 0x254   : > { %v1254_v58 = vpack.i.b16 %v1227_v54, %v1225_v35  ;;  %v809_v59 = vrot.slane %v801_v49, %v4341_v51  ;;  %v816_v60 = vrot.slane %v802_v50, %v4341_v51  ;;  %v1328_v61 = vcombine.low %v4356_v39, %v1250_v52 }
 0x255   : > { %v1257_v63 = vshrl.u32 %v1227_v54, 16  ;;  %v835_v1 = vcombine.low %v826_v55, %v834_v56  ;;  %v836_v2 = vcombine.high %v826_v55, %v834_v56  ;;  %v1268_v3 = vrot.slane %v1260_v53, %v4337_v44 }
 0x256   : > { %v1275_v4 = vrot.slane %v1261_v57, %v4337_v44  ;;  %v817_v5 = vcombine.high %v809_v59, %v3906_v62  ;;  %v818_v6 = vcombine.high %v816_v60, %v3906_v62  ;;  %v857_v7 = vshrl.u32 %v809_v59, 16 }
 0x257   : > { %v1329_v8 = vcombine.high %v4356_v39, %v1250_v52  ;;  %v843_v9 = vrot.slane %v835_v1, %v4341_v51  ;;  %v850_v10 = vrot.slane %v836_v2, %v4341_v51  ;;  %v873_v11 = vshrl.u32 %v816_v60, 16 }
 0x258   : > { %v1336_v12 = vrot.slane %v1328_v61, %v4337_v44  ;;  %v865_v13 = vshrl.u32 %v817_v5, 16  ;;  %v881_v14 = vshrl.u32 %v818_v6, 16  ;;  %v1258_v15 = vpack.i.b16 %v1257_v63, %v1256_v29 }
 0x259   : > { %v1276_v16 = vcombine.low %v1238_v47, %v1254_v58  ;;  %v851_v17 = vcombine.high %v843_v9, %v3906_v62  ;;  %v852_v18 = vcombine.high %v850_v10, %v3906_v62  ;;  %v855_v19 = vpack.i.b16 %v843_v9, %v809_v59 }
 0x25a   : > { %v858_v20 = vshrl.u32 %v843_v9, 16  ;;  %v871_v21 = vpack.i.b16 %v850_v10, %v816_v60  ;;  %v874_v22 = vshrl.u32 %v850_v10, 16  ;;  %v1277_v23 = vcombine.high %v1238_v47, %v1254_v58 }
 0x25b   : > { %v1284_v24 = vrot.slane %v1276_v16, %v4337_v44  ;;  %v863_v26 = vpack.i.b16 %v851_v17, %v817_v5  ;;  %v866_v27 = vshrl.u32 %v851_v17, 16  ;;  %v879_v28 = vpack.i.b16 %v852_v18, %v818_v6  ;;  %886 = vst.msk [vmem:[#allocation2] sm:$0xf] %vm885_vm2, %v855_v19 }
 0x25c   : > { %v859_v25 = vpack.i.b16 %v858_v20, %v857_v7  ;;  %v875_v30 = vpack.i.b16 %v874_v22, %v873_v11  ;;  %v882_v31 = vshrl.u32 %v852_v18, 16  ;;  %890 = vst.msk [vmem:[#allocation2 + $0x10] sm:$0xf] %vm885_vm2, %v871_v21  ;;  %v1291_v32 = vrot.slane %v1277_v23, %v4337_v44 }
 0x25d   : > { %v1292_v33 = vcombine.low %v1268_v3, %v1284_v24  ;;  %v867_v34 = vpack.i.b16 %v866_v27, %v865_v13  ;;  %888 = vst.msk [vmem:[#allocation2 + $0x8] sm:$0xf] %vm885_vm2, %v863_v26  ;;  %892 = vst.msk [vmem:[#allocation2 + $0x18] sm:$0xf] %vm885_vm2, %v879_v28  ;;  %v1293_v35 = vcombine.high %v1268_v3, %v1284_v24 }
 0x25e   : > { %887 = vst.msk [vmem:[#allocation2 + $0x4] sm:$0xf] %vm885_vm2, %v859_v25  ;;  %v1344_v36 = vcombine.low %v4360_v48, %v1258_v15  ;;  %v1345_v37 = vcombine.high %v4360_v48, %v1258_v15  ;;  %v883_v38 = vpack.i.b16 %v882_v31, %v881_v14  ;;  %891 = vst.msk [vmem:[#allocation2 + $0x14] sm:$0xf] %vm885_vm2, %v875_v30 }
 0x25f   : > { %v1300_v39 = vrot.slane %v1292_v33, %v4341_v51  ;;  %v1308_v40 = vcombine.low %v1275_v4, %v1291_v32  ;;  %v1309_v41 = vcombine.high %v1275_v4, %v1291_v32  ;;  %889 = vst.msk [vmem:[#allocation2 + $0xc] sm:$0xf] %vm885_vm2, %v867_v34  ;;  %v1343_v42 = vrot.slane %v1329_v8, %v4337_v44 }
 0x260   : > { %v1307_v43 = vrot.slane %v1293_v35, %v4341_v51  ;;  %v1352_v45 = vrot.slane %v1344_v36, %v4337_v44  ;;  %v1359_v46 = vrot.slane %v1345_v37, %v4337_v44  ;;  %893 = vst.msk [vmem:[#allocation2 + $0x1c] sm:$0xf] %vm885_vm2, %v883_v38 }
 0x261   : > { %v1316_v47 = vrot.slane %v1308_v40, %v4341_v51  ;;  %v1323_v48 = vrot.slane %v1309_v41, %v4341_v51 }
 0x262   : > { %v1360_v29 = vcombine.low %v1336_v12, %v1352_v45  ;;  %v1361_v49 = vcombine.high %v1336_v12, %v1352_v45  ;;  %v1376_v50 = vcombine.low %v1343_v42, %v1359_v46  ;;  %v1377_v52 = vcombine.high %v1343_v42, %v1359_v46  ;;  %v1556_v7 = vld [vmem:[#allocation2] sm:$0xf] }
 0x263   : > { %v1396_v53 = vcombine.low %v1300_v39, %v1307_v43  ;;  %v3168_v54 = vcombine.high %v1300_v39, %v1307_v43  ;;  %v1412_v55 = vcombine.low %v1316_v47, %v1323_v48  ;;  %v3169_v56 = vcombine.high %v1316_v47, %v1323_v48  ;;  %v1560_v8 = vld [vmem:[#allocation2 + $0x10] sm:$0xf] }
 0x264   : > { %v1368_v57 = vrot.slane %v1360_v29, %v4341_v51  ;;  %v1375_v58 = vrot.slane %v1361_v49, %v4341_v51  ;;  %v1384_v59 = vrot.slane %v1376_v50, %v4341_v51  ;;  %v1391_v60 = vrot.slane %v1377_v52, %v4341_v51  ;;  %v1562_v37 = vld [vmem:[#allocation2 + $0x18] sm:$0xf]  ;;  %v1558_v47 = vld [vmem:[#allocation2 + $0x8] sm:$0xf] }
 0x265   : > { %v1403_v61 = vrot.slane %v1396_v53, %v4337_v44  ;;  %v1411_v63 = vrot.slane %v3168_v54, %v4337_v44  ;;  %v1419_v1 = vrot.slane %v1412_v55, %v4337_v44  ;;  %v1427_v2 = vrot.slane %v3169_v56, %v4337_v44  ;;  %v1557_v36 = vld [vmem:[#allocation2 + $0x4] sm:$0xf] }
 0x266   : > { %v1464_v3 = vcombine.low %v1368_v57, %v1375_v58  ;;  %v3170_v4 = vcombine.high %v1368_v57, %v1375_v58  ;;  %v1480_v5 = vcombine.low %v1384_v59, %v1391_v60  ;;  %v3171_v6 = vcombine.high %v1384_v59, %v1391_v60  ;;  %v1559_v53 = vld [vmem:[#allocation2 + $0xc] sm:$0xf]  ;;  %v1561_v58 = vld [vmem:[#allocation2 + $0x14] sm:$0xf] }
 0x267   : > { %v1428_v9 = vcombine.low %v1403_v61, %v1411_v63  ;;  %v1429_v10 = vcombine.high %v1403_v61, %v1411_v63  ;;  %v1444_v11 = vcombine.low %v1419_v1, %v1427_v2  ;;  %v1445_v12 = vcombine.high %v1419_v1, %v1427_v2  ;;  %v1563_v1 = vld [vmem:[#allocation2 + $0x1c] sm:$0xf] }
 0x268   : > { %v1471_v13 = vrot.slane %v1464_v3, %v4337_v44  ;;  %v1479_v14 = vrot.slane %v3170_v4, %v4337_v44  ;;  %v1487_v15 = vrot.slane %v1480_v5, %v4337_v44  ;;  %v1495_v16 = vrot.slane %v3171_v6, %v4337_v44 }
 0x269   : > { %v1569_v17 = vsel %vm1564_vm3, %v1556_v7, 0  ;;  %v1757_v18 = vsel %vm1564_vm3, %v1560_v8, 0  ;;  %v1436_v19 = vrot.slane %v1428_v9, %v4341_v51  ;;  %v1452_v20 = vrot.slane %v1444_v11, %v4341_v51  ;;  %v4456_v7 = vpop.f32.mrb[0].mxu1 }
 0x26a   : > { %v1496_v21 = vcombine.low %v1471_v13, %v1479_v14  ;;  %v1497_v22 = vcombine.high %v1471_v13, %v1479_v14  ;;  %v1512_v23 = vcombine.low %v1487_v15, %v1495_v16  ;;  %v1513_v24 = vcombine.high %v1487_v15, %v1495_v16  ;;  %3294 = vmatpush3.bf16.xpose.msra.mxu1 %v1569_v17  ;;  %v3279_v8 = vpop.f32.mrb[1].mxu1 }
 0x26b   : > { %3318 = vmatpush3.bf16.xpose.msra.mxu0 %v1757_v18  ;;  %3299 = vmatprep.subr.bf16.mxu1 %v3895_v0  ;;  %v1443_v25 = vrot.slane %v1429_v10, %v4341_v51  ;;  %v1459_v26 = vrot.slane %v1445_v12, %v4341_v51  ;;  %v1460_v32 = vcombine.low %v1436_v19, %v1452_v20  ;;  %v1616_v40 = vsel %vm1564_vm3, %v1557_v36, 0  ;;  %v659_v9 = vpop.f32.mrb[2].mxu1 }
 0x26c   : > { %3329 = vmatprep.subr.bf16.mxu0 %v3895_v0  ;;  %v1504_v27 = vrot.slane %v1496_v21, %v4341_v51  ;;  %v1520_v28 = vrot.slane %v1512_v23, %v4341_v51  ;;  %v1511_v30 = vrot.slane %v1497_v22, %v4341_v51  ;;  %v1527_v31 = vrot.slane %v1513_v24, %v4341_v51  ;;  %v3280_v10 = vpop.f32.mrb[3].mxu1 }
 0x26d   : > { %v1462_v34 = vcombine.low %v1443_v25, %v1459_v26  ;;  %v1851_v41 = vsel %vm1564_vm3, %v1562_v37, 0  ;;  %v1535_v45 = vshrl.u32 %v1460_v32, 16  ;;  %v1463_v46 = vcombine.high %v1443_v25, %v1459_v26 }
 0x26e   : > { %v1528_v33 = vcombine.low %v1504_v27, %v1520_v28  ;;  %v1530_v35 = vcombine.low %v1511_v30, %v1527_v31  ;;  %v1531_v43 = vcombine.high %v1511_v30, %v1527_v31  ;;  %v1663_v49 = vsel %vm1564_vm3, %v1558_v47, 0 }
 0x26f   : > { %v1529_v50 = vcombine.high %v1504_v27, %v1520_v28  ;;  %v1461_v52 = vcombine.high %v1436_v19, %v1452_v20  ;;  %v1710_v55 = vsel %vm1564_vm3, %v1559_v53, 0  ;;  %v1804_v60 = vsel %vm1564_vm3, %v1561_v58, 0 }
 0x270   : > { %v1534_v38 = vpack.i.b16 %v1528_v33, %v1460_v32  ;;  %v1546_v39 = vpack.i.b16 %v1530_v35, %v1462_v34  ;;  %v1536_v42 = vshrl.u32 %v1528_v33, 16  ;;  %v1552_v29 = vpack.i.b16 %v1531_v43, %v1463_v46 }
 0x271   : > { %v1540_v54 = vpack.i.b16 %v1529_v50, %v1461_v52  ;;  %v1542_v56 = vshrl.u32 %v1529_v50, 16  ;;  %v1541_v57 = vshrl.u32 %v1461_v52, 16  ;;  %v1548_v61 = vshrl.u32 %v1530_v35, 16 }
 0x272   : > { %3296 = vmatmul.mubr.msk.bf16.vlgmr.msra.gmra.mrb[4].mxu1 %vm1564_vm3, %v1534_v38  ;;  %3320 = vmatmul.mubr.msk.bf16.vlgmr.msra.gmra.mrb[8].mxu0 %vm1564_vm3, %v1546_v39  ;;  %v1537_v48 = vpack.i.b16 %v1536_v42, %v1535_v45  ;;  %v1547_v63 = vshrl.u32 %v1462_v34, 16  ;;  %v1898_v3 = vsel %vm1564_vm3, %v1563_v1, 0  ;;  %v1554_v4 = vshrl.u32 %v1531_v43, 16 }
 0x273   : > { %3300 = vmatpush3.bf16.xpose.msra.mxu1 %v1616_v40  ;;  %3330 = vmatpush3.bf16.xpose.msra.mxu0 %v1851_v41  ;;  %v1543_v59 = vpack.i.b16 %v1542_v56, %v1541_v57  ;;  %v1553_v5 = vshrl.u32 %v1463_v46, 16  ;;  %v3156_v57 = vld [vmem:[%s4857_s16] ss:$0 sm:$0xff]  ;;  %s2966_s16 = scalar_lea.sflag [#allocation6], %s4236_s6 }
 0x274   : > { %3301 = vmatprep.mubr.msk.bf16.mxu1 %vm3896_vm0, %v3895_v0  ;;  %3305 = vmatprep.subr.bf16.mxu1 %v3895_v0  ;;  %v1549_v2 = vpack.i.b16 %v1548_v61, %v1547_v63  ;;  %v657_v61 = vadd.f32 %v3156_v57, %v4456_v7 }
 0x275   : > { %3331 = vmatprep.mubr.msk.bf16.mxu0 %vm3896_vm0, %v3895_v0  ;;  %3341 = vmatprep.subr.bf16.mxu0 %v3895_v0  ;;  %v1555_v6 = vpack.i.b16 %v1554_v4, %v1553_v5 }
 0x276   : > { %v4524_v63 = vpack.c.bf16 %v657_v61, %v657_v61 }
 0x27a   : > { %3302 = vmatmul.mubr.msk.bf16.vlgmr.msra.gmra.mrb[8].mxu1 %vm1564_vm3, %v1537_v48  ;;  %3332 = vmatmul.mubr.msk.bf16.vlgmr.msra.gmra.mrb[12].mxu0 %vm1564_vm3, %v1552_v29 }
 0x27b   : > { %3306 = vmatpush3.bf16.xpose.msra.mxu1 %v1663_v49  ;;  %3307 = vmatprep.mubr.msk.bf16.mxu1 %vm3896_vm0, %v3895_v0 }
 0x27c   : > { %3311 = vmatprep.subr.bf16.mxu1 %v3895_v0  ;;  %3343 = vmatprep.mubr.msk.bf16.mxu0 %vm3896_vm0, %v3895_v0 }
 0x282   : > { %3308 = vmatmul.mubr.msk.bf16.vlgmr.msra.gmra.mrb[12].mxu1 %vm1564_vm3, %v1540_v54 }
 0x283   : > { %3312 = vmatpush3.bf16.xpose.msra.mxu1 %v1710_v55  ;;  %3313 = vmatprep.mubr.msk.bf16.mxu1 %vm3896_vm0, %v3895_v0 }
 0x284   : > { %3323 = vmatprep.subr.bf16.mxu1 %v3895_v0 }
 0x28a   : > { %3314 = vmatmul.mubr.msk.bf16.vlgmr.msra.gmra.mrb[16].mxu1 %vm1564_vm3, %v1543_v59 }
 0x28b   : > { %3324 = vmatpush3.bf16.xpose.msra.mxu1 %v1804_v60  ;;  %3325 = vmatprep.mubr.msk.bf16.mxu1 %vm3896_vm0, %v3895_v0 }
 0x28c   : > { %3335 = vmatprep.subr.bf16.mxu1 %v3895_v0 }
 0x292   : > { %3326 = vmatmul.mubr.msk.bf16.vlgmr.msra.gmra.mrb[20].mxu1 %vm1564_vm3, %v1549_v2 }
 0x293   : > { %3336 = vmatpush3.bf16.xpose.msra.mxu1 %v1898_v3  ;;  %3337 = vmatprep.mubr.msk.bf16.mxu1 %vm3896_vm0, %v3895_v0 }
 0x294   : > { %3347 = vmatprep.subr.bf16.mxu1 %v3895_v0 }
 0x29a   : > { %3338 = vmatmul.mubr.msk.bf16.vlgmr.msra.gmra.mrb[24].mxu1 %vm1564_vm3, %v1555_v6 }
 0x29b   : > { %3349 = vmatprep.mubr.msk.bf16.mxu1 %vm3896_vm0, %v3895_v0 }
 0x345   : > { %v4458_v11 = vpop.f32.mrb[4].mxu1  ;;  %v4460_v12 = vpop.f32.mrb[8].mxu0 }
 0x346   : > { %v3297_v13 = vpop.f32.mrb[5].mxu1  ;;  %v3321_v14 = vpop.f32.mrb[9].mxu0  ;;  %v1941_v15 = vsel %vm1564_vm3, %v4458_v11, -inf  ;;  %v1965_v16 = vsel %vm1564_vm3, %v4460_v12, -inf }
 0x347   : > { %1942 = vmax.xlane.f32.xlu0 %v1941_v15  ;;  %v4466_v17 = vpop.f32.mrb[6].mxu1  ;;  %1966 = vmax.xlane.f32.xlu1 %v1965_v16  ;;  %v4468_v18 = vpop.f32.mrb[10].mxu0 }
 0x348   : > { %v3298_v19 = vpop.f32.mrb[7].mxu1  ;;  %v3322_v20 = vpop.f32.mrb[11].mxu0  ;;  %v1944_v21 = vsel %vm1564_vm3, %v4466_v17, -inf  ;;  %v1968_v47 = vsel %vm1564_vm3, %v4468_v18, -inf }
 0x34b   : > { %1945 = vmax.xlane.f32.xlu1 %v1944_v21 }
 0x34d   : > { %v4472_v22 = vpop.f32.mrb[8].mxu1  ;;  %v4474_v23 = vpop.f32.mrb[12].mxu0 }
 0x34e   : > { %v3303_v24 = vpop.f32.mrb[9].mxu1  ;;  %v3333_v25 = vpop.f32.mrb[13].mxu0  ;;  %v1947_v26 = vsel %vm1564_vm3, %v4472_v22, -inf  ;;  %v1977_v46 = vsel %vm1564_vm3, %v4474_v23, -inf }
 0x34f   : > { %1948 = vmax.xlane.f32.xlu0 %v1947_v26  ;;  %v4478_v27 = vpop.f32.mrb[10].mxu1  ;;  %v4480_v28 = vpop.f32.mrb[14].mxu0 }
 0x350   : > { %v3304_v30 = vpop.f32.mrb[11].mxu1  ;;  %v3334_v31 = vpop.f32.mrb[15].mxu0  ;;  %v1950_v32 = vsel %vm1564_vm3, %v4478_v27, -inf  ;;  %v1980_v54 = vsel %vm1564_vm3, %v4480_v28, -inf }
 0x353   : > { %1951 = vmax.xlane.f32.xlu0 %v1950_v32 }
 0x355   : > { %v4484_v33 = vpop.f32.mrb[12].mxu1 }
 0x356   : > { %v3309_v34 = vpop.f32.mrb[13].mxu1  ;;  %v1953_v35 = vsel %vm1564_vm3, %v4484_v33, -inf }
 0x357   : > { %v4488_v36 = vpop.f32.mrb[14].mxu1  ;;  %1954 = vmax.xlane.f32.xlu1 %v1953_v35 }
 0x358   : > { %v3310_v37 = vpop.f32.mrb[15].mxu1  ;;  %v1956_v38 = vsel %vm1564_vm3, %v4488_v36, -inf }
 0x359   : > { %1957 = vmax.xlane.f32.xlu0 %v1956_v38 }
 0x35d   : > { %v4492_v39 = vpop.f32.mrb[16].mxu1 }
 0x35e   : > { %v3315_v40 = vpop.f32.mrb[17].mxu1  ;;  %v1959_v41 = vsel %vm1564_vm3, %v4492_v39, -inf }
 0x35f   : > { %v4496_v42 = vpop.f32.mrb[18].mxu1  ;;  %1960 = vmax.xlane.f32.xlu1 %v1959_v41 }
 0x360   : > { %v3316_v43 = vpop.f32.mrb[19].mxu1  ;;  %v1962_v45 = vsel %vm1564_vm3, %v4496_v42, -inf }
 0x361   : > { %1963 = vmax.xlane.f32.xlu0 %v1962_v45 }
 0x363   : > { %1978 = vmax.xlane.f32.xlu1 %v1977_v46 }
 0x365   : > { %v4504_v48 = vpop.f32.mrb[20].mxu1  ;;  %1969 = vmax.xlane.f32.xlu0 %v1968_v47 }
 0x366   : > { %v3327_v29 = vpop.f32.mrb[21].mxu1  ;;  %v1971_v49 = vsel %vm1564_vm3, %v4504_v48, -inf }
 0x367   : > { %v4508_v50 = vpop.f32.mrb[22].mxu1  ;;  %1972 = vmax.xlane.f32.xlu1 %v1971_v49 }
 0x368   : > { %v3328_v52 = vpop.f32.mrb[23].mxu1  ;;  %v1974_v53 = vsel %vm1564_vm3, %v4508_v50, -inf }
 0x369   : > { %1975 = vmax.xlane.f32.xlu0 %v1974_v53 }
 0x36d   : > { %v4514_v55 = vpop.f32.mrb[24].mxu1  ;;  %1981 = vmax.xlane.f32.xlu0 %v1980_v54 }
 0x36e   : > { %v3339_v56 = vpop.f32.mrb[25].mxu1  ;;  %v1983_v1 = vsel %vm1564_vm3, %v4514_v55, -inf }
 0x36f   : > { %v4519_v58 = vpop.f32.mrb[26].mxu1 }
 0x370   : > { %v3340_v59 = vpop.f32.mrb[27].mxu1  ;;  %v1986_v60 = vsel %vm1564_vm3, %v4519_v58, -inf }
 0x371   : > { %1987 = vmax.xlane.f32.xlu0 %v1986_v60 }
 0x378   : > { %896 = vrot.lane.b32.xlu1 %v4524_v63, %s3898_s20  ;;  %s4858_s20 = sld [smem:[#allocation23_spill]] }
 0x37e   : > { %s3204_s11 = sshll.u32 %s4858_s20, 8 }
 0x387   : > { %899 = vrot.lane.b32.xlu0 %v4524_v63, %s3900_s25 }
 0x38b   : > { %908 = vrot.lane.b32.xlu0 %v4524_v63, %s3902_s0  ;;  %s490_s0 = scalar_lea.vmem [#allocation15], %s3143_s22  ;;  %s4758_s22 = scalar_lea.hbm %s4860_s27, %s3204_s11 }
 0x38c   : > { %s2981_s7 = sshll.u32 %s490_s0, 4  ;;  %s4752_s7 = int_to_ptr.vmem [resolvable:$true] %s2981_s7 }
 0x38f   : > { %914 = vrot.lane.b32.xlu0 %v4524_v63, %s3903_s12 }
 0x39c   : > { %1984 = vmax.xlane.f32.xlu1 %v1983_v1 }
 0x3ad   : > { %902 = vrot.lane.b32.xlu1 %v4524_v63, %s3897_s26  ;;  %s3913_s26 = smov 56  }
 0x3b1   : > { %905 = vrot.lane.b32.xlu1 %v4524_v63, %s3899_s29 }
 0x3b5   : > { %911 = vrot.lane.b32.xlu1 %v4524_v63, %s3901_s28  ;;  %s4859_s28 = sld [smem:[#allocation30_spill]] }
 0x3d4   : > { %v1943_v2 = vpop.xlane.xlu0 %1942  ;;  %v1967_v3 = vpop.xlane.xlu1 %1966 }
 0x3d5   : > { %v1989_v4 = vsub.f32 %v4458_v11, %v1943_v2  ;;  %v1997_v30 = vsub.f32 %v4460_v12, %v1967_v3 }
 0x3d7   : > { %v2005_v5 = vmul.f32 1.442695, %v1989_v4  ;;  %v2021_v35 = vmul.f32 1.442695, %v1997_v30 }
 0x3d8   : > { %v1946_v6 = vpop.xlane.xlu1 %1945 }
 0x3d9   : > { %3549 = vpow2.f32 %v2005_v5  ;;  %v1990_v7 = vsub.f32 %v4466_v17, %v1946_v6 }
 0x3db   : > { %v2007_v8 = vmul.f32 1.442695, %v1990_v7 }
 0x3dc   : > { %v1949_v9 = vpop.xlane.xlu0 %1948 }
 0x3dd   : > { %3551 = vpow2.f32 %v2007_v8  ;;  %v1991_v10 = vsub.f32 %v4472_v22, %v1949_v9 }
 0x3df   : > { %v2009_v13 = vmul.f32 1.442695, %v1991_v10 }
 0x3e0   : > { %v1952_v14 = vpop.xlane.xlu0 %1951 }
 0x3e1   : > { %3553 = vpow2.f32 %v2009_v13  ;;  %v1992_v15 = vsub.f32 %v4478_v27, %v1952_v14 }
 0x3e3   : > { %v4546_v16 = vpop.eup %3549  ;;  %v2011_v19 = vmul.f32 1.442695, %v1992_v15 }
 0x3e4   : > { %v1955_v20 = vpop.xlane.xlu1 %1954  ;;  %v2037_v11 = vsel %vm1564_vm3, %v4546_v16, 0.0 }
 0x3e5   : > { %3555 = vpow2.f32 %v2011_v19  ;;  %v1993_v17 = vsub.f32 %v4484_v33, %v1955_v20  ;;  %2038 = vadd.xlane.f32.xlu1 %v2037_v11 }
 0x3e6   : > { %v1958_v21 = vpop.xlane.xlu0 %1957 }
 0x3e7   : > { %v4551_v24 = vpop.eup %3551  ;;  %v2013_v22 = vmul.f32 1.442695, %v1993_v17  ;;  %v1994_v25 = vsub.f32 %v4488_v36, %v1958_v21 }
 0x3e8   : > { %v2040_v26 = vsel %vm1564_vm3, %v4551_v24, 0.0 }
 0x3e9   : > { %3557 = vpow2.f32 %v2013_v22  ;;  %v2015_v27 = vmul.f32 1.442695, %v1994_v25  ;;  %2041 = vadd.xlane.f32.xlu0 %v2040_v26 }
 0x3eb   : > { %v4557_v31 = vpop.eup %3553  ;;  %3559 = vpow2.f32 %v2015_v27 }
 0x3ec   : > { %v1961_v32 = vpop.xlane.xlu1 %1960  ;;  %v2043_v33 = vsel %vm1564_vm3, %v4557_v31, 0.0 }
 0x3ed   : > { %v1995_v34 = vsub.f32 %v4492_v39, %v1961_v32  ;;  %2044 = vadd.xlane.f32.xlu0 %v2043_v33 }
 0x3ee   : > { %v1964_v36 = vpop.xlane.xlu0 %1963 }
 0x3ef   : > { %v4562_v37 = vpop.eup %3555  ;;  %v2017_v38 = vmul.f32 1.442695, %v1995_v34  ;;  %v1996_v40 = vsub.f32 %v4496_v42, %v1964_v36 }
 0x3f0   : > { %v1979_v41 = vpop.xlane.xlu1 %1978  ;;  %v2046_v12 = vsel %vm1564_vm3, %v4562_v37, 0.0 }
 0x3f1   : > { %3561 = vpow2.f32 %v2017_v38  ;;  %v2019_v43 = vmul.f32 1.442695, %v1996_v40  ;;  %2047 = vadd.xlane.f32.xlu1 %v2046_v12  ;;  %v2001_v45 = vsub.f32 %v4474_v23, %v1979_v41 }
 0x3f2   : > { %3563 = vpow2.f32 %v2021_v35  ;;  %v1970_v46 = vpop.xlane.xlu0 %1969 }
 0x3f3   : > { %v4568_v39 = vpop.eup %3557  ;;  %3565 = vpow2.f32 %v2019_v43  ;;  %v1998_v47 = vsub.f32 %v4468_v18, %v1970_v46  ;;  %v2029_v54 = vmul.f32 1.442695, %v2001_v45 }
 0x3f4   : > { %v1973_v29 = vpop.xlane.xlu1 %1972  ;;  %v2049_v42 = vsel %vm1564_vm3, %v4568_v39, 0.0 }
 0x3f5   : > { %v4573_v49 = vpop.eup %3559  ;;  %v2023_v52 = vmul.f32 1.442695, %v1998_v47  ;;  %v1999_v53 = vsub.f32 %v4504_v48, %v1973_v29  ;;  %2050 = vadd.xlane.f32.xlu0 %v2049_v42 }
 0x3f6   : > { %v1976_v56 = vpop.xlane.xlu0 %1975  ;;  %v2052_v23 = vsel %vm1564_vm3, %v4573_v49, 0.0 }
 0x3f7   : > { %3567 = vpow2.f32 %v2023_v52  ;;  %v2025_v57 = vmul.f32 1.442695, %v1999_v53  ;;  %v2000_v59 = vsub.f32 %v4508_v50, %v1976_v56  ;;  %2053 = vadd.xlane.f32.xlu1 %v2052_v23 }
 0x3f8   : > { %v897_v25 = vpop.permute.xlu1 %896 }
 0x3f9   : > { %3569 = vpow2.f32 %v2025_v57  ;;  %v2027_v18 = vmul.f32 1.442695, %v2000_v59 }
 0x3fa   : > { %3571 = vpow2.f32 %v2029_v54  ;;  %v1982_v60 = vpop.xlane.xlu0 %1981 }
 0x3fb   : > { %v4579_v61 = vpop.eup %3561  ;;  %3573 = vpow2.f32 %v2027_v18  ;;  %v2002_v48 = vsub.f32 %v4480_v28, %v1982_v60 }
 0x3fc   : > { %v4582_v1 = vpop.eup %3563  ;;  %v2055_v2 = vsel %vm1564_vm3, %v4579_v61, 0.0 }
 0x3fd   : > { %v4586_v3 = vpop.eup %3565  ;;  %v2031_v4 = vmul.f32 1.442695, %v2002_v48  ;;  %2056 = vadd.xlane.f32.xlu0 %v2055_v2  ;;  %v2061_v28 = vsel %vm1564_vm3, %v4582_v1, 0.0 }
 0x3fe   : > { %v1988_v50 = vpop.xlane.xlu0 %1987  ;;  %v2058_v5 = vsel %vm1564_vm3, %v4586_v3, 0.0 }
 0x3ff   : > { %3575 = vpow2.f32 %v2031_v4  ;;  %v2004_v6 = vsub.f32 %v4519_v58, %v1988_v50  ;;  %2059 = vadd.xlane.f32.xlu1 %v2058_v5 }
 0x401   : > { %v4593_v7 = vpop.eup %3567  ;;  %v2035_v8 = vmul.f32 1.442695, %v2004_v6  ;;  %2062 = vadd.xlane.f32.xlu0 %v2061_v28 }
 0x402   : > { %v2064_v9 = vsel %vm1564_vm3, %v4593_v7, 0.0  ;;  %v900_v22 = vpop.permute.xlu0 %899 }
 0x403   : > { %v4597_v10 = vpop.eup %3569  ;;  %3577 = vpow2.f32 %v2035_v8  ;;  %2065 = vadd.xlane.f32.xlu1 %v2064_v9 }
 0x404   : > { %v4599_v13 = vpop.eup %3571  ;;  %v2067_v58 = vsel %vm1564_vm3, %v4597_v10, 0.0 }
 0x405   : > { %v4603_v14 = vpop.eup %3573  ;;  %2068 = vadd.xlane.f32.xlu0 %v2067_v58  ;;  %v2073_v19 = vsel %vm1564_vm3, %v4599_v13, 0.0 }
 0x406   : > { %v2070_v15 = vsel %vm1564_vm3, %v4603_v14, 0.0  ;;  %v909_v26 = vpop.permute.xlu0 %908 }
 0x407   : > { %2071 = vadd.xlane.f32.xlu1 %v2070_v15  ;;  %v951_v35 = vcombine.low %v897_v25, %v909_v26 }
 0x409   : > { %v4609_v20 = vpop.eup %3575  ;;  %2074 = vadd.xlane.f32.xlu0 %v2073_v19  ;;  %v958_v41 = vrot.slane %v951_v35, %v4337_v44 }
 0x40a   : > { %v2076_v11 = vsel %vm1564_vm3, %v4609_v20, 0.0  ;;  %v915_v33 = vpop.permute.xlu0 %914 }
 0x40b   : > { %2077 = vadd.xlane.f32.xlu1 %v2076_v11 }
 0x40d   : > { %v4613_v17 = vpop.eup %3577 }
 0x40e   : > { %v2082_v21 = vsel %vm1564_vm3, %v4613_v17, 0.0 }
 0x40f   : > { %2083 = vadd.xlane.f32.xlu1 %v2082_v21 }
 0x429   : > { %v1985_v27 = vpop.xlane.xlu1 %1984 }
 0x42a   : > { %v2003_v30 = vsub.f32 %v4514_v55, %v1985_v27 }
 0x42c   : > { %v2033_v32 = vmul.f32 1.442695, %v2003_v30 }
 0x42d   : > { %v903_v34 = vpop.permute.xlu1 %902 }
 0x42e   : > { %3579 = vpow2.f32 %v2033_v32  ;;  %v959_v36 = vcombine.low %v903_v34, %v915_v33 }
 0x430   : > { %v966_v38 = vrot.slane %v959_v36, %v4337_v44 }
 0x431   : > { %v906_v40 = vpop.permute.xlu1 %905 }
 0x432   : > { %v967_v12 = vcombine.low %v958_v41, %v966_v38  ;;  %v917_v43 = vcombine.low %v4524_v63, %v906_v40  ;;  %v968_v46 = vcombine.high %v958_v41, %v966_v38 }
 0x434   : > { %v975_v55 = vrot.slane %v967_v12, %v4341_v51  ;;  %v924_v42 = vrot.slane %v917_v43, %v4337_v44  ;;  %v982_v54 = vrot.slane %v968_v46, %v4341_v51 }
 0x435   : > { %v912_v45 = vpop.permute.xlu1 %911 }
 0x436   : > { %v925_v47 = vcombine.low %v900_v22, %v912_v45  ;;  %v983_v63 = vcombine.high %v975_v55, %v3906_v62  ;;  %v984_v18 = vcombine.high %v982_v54, %v3906_v62  ;;  %v990_v60 = vshrl.u32 %v975_v55, 16 }
 0x437   : > { %v1006_v6 = vshrl.u32 %v982_v54, 16 }
 0x438   : > { %v4621_v29 = vpop.eup %3579  ;;  %v932_v52 = vrot.slane %v925_v47, %v4337_v44  ;;  %v998_v5 = vshrl.u32 %v983_v63, 16  ;;  %v1014_v11 = vshrl.u32 %v984_v18, 16 }
 0x439   : > { %v2079_v53 = vsel %vm1564_vm3, %v4621_v29, 0.0 }
 0x43a   : > { %2080 = vadd.xlane.f32.xlu0 %v2079_v53  ;;  %v933_v56 = vcombine.low %v924_v42, %v932_v52  ;;  %v934_v23 = vcombine.high %v924_v42, %v932_v52 }
 0x43c   : > { %v941_v57 = vrot.slane %v933_v56, %v4341_v51  ;;  %v948_v59 = vrot.slane %v934_v23, %v4341_v51 }
 0x43e   : > { %v949_v48 = vcombine.high %v941_v57, %v3906_v62  ;;  %v950_v2 = vcombine.high %v948_v59, %v3906_v62  ;;  %v987_v4 = vpack.i.b16 %v975_v55, %v941_v57  ;;  %v989_v50 = vshrl.u32 %v941_v57, 16 }
 0x43f   : > { %v1003_v28 = vpack.i.b16 %v982_v54, %v948_v59  ;;  %v1005_v8 = vshrl.u32 %v948_v59, 16 }
 0x440   : > { %v991_v9 = vpack.i.b16 %v990_v60, %v989_v50  ;;  %v995_v58 = vpack.i.b16 %v983_v63, %v949_v48  ;;  %v997_v15 = vshrl.u32 %v949_v48, 16  ;;  %v1011_v19 = vpack.i.b16 %v984_v18, %v950_v2 }
 0x441   : > { %v1007_v21 = vpack.i.b16 %v1006_v6, %v1005_v8  ;;  %v1013_v22 = vshrl.u32 %v950_v2, 16  ;;  %v1017_v25 = vcombine.low %v987_v4, %v1003_v28 }
 0x442   : > { %v999_v26 = vpack.i.b16 %v998_v5, %v997_v15  ;;  %v1025_v27 = vcombine.low %v995_v58, %v1011_v19 }
 0x443   : > { %v1015_v30 = vpack.i.b16 %v1014_v11, %v1013_v22  ;;  %v1051_v32 = vcombine.low %v991_v9, %v1007_v21  ;;  %v1024_v33 = vrot.slane %v1017_v25, %v4337_v44 }
 0x444   : > { %v1032_v34 = vrot.slane %v1025_v27, %v4337_v44 }
 0x445   : > { %v1059_v35 = vcombine.low %v999_v26, %v1015_v30  ;;  %v1058_v40 = vrot.slane %v1051_v32, %v4337_v44 }
 0x446   : > { %v1033_v36 = vcombine.low %v1024_v33, %v1032_v34  ;;  %v1034_v38 = vcombine.high %v1024_v33, %v1032_v34 }
 0x447   : > { %v1066_v41 = vrot.slane %v1059_v35, %v4337_v44 }
 0x448   : > { %v1041_v12 = vrot.slane %v1033_v36, %v4341_v51  ;;  %v1048_v43 = vrot.slane %v1034_v38, %v4341_v51 }
 0x449   : > { %v1067_v45 = vcombine.low %v1058_v40, %v1066_v41  ;;  %v1068_v46 = vcombine.high %v1058_v40, %v1066_v41 }
 0x44a   : > { %v1049_v47 = vcombine.high %v1041_v12, %v3906_v62  ;;  %v1050_v52 = vcombine.high %v1048_v43, %v3906_v62  ;;  %v1089_v53 = vshrl.u32 %v1041_v12, 16  ;;  %v1105_v18 = vshrl.u32 %v1048_v43, 16 }
 0x44b   : > { %v1075_v55 = vrot.slane %v1067_v45, %v4341_v51  ;;  %v1082_v42 = vrot.slane %v1068_v46, %v4341_v51 }
 0x44c   : > { %v1097_v57 = vshrl.u32 %v1049_v47, 16  ;;  %v1113_v6 = vshrl.u32 %v1050_v52, 16 }
 0x44d   : > { %v1083_v54 = vcombine.high %v1075_v55, %v3906_v62  ;;  %v1084_v56 = vcombine.high %v1082_v42, %v3906_v62  ;;  %v1087_v23 = vpack.i.b16 %v1075_v55, %v1041_v12  ;;  %v1090_v63 = vshrl.u32 %v1075_v55, 16 }
 0x44e   : > { %v1103_v59 = vpack.i.b16 %v1082_v42, %v1048_v43  ;;  %v1106_v60 = vshrl.u32 %v1082_v42, 16 }
 0x44f   : > { %v1091_v48 = vpack.i.b16 %v1090_v63, %v1089_v53  ;;  %v1095_v2 = vpack.i.b16 %v1083_v54, %v1049_v47  ;;  %v1098_v4 = vshrl.u32 %v1083_v54, 16  ;;  %v1111_v50 = vpack.i.b16 %v1084_v56, %v1050_v52  ;;  %1117 = vst.msk [vmem:[#allocation3] sm:$0xf] %vm885_vm2, %v1087_v23 }
 0x450   : > { %v1107_v5 = vpack.i.b16 %v1106_v60, %v1105_v18  ;;  %v1114_v28 = vshrl.u32 %v1084_v56, 16  ;;  %1121 = vst.msk [vmem:[#allocation3 + $0x10] sm:$0xf] %vm885_vm2, %v1103_v59 }
 0x451   : > { %v1099_v8 = vpack.i.b16 %v1098_v4, %v1097_v57  ;;  %1118 = vst.msk [vmem:[#allocation3 + $0x4] sm:$0xf] %vm885_vm2, %v1091_v48  ;;  %1119 = vst.msk [vmem:[#allocation3 + $0x8] sm:$0xf] %vm885_vm2, %v1095_v2 }
 0x452   : > { %1123 = vst.msk [vmem:[#allocation3 + $0x18] sm:$0xf] %vm885_vm2, %v1111_v50  ;;  %v1115_v62 = vpack.i.b16 %v1114_v28, %v1113_v6  ;;  %1122 = vst.msk [vmem:[#allocation3 + $0x14] sm:$0xf] %vm885_vm2, %v1107_v5 }
 0x453   : > { %1120 = vst.msk [vmem:[#allocation3 + $0xc] sm:$0xf] %vm885_vm2, %v1099_v8 }
 0x454   : > { %1124 = vst.msk [vmem:[#allocation3 + $0x1c] sm:$0xf] %vm885_vm2, %v1115_v62 }
 0x456   : > { %v2125_v9 = vld [vmem:[#allocation3] sm:$0xf] }
 0x457   : > { %v2138_v58 = vsel %vm2136_vm4, %v2125_v9, 0  ;;  %v2129_v54 = vld [vmem:[#allocation3 + $0x10] sm:$0xf] }
 0x458   : > { %3342 = vmatpush3.bf16.msra.mxu0 %v2138_v58  ;;  %v2126_v15 = vld [vmem:[#allocation3 + $0x4] sm:$0xf]  ;;  %v2127_v34 = vld [vmem:[#allocation3 + $0x8] sm:$0xf]  ;;  %v2326_v57 = vsel %vm2136_vm4, %v2129_v54, 0 }
 0x459   : > { %v2185_v19 = vsel %vm2136_vm4, %v2126_v15, 0  ;;  %3353 = vmatprep.subr.bf16.mxu0 %v3895_v0  ;;  %v2232_v38 = vsel %vm2136_vm4, %v2127_v34, 0  ;;  %v2130_v4 = vld [vmem:[#allocation3 + $0x14] sm:$0xf]  ;;  %v2131_v9 = vld [vmem:[#allocation3 + $0x18] sm:$0xf] }
 0x45a   : > { %3348 = vmatpush3.bf16.msra.mxu1 %v2185_v19  ;;  %v2128_v43 = vld [vmem:[#allocation3 + $0xc] sm:$0xf]  ;;  %v2373_v8 = vsel %vm2136_vm4, %v2130_v4, 0  ;;  %v3545_v34 = vld [vmem:[#allocation13] sm:$0xff]  }
 0x45b   : > { %3359 = vmatprep.subr.bf16.mxu1 %v3895_v0  ;;  %v2279_v55 = vsel %vm2136_vm4, %v2128_v43, 0  ;;  %v2132_v19 = vld [vmem:[#allocation3 + $0x1c] sm:$0xf] }
 0x472   : > { %v2039_v11 = vpop.xlane.xlu1 %2038 }
 0x473   : > { %3581 = vrcp.f32 %v2039_v11 }
 0x476   : > { %v2042_v21 = vpop.xlane.xlu0 %2041 }
 0x477   : > { %3583 = vrcp.f32 %v2042_v21 }
 0x47a   : > { %v2045_v22 = vpop.xlane.xlu0 %2044 }
 0x47b   : > { %3585 = vrcp.f32 %v2045_v22 }
 0x47d   : > { %v3582_v26 = vpop.eup %3581 }
 0x47e   : > { %v2048_v25 = vpop.xlane.xlu1 %2047  ;;  %v2101_v30 = vmul.f32 %v3582_v26, %v4546_v16 }
 0x47f   : > { %3587 = vrcp.f32 %v2048_v25 }
 0x481   : > { %v3584_v27 = vpop.eup %3583 }
 0x482   : > { %v2102_v32 = vmul.f32 %v3584_v27, %v4551_v24  ;;  %v2051_v33 = vpop.xlane.xlu0 %2050 }
 0x483   : > { %3589 = vrcp.f32 %v2051_v33 }
 0x484   : > { %v2054_v35 = vpop.xlane.xlu1 %2053  ;;  %v2117_v36 = vpack.c.bf16 %v2102_v32, %v2101_v30 }
 0x485   : > { %3591 = vrcp.f32 %v2054_v35  ;;  %v3586_v40 = vpop.eup %3585 }
 0x486   : > { %3344 = vmatmul.mubr.msk.bf16.vlgmr.msra.gmra.mrb[16].mxu0 %vm1564_vm3, %v2117_v36  ;;  %v2103_v24 = vmul.f32 %v3586_v40, %v4557_v31 }
 0x487   : > { %3354 = vmatpush3.bf16.msra.mxu0 %v2232_v38  ;;  %3355 = vmatprep.mubr.msk.bf16.mxu0 %vm3896_vm0, %v3895_v0 }
 0x488   : > { %3365 = vmatprep.subr.bf16.mxu0 %v3895_v0 }
 0x489   : > { %v3588_v16 = vpop.eup %3587 }
 0x48a   : > { %v2104_v41 = vmul.f32 %v3588_v16, %v4562_v37  ;;  %v2057_v12 = vpop.xlane.xlu0 %2056 }
 0x48b   : > { %3593 = vrcp.f32 %v2057_v12 }
 0x48c   : > { %v2060_v45 = vpop.xlane.xlu1 %2059  ;;  %v2118_v46 = vpack.c.bf16 %v2104_v41, %v2103_v24 }
 0x48d   : > { %v3590_v47 = vpop.eup %3589  ;;  %3595 = vrcp.f32 %v2060_v45 }
 0x48e   : > { %3350 = vmatmul.mubr.msk.bf16.vlgmr.msra.gmra.mrb[28].mxu1 %vm1564_vm3, %v2118_v46  ;;  %v2063_v42 = vpop.xlane.xlu0 %2062  ;;  %v2105_v31 = vmul.f32 %v3590_v47, %v4568_v39 }
 0x48f   : > { %v3592_v52 = vpop.eup %3591  ;;  %3360 = vmatpush3.bf16.msra.mxu1 %v2279_v55  ;;  %3597 = vrcp.f32 %v2063_v42  ;;  %3361 = vmatprep.mubr.msk.bf16.mxu1 %vm3896_vm0, %v3895_v0 }
 0x490   : > { %v2106_v37 = vmul.f32 %v3592_v52, %v4573_v49  ;;  %v2066_v53 = vpop.xlane.xlu1 %2065  ;;  %3371 = vmatprep.subr.bf16.mxu1 %v3895_v0 }
 0x491   : > { %3599 = vrcp.f32 %v2066_v53 }
 0x492   : > { %v2069_v56 = vpop.xlane.xlu0 %2068  ;;  %v2119_v23 = vpack.c.bf16 %v2106_v37, %v2105_v31 }
 0x493   : > { %3601 = vrcp.f32 %v2069_v56 }
 0x494   : > { %v2072_v63 = vpop.xlane.xlu1 %2071  ;;  %3356 = vmatmul.mubr.msk.bf16.vlgmr.msra.gmra.mrb[20].mxu0 %vm1564_vm3, %v2119_v23 }
 0x495   : > { %v3594_v59 = vpop.eup %3593  ;;  %3603 = vrcp.f32 %v2072_v63  ;;  %3366 = vmatpush3.bf16.msra.mxu0 %v2326_v57  ;;  %3367 = vmatprep.mubr.msk.bf16.mxu0 %vm3896_vm0, %v3895_v0 }
 0x496   : > { %v2075_v39 = vpop.xlane.xlu0 %2074  ;;  %3377 = vmatprep.subr.bf16.mxu0 %v3895_v0  ;;  %v2107_v18 = vmul.f32 %v3594_v59, %v4579_v61 }
 0x497   : > { %v3596_v49 = vpop.eup %3595  ;;  %3605 = vrcp.f32 %v2075_v39 }
 0x498   : > { %v2108_v60 = vmul.f32 %v3596_v49, %v4586_v3  ;;  %v2078_v48 = vpop.xlane.xlu1 %2077 }
 0x499   : > { %v3598_v2 = vpop.eup %3597  ;;  %3607 = vrcp.f32 %v2078_v48 }
 0x49a   : > { %v2120_v50 = vpack.c.bf16 %v2108_v60, %v2107_v18  ;;  %v2109_v6 = vmul.f32 %v3598_v2, %v4582_v1 }
 0x49b   : > { %v3600_v5 = vpop.eup %3599 }
 0x49c   : > { %v2110_v28 = vmul.f32 %v3600_v5, %v4593_v7  ;;  %3362 = vmatmul.mubr.msk.bf16.vlgmr.msra.gmra.mrb[32].mxu1 %vm1564_vm3, %v2120_v50  ;;  %v2420_v7 = vsel %vm2136_vm4, %v2131_v9, 0  ;;  %v2084_v26 = vpop.xlane.xlu1 %2083 }
 0x49d   : > { %v3602_v62 = vpop.eup %3601  ;;  %3372 = vmatpush3.bf16.msra.mxu1 %v2373_v8  ;;  %3373 = vmatprep.mubr.msk.bf16.mxu1 %vm3896_vm0, %v3895_v0  ;;  %3609 = vrcp.f32 %v2084_v26 }
 0x49e   : > { %v2121_v61 = vpack.c.bf16 %v2110_v28, %v2109_v6  ;;  %3383 = vmatprep.subr.bf16.mxu1 %v3895_v0  ;;  %v2111_v58 = vmul.f32 %v3602_v62, %v4597_v10 }
 0x49f   : > { %v3604_v3 = vpop.eup %3603 }
 0x4a0   : > { %v2112_v1 = vmul.f32 %v3604_v3, %v4603_v14  ;;  %3368 = vmatmul.mubr.msk.bf16.vlgmr.msra.gmra.mrb[24].mxu0 %vm1564_vm3, %v2121_v61  ;;  %v2467_v14 = vsel %vm2136_vm4, %v2132_v19, 0 }
 0x4a1   : > { %v3606_v15 = vpop.eup %3605  ;;  %3378 = vmatpush3.bf16.msra.mxu0 %v2420_v7  ;;  %3379 = vmatprep.mubr.msk.bf16.mxu0 %vm3896_vm0, %v3895_v0 }
 0x4a2   : > { %v2122_v11 = vpack.c.bf16 %v2112_v1, %v2111_v58  ;;  %3389 = vmatprep.subr.bf16.mxu0 %v3895_v0  ;;  %v2113_v22 = vmul.f32 %v3606_v15, %v4599_v13 }
 0x4a3   : > { %v3608_v21 = vpop.eup %3607 }
 0x4a4   : > { %v2114_v10 = vmul.f32 %v3608_v21, %v4609_v20  ;;  %3374 = vmatmul.mubr.msk.bf16.vlgmr.msra.gmra.mrb[36].mxu1 %vm1564_vm3, %v2122_v11 }
 0x4a5   : > { %3384 = vmatpush3.bf16.msra.mxu1 %v2467_v14  ;;  %3385 = vmatprep.mubr.msk.bf16.mxu1 %vm3896_vm0, %v3895_v0 }
 0x4a6   : > { %v2123_v25 = vpack.c.bf16 %v2114_v10, %v2113_v22 }
 0x4a7   : > { %v3610_v13 = vpop.eup %3609 }
 0x4a8   : > { %3380 = vmatmul.mubr.msk.bf16.vlgmr.msra.gmra.mrb[28].mxu0 %vm1564_vm3, %v2123_v25  ;;  %v2116_v30 = vmul.f32 %v3610_v13, %v4613_v17 }
 0x4a9   : > { %3397 = vmatprep.mubr.msk.bf16.mxu0 %vm3896_vm0, %v3895_v0  ;;  %3390 = vmatpush3.bf16.msra.mxu0 %v3545_v34 }
 0x4aa   : > { %3391 = vmatprep.subr.bf16.mxu0 %v3895_v0 }
 0x4c7   : > { %v2081_v27 = vpop.xlane.xlu0 %2080 }
 0x4c8   : > { %3611 = vrcp.f32 %v2081_v27 }
 0x4d2   : > { %v3612_v20 = vpop.eup %3611 }
 0x4d3   : > { %v2115_v32 = vmul.f32 %v3612_v20, %v4621_v29 }
 0x4d5   : > { %v2124_v33 = vpack.c.bf16 %v2116_v30, %v2115_v32 }
 0x4d7   : > { %3386 = vmatmul.mubr.msk.bf16.vlgmr.msra.gmra.mrb[40].mxu1 %vm1564_vm3, %v2124_v33 }
 0x559   : > { %v2174_v35 = vpop.f32.mrb[16].mxu0 }
 0x55a   : > { %v3345_v36 = vpop.f32.mrb[17].mxu0 }
 0x55b   : > { %v2177_v38 = vpop.f32.mrb[18].mxu0 }
 0x55c   : > { %v2510_v40 = vpack.c.bf16 %v2177_v38, %v2174_v35  ;;  %v3346_v16 = vpop.f32.mrb[19].mxu0 }
 0x55e   : > { %v2522_v17 = vshrl.u32 %v2510_v40, 16 }
 0x561   : > { %v2221_v24 = vpop.f32.mrb[28].mxu1 }
 0x562   : > { %v3351_v41 = vpop.f32.mrb[29].mxu1 }
 0x563   : > { %v2224_v12 = vpop.f32.mrb[30].mxu1 }
 0x564   : > { %v2511_v43 = vpack.c.bf16 %v2224_v12, %v2221_v24  ;;  %v3352_v45 = vpop.f32.mrb[31].mxu1 }
 0x566   : > { %v2520_v46 = vpack.i.b16 %v2511_v43, %v2510_v40  ;;  %v2523_v29 = vshrl.u32 %v2511_v43, 16 }
 0x567   : > { %v2268_v47 = vpop.f32.mrb[20].mxu0 }
 0x568   : > { %v2524_v55 = vpack.i.b16 %v2523_v29, %v2522_v17  ;;  %v3357_v42 = vpop.f32.mrb[21].mxu0 }
 0x569   : > { %v2271_v52 = vpop.f32.mrb[22].mxu0 }
 0x56a   : > { %v2512_v31 = vpack.c.bf16 %v2271_v52, %v2268_v47  ;;  %v3358_v37 = vpop.f32.mrb[23].mxu0 }
 0x56c   : > { %v2530_v59 = vshrl.u32 %v2512_v31, 16 }
 0x56f   : > { %v2315_v53 = vpop.f32.mrb[32].mxu1 }
 0x570   : > { %v3363_v54 = vpop.f32.mrb[33].mxu1 }
 0x571   : > { %v2318_v56 = vpop.f32.mrb[34].mxu1 }
 0x572   : > { %v2513_v23 = vpack.c.bf16 %v2318_v56, %v2315_v53  ;;  %v3364_v63 = vpop.f32.mrb[35].mxu1 }
 0x573   : > { %v2362_v57 = vpop.f32.mrb[24].mxu0 }
 0x574   : > { %v2528_v39 = vpack.i.b16 %v2513_v23, %v2512_v31  ;;  %v2531_v49 = vshrl.u32 %v2513_v23, 16  ;;  %v3369_v18 = vpop.f32.mrb[25].mxu0 }
 0x575   : > { %v2365_v60 = vpop.f32.mrb[26].mxu0 }
 0x576   : > { %v2532_v48 = vpack.i.b16 %v2531_v49, %v2530_v59  ;;  %v2514_v2 = vpack.c.bf16 %v2365_v60, %v2362_v57  ;;  %v3370_v4 = vpop.f32.mrb[27].mxu0 }
 0x577   : > { %v2409_v50 = vpop.f32.mrb[36].mxu1 }
 0x578   : > { %v3375_v5 = vpop.f32.mrb[37].mxu1  ;;  %v2538_v9 = vshrl.u32 %v2514_v2, 16 }
 0x579   : > { %v2412_v6 = vpop.f32.mrb[38].mxu1 }
 0x57a   : > { %v2515_v28 = vpack.c.bf16 %v2412_v6, %v2409_v50  ;;  %v3376_v8 = vpop.f32.mrb[39].mxu1 }
 0x57b   : > { %v2456_v62 = vpop.f32.mrb[28].mxu0 }
 0x57c   : > { %v2536_v61 = vpack.i.b16 %v2515_v28, %v2514_v2  ;;  %v2539_v3 = vshrl.u32 %v2515_v28, 16  ;;  %v3381_v58 = vpop.f32.mrb[29].mxu0 }
 0x57d   : > { %v2459_v1 = vpop.f32.mrb[30].mxu0 }
 0x57e   : > { %v2540_v7 = vpack.i.b16 %v2539_v3, %v2538_v9  ;;  %v2550_v15 = vcombine.low %v2520_v46, %v2536_v61  ;;  %v2551_v19 = vcombine.high %v2520_v46, %v2536_v61  ;;  %v2516_v11 = vpack.c.bf16 %v2459_v1, %v2456_v62  ;;  %v3382_v21 = vpop.f32.mrb[31].mxu0  ;;  %v3546_v1 = vld [vmem:[#allocation13 + $0x8] sm:$0xff]  }
 0x57f   : > { %3392 = vmatpush3.bf16.msra.mxu0 %v3546_v1 }
 0x580   : > { %v2618_v22 = vcombine.low %v2524_v55, %v2540_v7  ;;  %v2619_v10 = vcombine.high %v2524_v55, %v2540_v7  ;;  %v2546_v20 = vshrl.u32 %v2516_v11, 16  ;;  %v2558_v36 = vrot.slane %v2550_v15, %v4337_v44  ;;  %3393 = vmatprep.subr.bf16.mxu0 %v3895_v0 }
 0x581   : > { %v2565_v38 = vrot.slane %v2551_v19, %v4337_v44 }
 0x582   : > { %v2626_v46 = vrot.slane %v2618_v22, %v4337_v44  ;;  %v2633_v29 = vrot.slane %v2619_v10, %v4337_v44 }
 0x5aa   : > { %v2503_v14 = vpop.f32.mrb[40].mxu1 }
 0x5ab   : > { %v3387_v25 = vpop.f32.mrb[41].mxu1 }
 0x5ac   : > { %v2506_v26 = vpop.f32.mrb[42].mxu1 }
 0x5ad   : > { %v2517_v27 = vpack.c.bf16 %v2506_v26, %v2503_v14  ;;  %v3388_v13 = vpop.f32.mrb[43].mxu1 }
 0x5af   : > { %v2544_v30 = vpack.i.b16 %v2517_v27, %v2516_v11  ;;  %v2547_v32 = vshrl.u32 %v2517_v27, 16 }
 0x5b1   : > { %v2548_v33 = vpack.i.b16 %v2547_v32, %v2546_v20  ;;  %v2566_v34 = vcombine.low %v2528_v39, %v2544_v30  ;;  %v2567_v35 = vcombine.high %v2528_v39, %v2544_v30 }
 0x5b3   : > { %v2574_v40 = vrot.slane %v2566_v34, %v4337_v44  ;;  %v2581_v16 = vrot.slane %v2567_v35, %v4337_v44  ;;  %v2634_v24 = vcombine.low %v2532_v48, %v2548_v33  ;;  %v2635_v41 = vcombine.high %v2532_v48, %v2548_v33 }
 0x5b5   : > { %v2582_v12 = vcombine.low %v2558_v36, %v2574_v40  ;;  %v2583_v43 = vcombine.high %v2558_v36, %v2574_v40  ;;  %v2598_v45 = vcombine.low %v2565_v38, %v2581_v16  ;;  %v2599_v17 = vcombine.high %v2565_v38, %v2581_v16 }
 0x5b6   : > { %v2642_v47 = vrot.slane %v2634_v24, %v4337_v44  ;;  %v2649_v55 = vrot.slane %v2635_v41, %v4337_v44 }
 0x5b7   : > { %v2590_v42 = vrot.slane %v2582_v12, %v4341_v51  ;;  %v2597_v52 = vrot.slane %v2583_v43, %v4341_v51  ;;  %v2606_v31 = vrot.slane %v2598_v45, %v4341_v51  ;;  %v2613_v37 = vrot.slane %v2599_v17, %v4341_v51 }
 0x5b8   : > { %v2650_v53 = vcombine.low %v2626_v46, %v2642_v47  ;;  %v2651_v54 = vcombine.high %v2626_v46, %v2642_v47  ;;  %v2666_v56 = vcombine.low %v2633_v29, %v2649_v55  ;;  %v2667_v23 = vcombine.high %v2633_v29, %v2649_v55  ;;  %v3548_v46 = vld [vmem:[#allocation13 + $0x18] sm:$0xff]  }
 0x5b9   : > { %v2686_v63 = vcombine.low %v2590_v42, %v2597_v52  ;;  %v3188_v57 = vcombine.high %v2590_v42, %v2597_v52  ;;  %v2702_v59 = vcombine.low %v2606_v31, %v2613_v37  ;;  %v3189_v39 = vcombine.high %v2606_v31, %v2613_v37 }
 0x5ba   : > { %v2658_v49 = vrot.slane %v2650_v53, %v4341_v51  ;;  %v2665_v18 = vrot.slane %v2651_v54, %v4341_v51  ;;  %v2674_v60 = vrot.slane %v2666_v56, %v4341_v51  ;;  %v2681_v48 = vrot.slane %v2667_v23, %v4341_v51 }
 0x5bb   : > { %v2693_v2 = vrot.slane %v2686_v63, %v4337_v44  ;;  %v2701_v4 = vrot.slane %v3188_v57, %v4337_v44  ;;  %v2709_v50 = vrot.slane %v2702_v59, %v4337_v44  ;;  %v2717_v5 = vrot.slane %v3189_v39, %v4337_v44 }
 0x5bc   : > { %v2754_v6 = vcombine.low %v2658_v49, %v2665_v18  ;;  %v3190_v28 = vcombine.high %v2658_v49, %v2665_v18  ;;  %v2770_v8 = vcombine.low %v2674_v60, %v2681_v48  ;;  %v3191_v62 = vcombine.high %v2674_v60, %v2681_v48 }
 0x5bd   : > { %v2718_v9 = vcombine.low %v2693_v2, %v2701_v4  ;;  %v2734_v61 = vcombine.low %v2709_v50, %v2717_v5  ;;  %v2719_v3 = vcombine.high %v2693_v2, %v2701_v4  ;;  %v2735_v58 = vcombine.high %v2709_v50, %v2717_v5 }
 0x5be   : > { %v2761_v7 = vrot.slane %v2754_v6, %v4337_v44  ;;  %v2769_v15 = vrot.slane %v3190_v28, %v4337_v44  ;;  %v2777_v19 = vrot.slane %v2770_v8, %v4337_v44  ;;  %v2785_v11 = vrot.slane %v3191_v62, %v4337_v44  ;;  %v3547_v44 = vld [vmem:[#allocation13 + $0x10] sm:$0xff]  }
 0x5bf   : > { %v2726_v21 = vrot.slane %v2718_v9, %v4341_v51  ;;  %v2742_v22 = vrot.slane %v2734_v61, %v4341_v51  ;;  %v2733_v10 = vrot.slane %v2719_v3, %v4341_v51  ;;  %v2749_v14 = vrot.slane %v2735_v58, %v4341_v51  ;;  %3394 = vmatpush3.bf16.msra.mxu0 %v3547_v44  ;;  %v3192_v28 = vld [vmem:[%s4859_s28] ss:$0 sm:$0xff] }
 0x5c0   : > { %v2786_v25 = vcombine.low %v2761_v7, %v2769_v15  ;;  %v2802_v26 = vcombine.low %v2777_v19, %v2785_v11  ;;  %v2787_v27 = vcombine.high %v2761_v7, %v2769_v15  ;;  %v2803_v13 = vcombine.high %v2777_v19, %v2785_v11  ;;  %3395 = vmatprep.subr.bf16.mxu0 %v3895_v0 }
 0x5c1   : > { %v2751_v20 = vcombine.high %v2726_v21, %v2742_v22  ;;  %v2750_v30 = vcombine.low %v2726_v21, %v2742_v22  ;;  %v2752_v32 = vcombine.low %v2733_v10, %v2749_v14  ;;  %v2753_v33 = vcombine.high %v2733_v10, %v2749_v14 }
 0x5c2   : > { %v2794_v34 = vrot.slane %v2786_v25, %v4341_v51  ;;  %v2810_v35 = vrot.slane %v2802_v26, %v4341_v51  ;;  %v2801_v36 = vrot.slane %v2787_v27, %v4341_v51  ;;  %v2817_v38 = vrot.slane %v2803_v13, %v4341_v51 }
 0x5c3   : > { %v2825_v12 = vshrl.u32 %v2750_v30, 16  ;;  %v2831_v43 = vshrl.u32 %v2751_v20, 16  ;;  %v2837_v45 = vshrl.u32 %v2752_v32, 16  ;;  %v2843_v17 = vshrl.u32 %v2753_v33, 16  ;;  %3396 = vmatpush3.bf16.msra.mxu0 %v3548_v46 }
 0x5c4   : > { %v2819_v40 = vcombine.high %v2794_v34, %v2810_v35  ;;  %v2818_v16 = vcombine.low %v2794_v34, %v2810_v35  ;;  %v2820_v24 = vcombine.low %v2801_v36, %v2817_v38  ;;  %v2821_v41 = vcombine.high %v2801_v36, %v2817_v38 }
 0x5c6   : > { %v2830_v29 = vpack.i.b16 %v2819_v40, %v2751_v20  ;;  %v2826_v47 = vshrl.u32 %v2818_v16, 16  ;;  %v2832_v55 = vshrl.u32 %v2819_v40, 16  ;;  %v2836_v42 = vpack.i.b16 %v2820_v24, %v2752_v32 }
 0x5c7   : > { %v2838_v52 = vshrl.u32 %v2820_v24, 16  ;;  %v2842_v31 = vpack.i.b16 %v2821_v41, %v2753_v33  ;;  %v2844_v37 = vshrl.u32 %v2821_v41, 16  ;;  %v2824_v51 = vpack.i.b16 %v2818_v16, %v2750_v30 }
 0x5c8   : > { %2848 = vrot.lane.b32.xlu1 %v2830_v29, %s3907_s2  ;;  %v2827_v53 = vpack.i.b16 %v2826_v47, %v2825_v12  ;;  %v2833_v54 = vpack.i.b16 %v2832_v55, %v2831_v43  ;;  %s3785_s2 = scalar_lea.vmem %s4752_s7, 256 }
 0x5c9   : > { %v2839_v56 = vpack.i.b16 %v2838_v52, %v2837_v45  ;;  %v2845_v0 = vpack.i.b16 %v2844_v37, %v2843_v17  ;;  %p3786_p13 = scmp.ne.s32.totalorder %s4752_s7, %s3785_s2 }
 0x5ca   : > { %2846 = vrot.lane.b32.xlu0 %v2827_v53, %s3908_s4 }
 0x5cb   : > { %p3787_p1 = pnand %p3786_p13, %p4861_p4 }
 0x5cc   : > { %2850 = vrot.lane.b32.xlu1 %v2833_v54, %s3909_s23  ;;  %s3914_s23 = smov [#allocation15]  }
 0x5cd   : > { %p3788_p8 = pneg %p3787_p1 }
 0x5ce   : > { %2852 = vrot.lane.b32.xlu0 %v2836_v42, %s3910_s30  ;;  %s3789_s30 = sshll.u32 %s3914_s23, 4  ;;  %s3790_s30 = int_to_ptr.vmem [resolvable:$false] %s3789_s30 }
 0x5cf   : > { %p3792_p3 = scmp.lt.s32.totalorder %s4752_s7, %s3790_s30 }
 0x5d0   : > { %2854 = vrot.lane.b32.xlu1 %v2839_v56, %s3911_s19  ;;  %s3791_s19 = scalar_lea.vmem %s3790_s30, 512 }
 0x5d1   : > { %p3793_p10 = scmp.lt.s32.totalorder %s3791_s19, %s3785_s2 }
 0x5d2   : > { %2856 = vrot.lane.b32.xlu0 %v2842_v31, %s3912_s21 }
 0x5d3   : > { %p3794_p6 = por %p3793_p10, %p3792_p3 }
 0x5d4   : > { %2858 = vrot.lane.b32.xlu1 %v2845_v0, %s3913_s26 }
 0x5d5   : > { %p3795_p5 = pnand %p3794_p6, %p3788_p8 }
 0x63a   : > { %v2849_v23 = vpop.permute.xlu1 %2848 }
 0x63c   : > { %v2847_v63 = vpop.permute.xlu0 %2846 }
 0x63d   : > { %v2862_v57 = vsel %vm1564_vm3, %v2824_v51, %v2847_v63 }
 0x63e   : > { %v2851_v59 = vpop.permute.xlu1 %2850  ;;  %v2865_v39 = vsel %vm2863_vm5, %v2862_v57, %v2849_v23 }
 0x63f   : > { %v2868_v49 = vsel %vm2866_vm6, %v2865_v39, %v2851_v59 }
 0x640   : > { %v2853_v18 = vpop.permute.xlu0 %2852 }
 0x641   : > { %v2871_v60 = vsel %vm2869_vm7, %v2868_v49, %v2853_v18 }
 0x642   : > { %v2855_v48 = vpop.permute.xlu1 %2854 }
 0x643   : > { %v2874_v2 = vsel %vm2872_vm8, %v2871_v60, %v2855_v48 }
 0x644   : > { %v2857_v4 = vpop.permute.xlu0 %2856 }
 0x645   : > { %v2877_v50 = vsel %vm2875_vm9, %v2874_v2, %v2857_v4 }
 0x646   : > { %v2859_v5 = vpop.permute.xlu1 %2858 }
 0x647   : > { %v2880_v6 = vsel %vm2878_vm10, %v2877_v50, %v2859_v5 }
 0x648   : > { %3398 = vmatmul.mubr.msk.bf16.vlgmr.msra.gmra.mrb[32].mxu0 %vm539_vm1, %v2880_v6 }
 0x71b   : > { %v2956_v8 = vpop.f32.mrb[32].mxu0 }
 0x71c   : > { %v2957_v62 = vadd.f32 %v3192_v28, %v2956_v8  ;;  %v3399_v9 = vpop.f32.mrb[33].mxu0 }
 0x71d   : > { %v2959_v61 = vpop.f32.mrb[34].mxu0 }
 0x71e   : > { %2963 = vst.msk [vmem:[%s490_s0] sm:$0xff] %vm539_vm1, %v2957_v62  ;;  %v2960_v3 = vadd.f32 %v3192_v28, %v2959_v61  ;;  %v3400_v58 = vpop.f32.mrb[35].mxu0 }
 0x720   : > { %2964 = vst.msk [vmem:[%s490_s0 + $0x8] sm:$0xff] %vm539_vm1, %v2960_v3 }
 0x721   : > { %3798 = shalt.err (!%p3795_p5)
}
 0x722   : > { %s3799_s21 = scalar_lea.hbm %s4758_s22, 256  ;;  %s3803_s29 = scalar_lea.hbm %s4860_s27, 512 }
 0x723   : > { %p3800_p7 = scmp.ne.s32.totalorder %s4758_s22, %s3799_s21  ;;  %p3804_p9 = scmp.lt.u32.totalorder %s4758_s22, %s4860_s27 }
 0x724   : > { %p3805_p0 = scmp.lt.u32.totalorder %s3803_s29, %s3799_s21  ;;  %p3807_p13 = scmp.lt.u32.totalorder %s3799_s21, %s4758_s22 }
 0x725   : > { %p3801_p12 = pnand %p3800_p7, %p4861_p4 }
 0x726   : > { %p3806_p2 = por %p3805_p0, %p3804_p9 }
 0x727   : > { %p3802_p11 = pneg %p3801_p12 }
 0x728   : > { %p3808_p1 = por %p3807_p13, %p3806_p2 }
 0x72a   : > { %p3809_p8 = pnand %p3808_p1, %p3802_p11 }
 0x72c   : > { %3812 = shalt.err (!%p3809_p8)
}
 0x72d   : > { %s3915_s0 = smov 128  }
 0x72e   : > { %3421 = dma.vmem_to_hbm [thread:$0]  (%p4861_p4), %s4752_s7, 256, %s4758_s22, %s2966_s16, %s3915_s0, %s3915_s0, %s3908_s4  }
 0x72f PF: > { %s4862_s11 = sld [smem:[#allocation22_spill]]  ;;  %s4863_s12 = sld [smem:[#allocation24_spill]] }
 0x730   : > { %p4865_p10 = scmp.ge.s32.totalorder %s3883_s18, 2 }
 0x735   : > { %s2996_s24 = sand.u32 1, %s4862_s11   ;;  %p4864_p3 = scmp.ne.s32.totalorder %s4863_s12, 0 }
 0x736   : > { %s2997_s2 = scalar_lea.sflag [#allocation6], %s2996_s24 }
 0x737   : > { %p3444_p6 = pnand %p4865_p10, %p4864_p3 }
 0x739   : > { %3858 = dma.done.wait (!%p3444_p6), %s2997_s2, 256  }
 0x73a   : > { %3860 = vsyncadd (!%p3444_p6), %s2997_s2, 4294967040  ;;  %s31_s18 = sadd.s32 1, %s3883_s18   ;;  %s4866_s9 = smov %s4873_s13 }
 0x73b   : > { %p28_p5 = scmp.ge.s32.totalorder %s31_s18, 4   ;;  %s4867_s13 = smov %s3867_s14 }
 0x73c   : > { %s4868_s14 = smov %s3871_s15  ;;  %s4869_s15 = smov %s4163_s10 }
 0x73d   : > { %s4870_s16 = smov %s3879_s17  ;;  %s4871_s17 = smov %s4866_s9 }
 0x73e   :  { %30 = sbr.rel (!%p28_p5) target bundleno = 18 (0x12), region = 138 }
 0x745   :  { %3002 = vsyncpa [#allocation5], 1 }
 0x746   :  { %3004 = vsyncpa [#allocation5 + $0x1], 1 }
 0x747   :  { %3005 = vsyncpa [#allocation8], 1 }
 0x748   :  { %3007 = vsyncpa [#allocation8 + $0x1], 1 }
 0x749   :  { %3008 = vsyncpa [#allocation11], 1 }
 0x74a   :  { %3009 = vsyncpa [#allocation14], 1 }
 0x74b   :  { %3010 = vsyncpa [#allocation6], 1 }
 0x74c   :  { %3012 = vsyncpa [#allocation6 + $0x1], 1 }

</bundles_post_ra>
